<compile_context>
chip_gen: v5e
topology: v5e:2x2
jax: 0.10.0
libtpu: 0.0.40
codegen_flags: <defaults>
</compile_context>

<pallas_src>
import jax
import jax.numpy as jnp
import numpy as np
from jax.experimental import pallas as pl
from jax.experimental.pallas import tpu as pltpu


def _round_up(x, m):
    return ((x + m - 1) // m) * m


def _pad_gates_cols(m, H, Hp):
    """[rows, 3H] -> [rows, 3Hp]; each (r,z,n) gate block zero-padded to Hp lanes."""
    rows = m.shape[0]
    out = jnp.zeros((rows, 3 * Hp), jnp.float32)
    out = out.at[:, 0:H].set(m[:, 0:H])
    out = out.at[:, Hp:Hp + H].set(m[:, H:2 * H])
    out = out.at[:, 2 * Hp:2 * Hp + H].set(m[:, 2 * H:3 * H])
    return out


def _pad_gates(m, H, Hp, rows_p):
    """[rows, 3H] -> [rows_p, 3Hp]; gate blocks padded to Hp, rows padded to rows_p."""
    cols = _pad_gates_cols(m, H, Hp)
    return jnp.zeros((rows_p, 3 * Hp), jnp.float32).at[:m.shape[0], :].set(cols)


# ---------------------------------------------------------------------------
# Fused kernel: in-kernel embedding gather + all GRU layers + batch-mean + FFNN.
# ---------------------------------------------------------------------------
def make_fused_kernel(S, B_real, Bp, Hp, NPp, num_layers, ff_layers, t_chunk, unroll):
    def kernel(*refs):
        idx = 0
        lens_ref = refs[idx]; idx += 1        # [Bp, 1] int32 (padded rows = 0)
        seq_ref = refs[idx]; idx += 1         # [S, Bp, 1] int32 (time-major indices)
        proj_ref = refs[idx]; idx += 1        # [NPp, 3Hp] pre-projected embedding table
        gru = []
        for l in range(num_layers):
            if l == 0:
                gru.append((None, None, refs[idx], refs[idx + 1])); idx += 2
            else:
                gru.append((refs[idx], refs[idx + 1], refs[idx + 2], refs[idx + 3]))
                idx += 4
        ff = []
        for _ in range(ff_layers):
            ff.append((refs[idx], refs[idx + 1])); idx += 2
        out_ref = refs[idx]; idx += 1         # [1, Op]
        gi_buf = refs[idx]; idx += 1          # [S, Bp, 3Hp] VMEM scratch (reused per layer)
        x_buf = refs[idx] if num_layers > 1 else None   # [S, Bp, Hp] only if stacked

        lens_v = lens_ref[...]                # [Bp, 1] int32

        # ---- Layer-0 input projection: in-kernel embedding gather as a one-hot
        # matmul against the hoisted table (bih0 + bhh0_{r,z} already folded in).
        proj = proj_ref[...]                  # [NPp, 3Hp]
        for t0 in range(0, S, t_chunk):       # chunked to bound vreg pressure
            ct = min(t_chunk, S - t0)
            ids = seq_ref[t0:t0 + ct]                                   # [ct, Bp, 1]
            iota = jax.lax.broadcasted_iota(jnp.int32, (ct, Bp, NPp), 2)
            onehot = (iota == ids).astype(jnp.float32)                  # [ct, Bp, NPp]
            gi_c = jnp.dot(onehot.reshape(ct * Bp, NPp), proj,
                           preferred_element_type=jnp.float32)          # [ct*Bp, 3Hp]
            gi_buf[t0:t0 + ct] = gi_c.reshape(ct, Bp, 3 * Hp)

        def run_layer(whh_ref, bhhn_ref, write_out):
            whh = whh_ref[...]                # [Hp, 3Hp], VMEM-resident whole loop
            bhhn = bhhn_ref[...]              # [1, Hp]  (n-gate hidden bias, inside r*(.))

            def step(t, h):
                gi = gi_buf[t]                # [Bp, 3Hp] (input proj + r/z biases folded)
                gh = jnp.dot(h, whh, preferred_element_type=jnp.float32)
                # PyTorch GRU gate order r, z, n; slices are 128-lane aligned.
                r = jax.nn.sigmoid(gi[:, 0:Hp] + gh[:, 0:Hp])
                z = jax.nn.sigmoid(gi[:, Hp:2 * Hp] + gh[:, Hp:2 * Hp])
                n = jnp.tanh(gi[:, 2 * Hp:3 * Hp] + r * (gh[:, 2 * Hp:3 * Hp] + bhhn))
                h_cand = (1.0 - z) * n + z * h
                # pack_padded_sequence semantics: hidden advances only while t < length[b].
                # NOTE: padded batch rows have lens=0 so their hidden stays exactly 0,
                # which makes the sum-over-Bp / B_real mean below exact.
                h_new = jnp.where(t < lens_v, h_cand, h)
                if write_out:
                    x_buf[t] = h_new
                return h_new

            h0 = jnp.zeros((Bp, Hp), jnp.float32)
            return jax.lax.fori_loop(0, S, step, h0, unroll=unroll)

        h = run_layer(gru[0][2], gru[0][3], write_out=(num_layers > 1))

        # Layers >= 1: hoist the input projection off the serial path (chunked matmul),
        # writing back into gi_buf (buffer reuse — no second big scratch).
        for l in range(1, num_layers):
            wih_ref, gib_ref, whh_ref, bhhn_ref = gru[l]
            wih = wih_ref[...]
            gib = gib_ref[...]
            for t0 in range(0, S, t_chunk):
                ct = min(t_chunk, S - t0)
                xc = x_buf[t0:t0 + ct].reshape(ct * Bp, Hp)
                gi_c = jnp.dot(xc, wih, preferred_element_type=jnp.float32) + gib
                gi_buf[t0:t0 + ct] = gi_c.reshape(ct, Bp, 3 * Hp)
            h = run_layer(whh_ref, bhhn_ref, write_out=(l < num_layers - 1))

        # avg_hidden = hidden.mean(dim=0): padded rows are exact zeros, so this is exact.
        x = jnp.sum(h, axis=0, keepdims=True) * (1.0 / float(B_real))   # [1, Hp]
        # TODO(synk): Dropout layers are identity here (p=0 / eval mode).
        for (w_ref, b_ref) in ff:
            x = jax.nn.sigmoid(
                jnp.dot(x, w_ref[...], preferred_element_type=jnp.float32) + b_ref[...])
        out_ref[...] = x                      # lane-dense [1, Op] store

    return kernel


# ---------------------------------------------------------------------------
# One-time parameter preparation (hoisted off the per-call path).
# ---------------------------------------------------------------------------
def prepare_params(params):
    pos_embed = params["pos_embed"].astype(jnp.float32)   # [num_pos, input_dim]
    gru = params["gru"]                                    # [(wih_t, whh_t, bih, bhh), ...]
    ffnn = params["ffnn"]                                  # [(w_t, b), ...]
    num_pos = pos_embed.shape[0]
    H = gru[0][1].shape[0]
    O = ffnn[0][0].shape[1]
    Hp = _round_up(H, 128)
    Op = _round_up(O, 128)
    NPp = _round_up(num_pos, 128)

    gru_w = []
    proj_p = None
    for l, (wih_t, whh_t, bih, bhh) in enumerate(gru):
        # b_hn must stay inside r * (Whn h + b_hn)  =>  only fold the r/z hidden biases.
        bhh_rz = bhh.at[:, 2 * H:3 * H].set(0.0)
        bhhn_p = jnp.zeros((1, Hp), jnp.float32).at[:, :H].set(bhh[:, 2 * H:3 * H])
        whh_p = _pad_gates(whh_t, H, Hp, Hp)                         # [Hp, 3Hp]
        if l == 0:
            # Fold layer-0 input projection + bih0 + bhh0_{r,z} into the embedding table.
            proj = pos_embed @ wih_t + bih + bhh_rz                  # [num_pos, 3H]
            proj_p = _pad_gates(proj, H, Hp, NPp)                    # [NPp, 3Hp]
            gru_w.append((whh_p, bhhn_p))
        else:
            wih_p = _pad_gates(wih_t, H, Hp, Hp)                     # [Hp, 3Hp]
            gib_p = _pad_gates_cols(bih + bhh_rz, H, Hp)             # [1, 3Hp]
            gru_w.append((wih_p, gib_p, whh_p, bhhn_p))

    ff_w = []
    for l, (w_t, b) in enumerate(ffnn):
        din = H if l == 0 else O
        din_p = Hp if l == 0 else Op
        w_p = jnp.zeros((din_p, Op), jnp.float32).at[:din, :O].set(w_t)
        b_p = jnp.zeros((1, Op), jnp.float32).at[:, :O].set(b)
        ff_w.append((w_p, b_p))

    return {
        "dims": dict(H=H, O=O, Hp=Hp, Op=Op, NPp=NPp,
                     num_layers=len(gru), ff_layers=len(ffnn)),
        "proj_table": proj_p,
        "gru": gru_w,
        "ffnn": ff_w,
    }


# ---------------------------------------------------------------------------
# NeuralFeature forward (tiny per-call glue + single fused kernel).
# ---------------------------------------------------------------------------
def neural_feature_forward(seq, mask, prepared):
    d = prepared["dims"]
    H, O, Hp, Op, NPp = d["H"], d["O"], d["Hp"], d["Op"], d["NPp"]
    num_layers, ff_layers = d["num_layers"], d["ff_layers"]
    B, S = seq.shape
    Bp = _round_up(B, 8)

    # Per-call glue is only index/length padding (weights/table come pre-padded).
    # lengths = mask.eq(0).sum(1); padded batch rows get length 0 so their hidden stays 0.
    lens = jnp.sum((mask == 0).astype(jnp.int32), axis=1)                 # [B]
    lens_p = jnp.zeros((Bp, 1), jnp.int32).at[:B, 0].set(lens)            # [Bp, 1]
    seq_p = jnp.zeros((S, Bp, 1), jnp.int32).at[:, :B, 0].set(
        jnp.transpose(seq.astype(jnp.int32), (1, 0)))                     # [S, Bp, 1]

    inputs = [lens_p, seq_p, prepared["proj_table"]]
    in_specs = [
        pl.BlockSpec((Bp, 1), lambda i: (0, 0)),
        pl.BlockSpec((S, Bp, 1), lambda i: (0, 0, 0)),
        pl.BlockSpec((NPp, 3 * Hp), lambda i: (0, 0)),
    ]
    for ws in prepared["gru"]:
        for w in ws:
            inputs.append(w)
            in_specs.append(pl.BlockSpec(w.shape, lambda i: (0, 0)))
    for (w_p, b_p) in prepared["ffnn"]:
        inputs += [w_p, b_p]
        in_specs += [pl.BlockSpec(w_p.shape, lambda i: (0, 0)),
                     pl.BlockSpec(b_p.shape, lambda i: (0, 0))]

    # Time-chunk the hoisted (gather / input-projection) matmuls to bound vreg pressure.
    t_chunk = max(1, min(S, 128 // Bp))
    kernel = make_fused_kernel(S, B, Bp, Hp, NPp, num_layers, ff_layers,
                               t_chunk=t_chunk, unroll=(S <= 32))

    scratch = [pltpu.VMEM((S, Bp, 3 * Hp), jnp.float32)]      # gi buffer (reused per layer)
    if num_layers > 1:
        scratch.append(pltpu.VMEM((S, Bp, Hp), jnp.float32))  # layer outputs (only if stacked)

    out = pl.pallas_call(
        kernel,
        out_shape=jax.ShapeDtypeStruct((1, Op), jnp.float32),
        grid_spec=pltpu.PrefetchScalarGridSpec(
            num_scalar_prefetch=0,
            grid=(1,),
            in_specs=in_specs,
            out_specs=pl.BlockSpec((1, Op), lambda i: (0, 0)),
            scratch_shapes=scratch,
        ),
        compiler_params=pltpu.CompilerParams(
            dimension_semantics=("arbitrary",)),
    )(*inputs)
    return out[0, :O]


# ---------------------------------------------------------------------------
# Deterministic parameter init (PyTorch-style shapes, stored transposed).
# ---------------------------------------------------------------------------
def init_params(key, num_pos, input_dim, hidden_dim, num_layers,
                output_dim, ff_layers):
    keys = jax.random.split(key, 1 + 4 * num_layers + 2 * ff_layers)
    ki = iter(keys)
    params = {}
    params["pos_embed"] = jax.random.normal(
        next(ki), (num_pos, input_dim), jnp.float32)
    gru = []
    k = 1.0 / np.sqrt(hidden_dim)
    for l in range(num_layers):
        din = input_dim if l == 0 else hidden_dim
        wih_t = jax.random.uniform(next(ki), (din, 3 * hidden_dim),
                                   jnp.float32, -k, k)
        whh_t = jax.random.uniform(next(ki), (hidden_dim, 3 * hidden_dim),
                                   jnp.float32, -k, k)
        bih = jax.random.uniform(next(ki), (1, 3 * hidden_dim), jnp.float32, -k, k)
        bhh = jax.random.uniform(next(ki), (1, 3 * hidden_dim), jnp.float32, -k, k)
        gru.append((wih_t, whh_t, bih, bhh))
    params["gru"] = gru
    ff = []
    for l in range(ff_layers):
        din = hidden_dim if l == 0 else output_dim
        kk = 1.0 / np.sqrt(din)
        w_t = jax.random.uniform(next(ki), (din, output_dim), jnp.float32, -kk, kk)
        b = jax.random.uniform(next(ki), (1, output_dim), jnp.float32, -kk, kk)
        ff.append((w_t, b))
    params["ffnn"] = ff
    return params


# ---------------------------------------------------------------------------
# Pure-JAX reference (correctness sanity check).
# ---------------------------------------------------------------------------
def reference_forward(seq, mask, params):
    emb = jnp.take(params["pos_embed"], seq, axis=0)
    x = jnp.transpose(emb, (1, 0, 2)).astype(jnp.float32)
    S, B, _ = x.shape
    lens = jnp.sum((mask == 0).astype(jnp.int32), axis=1)[:, None]
    for (wih_t, whh_t, bih, bhh) in params["gru"]:
        H = whh_t.shape[0]

        def step(h, inp, wih_t=wih_t, whh_t=whh_t, bih=bih, bhh=bhh, H=H):
            x_t, t = inp
            gi = x_t @ wih_t + bih
            gh = h @ whh_t + bhh
            r = jax.nn.sigmoid(gi[:, :H] + gh[:, :H])
            z = jax.nn.sigmoid(gi[:, H:2 * H] + gh[:, H:2 * H])
            n = jnp.tanh(gi[:, 2 * H:] + r * gh[:, 2 * H:])
            h_new = (1.0 - z) * n + z * h
            h_new = jnp.where(t < lens, h_new, h)
            return h_new, h_new

        _, x = jax.lax.scan(step, jnp.zeros((B, H), jnp.float32),
                            (x, jnp.arange(S)))
    avg = x[-1].mean(axis=0, keepdims=True)
    for (w_t, b) in params["ffnn"]:
        avg = jax.nn.sigmoid(avg @ w_t + b)
    return avg[0]


if __name__ == "__main__":
    num_pos, input_dim, hidden_dim = 10, 16, 32
    num_layers, output_dim, ff_layers = 2, 32, 2
    B, S = 2, 8

    key = jax.random.PRNGKey(0)
    kp, ks = jax.random.split(key)
    params = init_params(kp, num_pos, input_dim, hidden_dim,
                         num_layers, output_dim, ff_layers)
    prepared = prepare_params(params)   # one-time: padded weights + pre-projected table

    seq = jax.random.randint(ks, (B, S), 0, num_pos, dtype=jnp.int32)
    # mask: 0 = real token, 1 = padding. Batch 0 has length 8, batch 1 length 6.
    mask = jnp.zeros((B, S), dtype=jnp.uint8).at[1, 6:].set(1)

    fwd = jax.jit(lambda s, m: neural_feature_forward(s, m, prepared))
    out = jax.block_until_ready(fwd(seq, mask))

    ref = reference_forward(seq, mask, params)
    np.testing.assert_allclose(np.asarray(out), np.asarray(ref),
                               rtol=5e-4, atol=5e-4)
    assert out.shape == (output_dim,) and out.dtype == jnp.float32
    print("KERNEL_OK")
</pallas_src>

<mosaic_0001>
module attributes {stable_mosaic.version = 11 : i64} {
  func.func @kernel(%arg0: i32, %arg1: memref<8x1xi32, #tpu.memory_space<vmem>>, %arg2: memref<8x8x1xi32, #tpu.memory_space<vmem>>, %arg3: memref<128x384xf32, #tpu.memory_space<vmem>>, %arg4: memref<128x384xf32, #tpu.memory_space<vmem>>, %arg5: memref<1x128xf32, #tpu.memory_space<vmem>>, %arg6: memref<128x384xf32, #tpu.memory_space<vmem>>, %arg7: memref<1x384xf32, #tpu.memory_space<vmem>>, %arg8: memref<128x384xf32, #tpu.memory_space<vmem>>, %arg9: memref<1x128xf32, #tpu.memory_space<vmem>>, %arg10: memref<128x128xf32, #tpu.memory_space<vmem>>, %arg11: memref<1x128xf32, #tpu.memory_space<vmem>>, %arg12: memref<128x128xf32, #tpu.memory_space<vmem>>, %arg13: memref<1x128xf32, #tpu.memory_space<vmem>>, %arg14: memref<1x128xf32, #tpu.memory_space<vmem>>, %arg15: memref<8x8x384xf32, #tpu.memory_space<vmem>>, %arg16: memref<8x8x128xf32, #tpu.memory_space<vmem>>) attributes {dimension_semantics = [#tpu.dimension_semantics<arbitrary>], iteration_bounds = array<i64: 1>, scalar_prefetch = 0 : i64, scratch_operands = 2 : i64, tpu.core_type = #tpu.core_type<tc>, window_params = [{pipeline_mode = #tpu.pipeline_mode<synchronous>, transform_indices = @transform_0, window_bounds = array<i64: 8, 1>}, {pipeline_mode = #tpu.pipeline_mode<synchronous>, transform_indices = @transform_1, window_bounds = array<i64: 8, 8, 1>}, {pipeline_mode = #tpu.pipeline_mode<synchronous>, transform_indices = @transform_2, window_bounds = array<i64: 128, 384>}, {pipeline_mode = #tpu.pipeline_mode<synchronous>, transform_indices = @transform_3, window_bounds = array<i64: 128, 384>}, {pipeline_mode = #tpu.pipeline_mode<synchronous>, transform_indices = @transform_4, window_bounds = array<i64: 1, 128>}, {pipeline_mode = #tpu.pipeline_mode<synchronous>, transform_indices = @transform_5, window_bounds = array<i64: 128, 384>}, {pipeline_mode = #tpu.pipeline_mode<synchronous>, transform_indices = @transform_6, window_bounds = array<i64: 1, 384>}, {pipeline_mode = #tpu.pipeline_mode<synchronous>, transform_indices = @transform_7, window_bounds = array<i64: 128, 384>}, {pipeline_mode = #tpu.pipeline_mode<synchronous>, transform_indices = @transform_8, window_bounds = array<i64: 1, 128>}, {pipeline_mode = #tpu.pipeline_mode<synchronous>, transform_indices = @transform_9, window_bounds = array<i64: 128, 128>}, {pipeline_mode = #tpu.pipeline_mode<synchronous>, transform_indices = @transform_10, window_bounds = array<i64: 1, 128>}, {pipeline_mode = #tpu.pipeline_mode<synchronous>, transform_indices = @transform_11, window_bounds = array<i64: 128, 128>}, {pipeline_mode = #tpu.pipeline_mode<synchronous>, transform_indices = @transform_12, window_bounds = array<i64: 1, 128>}, {pipeline_mode = #tpu.pipeline_mode<synchronous>, transform_indices = @transform_13, window_bounds = array<i64: 1, 128>}]} {
    %c0 = arith.constant 0 : index
    %c0_0 = arith.constant 0 : index
    %0 = vector.load %arg1[%c0, %c0_0] : memref<8x1xi32, #tpu.memory_space<vmem>>, vector<8x1xi32>
    %c0_1 = arith.constant 0 : index
    %c0_2 = arith.constant 0 : index
    %1 = vector.load %arg3[%c0_1, %c0_2] : memref<128x384xf32, #tpu.memory_space<vmem>>, vector<128x384xf32>
    %c0_3 = arith.constant 0 : index
    %c0_4 = arith.constant 0 : index
    %c0_5 = arith.constant 0 : index
    %2 = vector.load %arg2[%c0_3, %c0_4, %c0_5] : memref<8x8x1xi32, #tpu.memory_space<vmem>>, vector<8x8x1xi32>
    %3 = tpu.iota {dimensions = array<i32: 2>} : vector<8x8x128xi32>
    %4 = vector.broadcast %2 : vector<8x8x1xi32> to vector<8x8x128xi32>
    %5 = arith.cmpi eq, %3, %4 : vector<8x8x128xi32>
    %6 = arith.extui %5 : vector<8x8x128xi1> to vector<8x8x128xi32>
    %7 = arith.sitofp %6 : vector<8x8x128xi32> to vector<8x8x128xf32>
    %8 = vector.shape_cast %7 : vector<8x8x128xf32> to vector<64x128xf32>
    %cst = arith.constant dense<0.000000e+00> : vector<64x384xf32>
    %9 = tpu.matmul %8, %1, %cst {dimension_numbers = #tpu.dot_dimension_numbers<[1], [0], [0], [1], [0, 0, 1, 1], [], []>} : vector<64x128xf32>, vector<128x384xf32>, vector<64x384xf32> -> vector<64x384xf32>
    %10 = vector.shape_cast %9 : vector<64x384xf32> to vector<8x8x384xf32>
    %c0_6 = arith.constant 0 : index
    %c0_7 = arith.constant 0 : index
    %c0_8 = arith.constant 0 : index
    %11 = vector.load %arg15[%c0_6, %c0_7, %c0_8] : memref<8x8x384xf32, #tpu.memory_space<vmem>>, vector<8x8x384xf32>
    tpu.vector_store %arg15[%c0_6, %c0_7, %c0_8], %10 {strides = array<i32>} : memref<8x8x384xf32, #tpu.memory_space<vmem>>, vector<8x8x384xf32>,
    %c0_9 = arith.constant 0 : index
    %c0_10 = arith.constant 0 : index
    %12 = vector.load %arg4[%c0_9, %c0_10] : memref<128x384xf32, #tpu.memory_space<vmem>>, vector<128x384xf32>
    %c0_11 = arith.constant 0 : index
    %c0_12 = arith.constant 0 : index
    %13 = vector.load %arg5[%c0_11, %c0_12] : memref<1x128xf32, #tpu.memory_space<vmem>>, vector<1x128xf32>
    %cst_13 = arith.constant 0.000000e+00 : f32
    %14 = vector.broadcast %cst_13 : f32 to vector<8x128xf32>
    %c0_i32 = arith.constant 0 : i32
    %15 = arith.index_cast %c0_i32 : i32 to index
    %c0_14 = arith.constant 0 : index
    %c0_15 = arith.constant 0 : index
    %16 = vector.load %arg15[%15, %c0_14, %c0_15] : memref<8x8x384xf32, #tpu.memory_space<vmem>>, vector<1x8x384xf32>
    %17 = vector.shape_cast %16 : vector<1x8x384xf32> to vector<8x384xf32>
    %cst_16 = arith.constant dense<0.000000e+00> : vector<8x384xf32>
    %18 = tpu.matmul %14, %12, %cst_16 {dimension_numbers = #tpu.dot_dimension_numbers<[1], [0], [0], [1], [0, 0, 1, 1], [], []>} : vector<8x128xf32>, vector<128x384xf32>, vector<8x384xf32> -> vector<8x384xf32>
    %19 = vector.extract_strided_slice %17 {offsets = [0, 0], sizes = [8, 128], strides = [1, 1]} : vector<8x384xf32> to vector<8x128xf32>
    %20 = vector.extract_strided_slice %18 {offsets = [0, 0], sizes = [8, 128], strides = [1, 1]} : vector<8x384xf32> to vector<8x128xf32>
    %21 = arith.addf %19, %20 : vector<8x128xf32>
    %22 = arith.negf %21 : vector<8x128xf32>
    %23 = math.exp %22 : vector<8x128xf32>
    %cst_17 = arith.constant 1.000000e+00 : f32
    %24 = vector.broadcast %cst_17 : f32 to vector<8x128xf32>
    %25 = arith.addf %24, %23 : vector<8x128xf32>
    %26 = arith.divf %24, %25 : vector<8x128xf32>
    %27 = vector.extract_strided_slice %17 {offsets = [0, 128], sizes = [8, 128], strides = [1, 1]} : vector<8x384xf32> to vector<8x128xf32>
    %28 = vector.extract_strided_slice %18 {offsets = [0, 128], sizes = [8, 128], strides = [1, 1]} : vector<8x384xf32> to vector<8x128xf32>
    %29 = arith.addf %27, %28 : vector<8x128xf32>
    %30 = arith.negf %29 : vector<8x128xf32>
    %31 = math.exp %30 : vector<8x128xf32>
    %cst_18 = arith.constant 1.000000e+00 : f32
    %32 = vector.broadcast %cst_18 : f32 to vector<8x128xf32>
    %33 = arith.addf %32, %31 : vector<8x128xf32>
    %34 = arith.divf %32, %33 : vector<8x128xf32>
    %35 = vector.extract_strided_slice %17 {offsets = [0, 256], sizes = [8, 128], strides = [1, 1]} : vector<8x384xf32> to vector<8x128xf32>
    %36 = vector.extract_strided_slice %18 {offsets = [0, 256], sizes = [8, 128], strides = [1, 1]} : vector<8x384xf32> to vector<8x128xf32>
    %37 = vector.broadcast %13 : vector<1x128xf32> to vector<8x128xf32>
    %38 = arith.addf %36, %37 : vector<8x128xf32>
    %39 = arith.mulf %26, %38 : vector<8x128xf32>
    %40 = arith.addf %35, %39 : vector<8x128xf32>
    %41 = math.tanh %40 : vector<8x128xf32>
    %cst_19 = arith.constant 1.000000e+00 : f32
    %42 = vector.broadcast %cst_19 : f32 to vector<8x128xf32>
    %43 = arith.subf %42, %34 : vector<8x128xf32>
    %44 = arith.mulf %43, %41 : vector<8x128xf32>
    %45 = arith.mulf %34, %14 : vector<8x128xf32>
    %46 = arith.addf %44, %45 : vector<8x128xf32>
    %47 = vector.broadcast %c0_i32 : i32 to vector<8x1xi32>
    %48 = arith.cmpi slt, %47, %0 : vector<8x1xi32>
    %49 = vector.shape_cast %48 : vector<8x1xi1> to vector<8x1xi1>
    %50 = vector.broadcast %49 : vector<8x1xi1> to vector<8x128xi1>
    %51 = arith.select %50, %46, %14 : vector<8x128xi1>, vector<8x128xf32>
    %52 = arith.index_cast %c0_i32 : i32 to index
    %c0_20 = arith.constant 0 : index
    %c0_21 = arith.constant 0 : index
    %53 = vector.load %arg16[%52, %c0_20, %c0_21] : memref<8x8x128xf32, #tpu.memory_space<vmem>>, vector<1x8x128xf32>
    %54 = vector.shape_cast %53 : vector<1x8x128xf32> to vector<8x128xf32>
    %55 = vector.shape_cast %51 : vector<8x128xf32> to vector<1x8x128xf32>
    tpu.vector_store %arg16[%52, %c0_20, %c0_21], %55 {strides = array<i32>} : memref<8x8x128xf32, #tpu.memory_space<vmem>>, vector<1x8x128xf32>,
    %c1_i32 = arith.constant 1 : i32
    %56 = arith.index_cast %c1_i32 : i32 to index
    %c0_22 = arith.constant 0 : index
    %c0_23 = arith.constant 0 : index
    %57 = vector.load %arg15[%56, %c0_22, %c0_23] : memref<8x8x384xf32, #tpu.memory_space<vmem>>, vector<1x8x384xf32>
    %58 = vector.shape_cast %57 : vector<1x8x384xf32> to vector<8x384xf32>
    %cst_24 = arith.constant dense<0.000000e+00> : vector<8x384xf32>
    %59 = tpu.matmul %51, %12, %cst_24 {dimension_numbers = #tpu.dot_dimension_numbers<[1], [0], [0], [1], [0, 0, 1, 1], [], []>} : vector<8x128xf32>, vector<128x384xf32>, vector<8x384xf32> -> vector<8x384xf32>
    %60 = vector.extract_strided_slice %58 {offsets = [0, 0], sizes = [8, 128], strides = [1, 1]} : vector<8x384xf32> to vector<8x128xf32>
    %61 = vector.extract_strided_slice %59 {offsets = [0, 0], sizes = [8, 128], strides = [1, 1]} : vector<8x384xf32> to vector<8x128xf32>
    %62 = arith.addf %60, %61 : vector<8x128xf32>
    %63 = arith.negf %62 : vector<8x128xf32>
    %64 = math.exp %63 : vector<8x128xf32>
    %cst_25 = arith.constant 1.000000e+00 : f32
    %65 = vector.broadcast %cst_25 : f32 to vector<8x128xf32>
    %66 = arith.addf %65, %64 : vector<8x128xf32>
    %67 = arith.divf %65, %66 : vector<8x128xf32>
    %68 = vector.extract_strided_slice %58 {offsets = [0, 128], sizes = [8, 128], strides = [1, 1]} : vector<8x384xf32> to vector<8x128xf32>
    %69 = vector.extract_strided_slice %59 {offsets = [0, 128], sizes = [8, 128], strides = [1, 1]} : vector<8x384xf32> to vector<8x128xf32>
    %70 = arith.addf %68, %69 : vector<8x128xf32>
    %71 = arith.negf %70 : vector<8x128xf32>
    %72 = math.exp %71 : vector<8x128xf32>
    %cst_26 = arith.constant 1.000000e+00 : f32
    %73 = vector.broadcast %cst_26 : f32 to vector<8x128xf32>
    %74 = arith.addf %73, %72 : vector<8x128xf32>
    %75 = arith.divf %73, %74 : vector<8x128xf32>
    %76 = vector.extract_strided_slice %58 {offsets = [0, 256], sizes = [8, 128], strides = [1, 1]} : vector<8x384xf32> to vector<8x128xf32>
    %77 = vector.extract_strided_slice %59 {offsets = [0, 256], sizes = [8, 128], strides = [1, 1]} : vector<8x384xf32> to vector<8x128xf32>
    %78 = vector.broadcast %13 : vector<1x128xf32> to vector<8x128xf32>
    %79 = arith.addf %77, %78 : vector<8x128xf32>
    %80 = arith.mulf %67, %79 : vector<8x128xf32>
    %81 = arith.addf %76, %80 : vector<8x128xf32>
    %82 = math.tanh %81 : vector<8x128xf32>
    %cst_27 = arith.constant 1.000000e+00 : f32
    %83 = vector.broadcast %cst_27 : f32 to vector<8x128xf32>
    %84 = arith.subf %83, %75 : vector<8x128xf32>
    %85 = arith.mulf %84, %82 : vector<8x128xf32>
    %86 = arith.mulf %75, %51 : vector<8x128xf32>
    %87 = arith.addf %85, %86 : vector<8x128xf32>
    %88 = vector.broadcast %c1_i32 : i32 to vector<8x1xi32>
    %89 = arith.cmpi slt, %88, %0 : vector<8x1xi32>
    %90 = vector.shape_cast %89 : vector<8x1xi1> to vector<8x1xi1>
    %91 = vector.broadcast %90 : vector<8x1xi1> to vector<8x128xi1>
    %92 = arith.select %91, %87, %51 : vector<8x128xi1>, vector<8x128xf32>
    %93 = arith.index_cast %c1_i32 : i32 to index
    %c0_28 = arith.constant 0 : index
    %c0_29 = arith.constant 0 : index
    %94 = vector.load %arg16[%93, %c0_28, %c0_29] : memref<8x8x128xf32, #tpu.memory_space<vmem>>, vector<1x8x128xf32>
    %95 = vector.shape_cast %94 : vector<1x8x128xf32> to vector<8x128xf32>
    %96 = vector.shape_cast %92 : vector<8x128xf32> to vector<1x8x128xf32>
    tpu.vector_store %arg16[%93, %c0_28, %c0_29], %96 {strides = array<i32>} : memref<8x8x128xf32, #tpu.memory_space<vmem>>, vector<1x8x128xf32>,
    %c2_i32 = arith.constant 2 : i32
    %97 = arith.index_cast %c2_i32 : i32 to index
    %c0_30 = arith.constant 0 : index
    %c0_31 = arith.constant 0 : index
    %98 = vector.load %arg15[%97, %c0_30, %c0_31] : memref<8x8x384xf32, #tpu.memory_space<vmem>>, vector<1x8x384xf32>
    %99 = vector.shape_cast %98 : vector<1x8x384xf32> to vector<8x384xf32>
    %cst_32 = arith.constant dense<0.000000e+00> : vector<8x384xf32>
    %100 = tpu.matmul %92, %12, %cst_32 {dimension_numbers = #tpu.dot_dimension_numbers<[1], [0], [0], [1], [0, 0, 1, 1], [], []>} : vector<8x128xf32>, vector<128x384xf32>, vector<8x384xf32> -> vector<8x384xf32>
    %101 = vector.extract_strided_slice %99 {offsets = [0, 0], sizes = [8, 128], strides = [1, 1]} : vector<8x384xf32> to vector<8x128xf32>
    %102 = vector.extract_strided_slice %100 {offsets = [0, 0], sizes = [8, 128], strides = [1, 1]} : vector<8x384xf32> to vector<8x128xf32>
    %103 = arith.addf %101, %102 : vector<8x128xf32>
    %104 = arith.negf %103 : vector<8x128xf32>
    %105 = math.exp %104 : vector<8x128xf32>
    %cst_33 = arith.constant 1.000000e+00 : f32
    %106 = vector.broadcast %cst_33 : f32 to vector<8x128xf32>
    %107 = arith.addf %106, %105 : vector<8x128xf32>
    %108 = arith.divf %106, %107 : vector<8x128xf32>
    %109 = vector.extract_strided_slice %99 {offsets = [0, 128], sizes = [8, 128], strides = [1, 1]} : vector<8x384xf32> to vector<8x128xf32>
    %110 = vector.extract_strided_slice %100 {offsets = [0, 128], sizes = [8, 128], strides = [1, 1]} : vector<8x384xf32> to vector<8x128xf32>
    %111 = arith.addf %109, %110 : vector<8x128xf32>
    %112 = arith.negf %111 : vector<8x128xf32>
    %113 = math.exp %112 : vector<8x128xf32>
    %cst_34 = arith.constant 1.000000e+00 : f32
    %114 = vector.broadcast %cst_34 : f32 to vector<8x128xf32>
    %115 = arith.addf %114, %113 : vector<8x128xf32>
    %116 = arith.divf %114, %115 : vector<8x128xf32>
    %117 = vector.extract_strided_slice %99 {offsets = [0, 256], sizes = [8, 128], strides = [1, 1]} : vector<8x384xf32> to vector<8x128xf32>
    %118 = vector.extract_strided_slice %100 {offsets = [0, 256], sizes = [8, 128], strides = [1, 1]} : vector<8x384xf32> to vector<8x128xf32>
    %119 = vector.broadcast %13 : vector<1x128xf32> to vector<8x128xf32>
    %120 = arith.addf %118, %119 : vector<8x128xf32>
    %121 = arith.mulf %108, %120 : vector<8x128xf32>
    %122 = arith.addf %117, %121 : vector<8x128xf32>
    %123 = math.tanh %122 : vector<8x128xf32>
    %cst_35 = arith.constant 1.000000e+00 : f32
    %124 = vector.broadcast %cst_35 : f32 to vector<8x128xf32>
    %125 = arith.subf %124, %116 : vector<8x128xf32>
    %126 = arith.mulf %125, %123 : vector<8x128xf32>
    %127 = arith.mulf %116, %92 : vector<8x128xf32>
    %128 = arith.addf %126, %127 : vector<8x128xf32>
    %129 = vector.broadcast %c2_i32 : i32 to vector<8x1xi32>
    %130 = arith.cmpi slt, %129, %0 : vector<8x1xi32>
    %131 = vector.shape_cast %130 : vector<8x1xi1> to vector<8x1xi1>
    %132 = vector.broadcast %131 : vector<8x1xi1> to vector<8x128xi1>
    %133 = arith.select %132, %128, %92 : vector<8x128xi1>, vector<8x128xf32>
    %134 = arith.index_cast %c2_i32 : i32 to index
    %c0_36 = arith.constant 0 : index
    %c0_37 = arith.constant 0 : index
    %135 = vector.load %arg16[%134, %c0_36, %c0_37] : memref<8x8x128xf32, #tpu.memory_space<vmem>>, vector<1x8x128xf32>
    %136 = vector.shape_cast %135 : vector<1x8x128xf32> to vector<8x128xf32>
    %137 = vector.shape_cast %133 : vector<8x128xf32> to vector<1x8x128xf32>
    tpu.vector_store %arg16[%134, %c0_36, %c0_37], %137 {strides = array<i32>} : memref<8x8x128xf32, #tpu.memory_space<vmem>>, vector<1x8x128xf32>,
    %c3_i32 = arith.constant 3 : i32
    %138 = arith.index_cast %c3_i32 : i32 to index
    %c0_38 = arith.constant 0 : index
    %c0_39 = arith.constant 0 : index
    %139 = vector.load %arg15[%138, %c0_38, %c0_39] : memref<8x8x384xf32, #tpu.memory_space<vmem>>, vector<1x8x384xf32>
    %140 = vector.shape_cast %139 : vector<1x8x384xf32> to vector<8x384xf32>
    %cst_40 = arith.constant dense<0.000000e+00> : vector<8x384xf32>
    %141 = tpu.matmul %133, %12, %cst_40 {dimension_numbers = #tpu.dot_dimension_numbers<[1], [0], [0], [1], [0, 0, 1, 1], [], []>} : vector<8x128xf32>, vector<128x384xf32>, vector<8x384xf32> -> vector<8x384xf32>
    %142 = vector.extract_strided_slice %140 {offsets = [0, 0], sizes = [8, 128], strides = [1, 1]} : vector<8x384xf32> to vector<8x128xf32>
    %143 = vector.extract_strided_slice %141 {offsets = [0, 0], sizes = [8, 128], strides = [1, 1]} : vector<8x384xf32> to vector<8x128xf32>
    %144 = arith.addf %142, %143 : vector<8x128xf32>
    %145 = arith.negf %144 : vector<8x128xf32>
    %146 = math.exp %145 : vector<8x128xf32>
    %cst_41 = arith.constant 1.000000e+00 : f32
    %147 = vector.broadcast %cst_41 : f32 to vector<8x128xf32>
    %148 = arith.addf %147, %146 : vector<8x128xf32>
    %149 = arith.divf %147, %148 : vector<8x128xf32>
    %150 = vector.extract_strided_slice %140 {offsets = [0, 128], sizes = [8, 128], strides = [1, 1]} : vector<8x384xf32> to vector<8x128xf32>
    %151 = vector.extract_strided_slice %141 {offsets = [0, 128], sizes = [8, 128], strides = [1, 1]} : vector<8x384xf32> to vector<8x128xf32>
    %152 = arith.addf %150, %151 : vector<8x128xf32>
    %153 = arith.negf %152 : vector<8x128xf32>
    %154 = math.exp %153 : vector<8x128xf32>
    %cst_42 = arith.constant 1.000000e+00 : f32
    %155 = vector.broadcast %cst_42 : f32 to vector<8x128xf32>
    %156 = arith.addf %155, %154 : vector<8x128xf32>
    %157 = arith.divf %155, %156 : vector<8x128xf32>
    %158 = vector.extract_strided_slice %140 {offsets = [0, 256], sizes = [8, 128], strides = [1, 1]} : vector<8x384xf32> to vector<8x128xf32>
    %159 = vector.extract_strided_slice %141 {offsets = [0, 256], sizes = [8, 128], strides = [1, 1]} : vector<8x384xf32> to vector<8x128xf32>
    %160 = vector.broadcast %13 : vector<1x128xf32> to vector<8x128xf32>
    %161 = arith.addf %159, %160 : vector<8x128xf32>
    %162 = arith.mulf %149, %161 : vector<8x128xf32>
    %163 = arith.addf %158, %162 : vector<8x128xf32>
    %164 = math.tanh %163 : vector<8x128xf32>
    %cst_43 = arith.constant 1.000000e+00 : f32
    %165 = vector.broadcast %cst_43 : f32 to vector<8x128xf32>
    %166 = arith.subf %165, %157 : vector<8x128xf32>
    %167 = arith.mulf %166, %164 : vector<8x128xf32>
    %168 = arith.mulf %157, %133 : vector<8x128xf32>
    %169 = arith.addf %167, %168 : vector<8x128xf32>
    %170 = vector.broadcast %c3_i32 : i32 to vector<8x1xi32>
    %171 = arith.cmpi slt, %170, %0 : vector<8x1xi32>
    %172 = vector.shape_cast %171 : vector<8x1xi1> to vector<8x1xi1>
    %173 = vector.broadcast %172 : vector<8x1xi1> to vector<8x128xi1>
    %174 = arith.select %173, %169, %133 : vector<8x128xi1>, vector<8x128xf32>
    %175 = arith.index_cast %c3_i32 : i32 to index
    %c0_44 = arith.constant 0 : index
    %c0_45 = arith.constant 0 : index
    %176 = vector.load %arg16[%175, %c0_44, %c0_45] : memref<8x8x128xf32, #tpu.memory_space<vmem>>, vector<1x8x128xf32>
    %177 = vector.shape_cast %176 : vector<1x8x128xf32> to vector<8x128xf32>
    %178 = vector.shape_cast %174 : vector<8x128xf32> to vector<1x8x128xf32>
    tpu.vector_store %arg16[%175, %c0_44, %c0_45], %178 {strides = array<i32>} : memref<8x8x128xf32, #tpu.memory_space<vmem>>, vector<1x8x128xf32>,
    %c4_i32 = arith.constant 4 : i32
    %179 = arith.index_cast %c4_i32 : i32 to index
    %c0_46 = arith.constant 0 : index
    %c0_47 = arith.constant 0 : index
    %180 = vector.load %arg15[%179, %c0_46, %c0_47] : memref<8x8x384xf32, #tpu.memory_space<vmem>>, vector<1x8x384xf32>
    %181 = vector.shape_cast %180 : vector<1x8x384xf32> to vector<8x384xf32>
    %cst_48 = arith.constant dense<0.000000e+00> : vector<8x384xf32>
    %182 = tpu.matmul %174, %12, %cst_48 {dimension_numbers = #tpu.dot_dimension_numbers<[1], [0], [0], [1], [0, 0, 1, 1], [], []>} : vector<8x128xf32>, vector<128x384xf32>, vector<8x384xf32> -> vector<8x384xf32>
    %183 = vector.extract_strided_slice %181 {offsets = [0, 0], sizes = [8, 128], strides = [1, 1]} : vector<8x384xf32> to vector<8x128xf32>
    %184 = vector.extract_strided_slice %182 {offsets = [0, 0], sizes = [8, 128], strides = [1, 1]} : vector<8x384xf32> to vector<8x128xf32>
    %185 = arith.addf %183, %184 : vector<8x128xf32>
    %186 = arith.negf %185 : vector<8x128xf32>
    %187 = math.exp %186 : vector<8x128xf32>
    %cst_49 = arith.constant 1.000000e+00 : f32
    %188 = vector.broadcast %cst_49 : f32 to vector<8x128xf32>
    %189 = arith.addf %188, %187 : vector<8x128xf32>
    %190 = arith.divf %188, %189 : vector<8x128xf32>
    %191 = vector.extract_strided_slice %181 {offsets = [0, 128], sizes = [8, 128], strides = [1, 1]} : vector<8x384xf32> to vector<8x128xf32>
    %192 = vector.extract_strided_slice %182 {offsets = [0, 128], sizes = [8, 128], strides = [1, 1]} : vector<8x384xf32> to vector<8x128xf32>
    %193 = arith.addf %191, %192 : vector<8x128xf32>
    %194 = arith.negf %193 : vector<8x128xf32>
    %195 = math.exp %194 : vector<8x128xf32>
    %cst_50 = arith.constant 1.000000e+00 : f32
    %196 = vector.broadcast %cst_50 : f32 to vector<8x128xf32>
    %197 = arith.addf %196, %195 : vector<8x128xf32>
    %198 = arith.divf %196, %197 : vector<8x128xf32>
    %199 = vector.extract_strided_slice %181 {offsets = [0, 256], sizes = [8, 128], strides = [1, 1]} : vector<8x384xf32> to vector<8x128xf32>
    %200 = vector.extract_strided_slice %182 {offsets = [0, 256], sizes = [8, 128], strides = [1, 1]} : vector<8x384xf32> to vector<8x128xf32>
    %201 = vector.broadcast %13 : vector<1x128xf32> to vector<8x128xf32>
    %202 = arith.addf %200, %201 : vector<8x128xf32>
    %203 = arith.mulf %190, %202 : vector<8x128xf32>
    %204 = arith.addf %199, %203 : vector<8x128xf32>
    %205 = math.tanh %204 : vector<8x128xf32>
    %cst_51 = arith.constant 1.000000e+00 : f32
    %206 = vector.broadcast %cst_51 : f32 to vector<8x128xf32>
    %207 = arith.subf %206, %198 : vector<8x128xf32>
    %208 = arith.mulf %207, %205 : vector<8x128xf32>
    %209 = arith.mulf %198, %174 : vector<8x128xf32>
    %210 = arith.addf %208, %209 : vector<8x128xf32>
    %211 = vector.broadcast %c4_i32 : i32 to vector<8x1xi32>
    %212 = arith.cmpi slt, %211, %0 : vector<8x1xi32>
    %213 = vector.shape_cast %212 : vector<8x1xi1> to vector<8x1xi1>
    %214 = vector.broadcast %213 : vector<8x1xi1> to vector<8x128xi1>
    %215 = arith.select %214, %210, %174 : vector<8x128xi1>, vector<8x128xf32>
    %216 = arith.index_cast %c4_i32 : i32 to index
    %c0_52 = arith.constant 0 : index
    %c0_53 = arith.constant 0 : index
    %217 = vector.load %arg16[%216, %c0_52, %c0_53] : memref<8x8x128xf32, #tpu.memory_space<vmem>>, vector<1x8x128xf32>
    %218 = vector.shape_cast %217 : vector<1x8x128xf32> to vector<8x128xf32>
    %219 = vector.shape_cast %215 : vector<8x128xf32> to vector<1x8x128xf32>
    tpu.vector_store %arg16[%216, %c0_52, %c0_53], %219 {strides = array<i32>} : memref<8x8x128xf32, #tpu.memory_space<vmem>>, vector<1x8x128xf32>,
    %c5_i32 = arith.constant 5 : i32
    %220 = arith.index_cast %c5_i32 : i32 to index
    %c0_54 = arith.constant 0 : index
    %c0_55 = arith.constant 0 : index
    %221 = vector.load %arg15[%220, %c0_54, %c0_55] : memref<8x8x384xf32, #tpu.memory_space<vmem>>, vector<1x8x384xf32>
    %222 = vector.shape_cast %221 : vector<1x8x384xf32> to vector<8x384xf32>
    %cst_56 = arith.constant dense<0.000000e+00> : vector<8x384xf32>
    %223 = tpu.matmul %215, %12, %cst_56 {dimension_numbers = #tpu.dot_dimension_numbers<[1], [0], [0], [1], [0, 0, 1, 1], [], []>} : vector<8x128xf32>, vector<128x384xf32>, vector<8x384xf32> -> vector<8x384xf32>
    %224 = vector.extract_strided_slice %222 {offsets = [0, 0], sizes = [8, 128], strides = [1, 1]} : vector<8x384xf32> to vector<8x128xf32>
    %225 = vector.extract_strided_slice %223 {offsets = [0, 0], sizes = [8, 128], strides = [1, 1]} : vector<8x384xf32> to vector<8x128xf32>
    %226 = arith.addf %224, %225 : vector<8x128xf32>
    %227 = arith.negf %226 : vector<8x128xf32>
    %228 = math.exp %227 : vector<8x128xf32>
    %cst_57 = arith.constant 1.000000e+00 : f32
    %229 = vector.broadcast %cst_57 : f32 to vector<8x128xf32>
    %230 = arith.addf %229, %228 : vector<8x128xf32>
    %231 = arith.divf %229, %230 : vector<8x128xf32>
    %232 = vector.extract_strided_slice %222 {offsets = [0, 128], sizes = [8, 128], strides = [1, 1]} : vector<8x384xf32> to vector<8x128xf32>
    %233 = vector.extract_strided_slice %223 {offsets = [0, 128], sizes = [8, 128], strides = [1, 1]} : vector<8x384xf32> to vector<8x128xf32>
    %234 = arith.addf %232, %233 : vector<8x128xf32>
    %235 = arith.negf %234 : vector<8x128xf32>
    %236 = math.exp %235 : vector<8x128xf32>
    %cst_58 = arith.constant 1.000000e+00 : f32
    %237 = vector.broadcast %cst_58 : f32 to vector<8x128xf32>
    %238 = arith.addf %237, %236 : vector<8x128xf32>
    %239 = arith.divf %237, %238 : vector<8x128xf32>
    %240 = vector.extract_strided_slice %222 {offsets = [0, 256], sizes = [8, 128], strides = [1, 1]} : vector<8x384xf32> to vector<8x128xf32>
    %241 = vector.extract_strided_slice %223 {offsets = [0, 256], sizes = [8, 128], strides = [1, 1]} : vector<8x384xf32> to vector<8x128xf32>
    %242 = vector.broadcast %13 : vector<1x128xf32> to vector<8x128xf32>
    %243 = arith.addf %241, %242 : vector<8x128xf32>
    %244 = arith.mulf %231, %243 : vector<8x128xf32>
    %245 = arith.addf %240, %244 : vector<8x128xf32>
    %246 = math.tanh %245 : vector<8x128xf32>
    %cst_59 = arith.constant 1.000000e+00 : f32
    %247 = vector.broadcast %cst_59 : f32 to vector<8x128xf32>
    %248 = arith.subf %247, %239 : vector<8x128xf32>
    %249 = arith.mulf %248, %246 : vector<8x128xf32>
    %250 = arith.mulf %239, %215 : vector<8x128xf32>
    %251 = arith.addf %249, %250 : vector<8x128xf32>
    %252 = vector.broadcast %c5_i32 : i32 to vector<8x1xi32>
    %253 = arith.cmpi slt, %252, %0 : vector<8x1xi32>
    %254 = vector.shape_cast %253 : vector<8x1xi1> to vector<8x1xi1>
    %255 = vector.broadcast %254 : vector<8x1xi1> to vector<8x128xi1>
    %256 = arith.select %255, %251, %215 : vector<8x128xi1>, vector<8x128xf32>
    %257 = arith.index_cast %c5_i32 : i32 to index
    %c0_60 = arith.constant 0 : index
    %c0_61 = arith.constant 0 : index
    %258 = vector.load %arg16[%257, %c0_60, %c0_61] : memref<8x8x128xf32, #tpu.memory_space<vmem>>, vector<1x8x128xf32>
    %259 = vector.shape_cast %258 : vector<1x8x128xf32> to vector<8x128xf32>
    %260 = vector.shape_cast %256 : vector<8x128xf32> to vector<1x8x128xf32>
    tpu.vector_store %arg16[%257, %c0_60, %c0_61], %260 {strides = array<i32>} : memref<8x8x128xf32, #tpu.memory_space<vmem>>, vector<1x8x128xf32>,
    %c6_i32 = arith.constant 6 : i32
    %261 = arith.index_cast %c6_i32 : i32 to index
    %c0_62 = arith.constant 0 : index
    %c0_63 = arith.constant 0 : index
    %262 = vector.load %arg15[%261, %c0_62, %c0_63] : memref<8x8x384xf32, #tpu.memory_space<vmem>>, vector<1x8x384xf32>
    %263 = vector.shape_cast %262 : vector<1x8x384xf32> to vector<8x384xf32>
    %cst_64 = arith.constant dense<0.000000e+00> : vector<8x384xf32>
    %264 = tpu.matmul %256, %12, %cst_64 {dimension_numbers = #tpu.dot_dimension_numbers<[1], [0], [0], [1], [0, 0, 1, 1], [], []>} : vector<8x128xf32>, vector<128x384xf32>, vector<8x384xf32> -> vector<8x384xf32>
    %265 = vector.extract_strided_slice %263 {offsets = [0, 0], sizes = [8, 128], strides = [1, 1]} : vector<8x384xf32> to vector<8x128xf32>
    %266 = vector.extract_strided_slice %264 {offsets = [0, 0], sizes = [8, 128], strides = [1, 1]} : vector<8x384xf32> to vector<8x128xf32>
    %267 = arith.addf %265, %266 : vector<8x128xf32>
    %268 = arith.negf %267 : vector<8x128xf32>
    %269 = math.exp %268 : vector<8x128xf32>
    %cst_65 = arith.constant 1.000000e+00 : f32
    %270 = vector.broadcast %cst_65 : f32 to vector<8x128xf32>
    %271 = arith.addf %270, %269 : vector<8x128xf32>
    %272 = arith.divf %270, %271 : vector<8x128xf32>
    %273 = vector.extract_strided_slice %263 {offsets = [0, 128], sizes = [8, 128], strides = [1, 1]} : vector<8x384xf32> to vector<8x128xf32>
    %274 = vector.extract_strided_slice %264 {offsets = [0, 128], sizes = [8, 128], strides = [1, 1]} : vector<8x384xf32> to vector<8x128xf32>
    %275 = arith.addf %273, %274 : vector<8x128xf32>
    %276 = arith.negf %275 : vector<8x128xf32>
    %277 = math.exp %276 : vector<8x128xf32>
    %cst_66 = arith.constant 1.000000e+00 : f32
    %278 = vector.broadcast %cst_66 : f32 to vector<8x128xf32>
    %279 = arith.addf %278, %277 : vector<8x128xf32>
    %280 = arith.divf %278, %279 : vector<8x128xf32>
    %281 = vector.extract_strided_slice %263 {offsets = [0, 256], sizes = [8, 128], strides = [1, 1]} : vector<8x384xf32> to vector<8x128xf32>
    %282 = vector.extract_strided_slice %264 {offsets = [0, 256], sizes = [8, 128], strides = [1, 1]} : vector<8x384xf32> to vector<8x128xf32>
    %283 = vector.broadcast %13 : vector<1x128xf32> to vector<8x128xf32>
    %284 = arith.addf %282, %283 : vector<8x128xf32>
    %285 = arith.mulf %272, %284 : vector<8x128xf32>
    %286 = arith.addf %281, %285 : vector<8x128xf32>
    %287 = math.tanh %286 : vector<8x128xf32>
    %cst_67 = arith.constant 1.000000e+00 : f32
    %288 = vector.broadcast %cst_67 : f32 to vector<8x128xf32>
    %289 = arith.subf %288, %280 : vector<8x128xf32>
    %290 = arith.mulf %289, %287 : vector<8x128xf32>
    %291 = arith.mulf %280, %256 : vector<8x128xf32>
    %292 = arith.addf %290, %291 : vector<8x128xf32>
    %293 = vector.broadcast %c6_i32 : i32 to vector<8x1xi32>
    %294 = arith.cmpi slt, %293, %0 : vector<8x1xi32>
    %295 = vector.shape_cast %294 : vector<8x1xi1> to vector<8x1xi1>
    %296 = vector.broadcast %295 : vector<8x1xi1> to vector<8x128xi1>
    %297 = arith.select %296, %292, %256 : vector<8x128xi1>, vector<8x128xf32>
    %298 = arith.index_cast %c6_i32 : i32 to index
    %c0_68 = arith.constant 0 : index
    %c0_69 = arith.constant 0 : index
    %299 = vector.load %arg16[%298, %c0_68, %c0_69] : memref<8x8x128xf32, #tpu.memory_space<vmem>>, vector<1x8x128xf32>
    %300 = vector.shape_cast %299 : vector<1x8x128xf32> to vector<8x128xf32>
    %301 = vector.shape_cast %297 : vector<8x128xf32> to vector<1x8x128xf32>
    tpu.vector_store %arg16[%298, %c0_68, %c0_69], %301 {strides = array<i32>} : memref<8x8x128xf32, #tpu.memory_space<vmem>>, vector<1x8x128xf32>,
    %c7_i32 = arith.constant 7 : i32
    %302 = arith.index_cast %c7_i32 : i32 to index
    %c0_70 = arith.constant 0 : index
    %c0_71 = arith.constant 0 : index
    %303 = vector.load %arg15[%302, %c0_70, %c0_71] : memref<8x8x384xf32, #tpu.memory_space<vmem>>, vector<1x8x384xf32>
    %304 = vector.shape_cast %303 : vector<1x8x384xf32> to vector<8x384xf32>
    %cst_72 = arith.constant dense<0.000000e+00> : vector<8x384xf32>
    %305 = tpu.matmul %297, %12, %cst_72 {dimension_numbers = #tpu.dot_dimension_numbers<[1], [0], [0], [1], [0, 0, 1, 1], [], []>} : vector<8x128xf32>, vector<128x384xf32>, vector<8x384xf32> -> vector<8x384xf32>
    %306 = vector.extract_strided_slice %304 {offsets = [0, 0], sizes = [8, 128], strides = [1, 1]} : vector<8x384xf32> to vector<8x128xf32>
    %307 = vector.extract_strided_slice %305 {offsets = [0, 0], sizes = [8, 128], strides = [1, 1]} : vector<8x384xf32> to vector<8x128xf32>
    %308 = arith.addf %306, %307 : vector<8x128xf32>
    %309 = arith.negf %308 : vector<8x128xf32>
    %310 = math.exp %309 : vector<8x128xf32>
    %cst_73 = arith.constant 1.000000e+00 : f32
    %311 = vector.broadcast %cst_73 : f32 to vector<8x128xf32>
    %312 = arith.addf %311, %310 : vector<8x128xf32>
    %313 = arith.divf %311, %312 : vector<8x128xf32>
    %314 = vector.extract_strided_slice %304 {offsets = [0, 128], sizes = [8, 128], strides = [1, 1]} : vector<8x384xf32> to vector<8x128xf32>
    %315 = vector.extract_strided_slice %305 {offsets = [0, 128], sizes = [8, 128], strides = [1, 1]} : vector<8x384xf32> to vector<8x128xf32>
    %316 = arith.addf %314, %315 : vector<8x128xf32>
    %317 = arith.negf %316 : vector<8x128xf32>
    %318 = math.exp %317 : vector<8x128xf32>
    %cst_74 = arith.constant 1.000000e+00 : f32
    %319 = vector.broadcast %cst_74 : f32 to vector<8x128xf32>
    %320 = arith.addf %319, %318 : vector<8x128xf32>
    %321 = arith.divf %319, %320 : vector<8x128xf32>
    %322 = vector.extract_strided_slice %304 {offsets = [0, 256], sizes = [8, 128], strides = [1, 1]} : vector<8x384xf32> to vector<8x128xf32>
    %323 = vector.extract_strided_slice %305 {offsets = [0, 256], sizes = [8, 128], strides = [1, 1]} : vector<8x384xf32> to vector<8x128xf32>
    %324 = vector.broadcast %13 : vector<1x128xf32> to vector<8x128xf32>
    %325 = arith.addf %323, %324 : vector<8x128xf32>
    %326 = arith.mulf %313, %325 : vector<8x128xf32>
    %327 = arith.addf %322, %326 : vector<8x128xf32>
    %328 = math.tanh %327 : vector<8x128xf32>
    %cst_75 = arith.constant 1.000000e+00 : f32
    %329 = vector.broadcast %cst_75 : f32 to vector<8x128xf32>
    %330 = arith.subf %329, %321 : vector<8x128xf32>
    %331 = arith.mulf %330, %328 : vector<8x128xf32>
    %332 = arith.mulf %321, %297 : vector<8x128xf32>
    %333 = arith.addf %331, %332 : vector<8x128xf32>
    %334 = vector.broadcast %c7_i32 : i32 to vector<8x1xi32>
    %335 = arith.cmpi slt, %334, %0 : vector<8x1xi32>
    %336 = vector.shape_cast %335 : vector<8x1xi1> to vector<8x1xi1>
    %337 = vector.broadcast %336 : vector<8x1xi1> to vector<8x128xi1>
    %338 = arith.select %337, %333, %297 : vector<8x128xi1>, vector<8x128xf32>
    %339 = arith.index_cast %c7_i32 : i32 to index
    %c0_76 = arith.constant 0 : index
    %c0_77 = arith.constant 0 : index
    %340 = vector.load %arg16[%339, %c0_76, %c0_77] : memref<8x8x128xf32, #tpu.memory_space<vmem>>, vector<1x8x128xf32>
    %341 = vector.shape_cast %340 : vector<1x8x128xf32> to vector<8x128xf32>
    %342 = vector.shape_cast %338 : vector<8x128xf32> to vector<1x8x128xf32>
    tpu.vector_store %arg16[%339, %c0_76, %c0_77], %342 {strides = array<i32>} : memref<8x8x128xf32, #tpu.memory_space<vmem>>, vector<1x8x128xf32>,
    %c8_i32 = arith.constant 8 : i32
    %c0_78 = arith.constant 0 : index
    %c0_79 = arith.constant 0 : index
    %343 = vector.load %arg6[%c0_78, %c0_79] : memref<128x384xf32, #tpu.memory_space<vmem>>, vector<128x384xf32>
    %c0_80 = arith.constant 0 : index
    %c0_81 = arith.constant 0 : index
    %344 = vector.load %arg7[%c0_80, %c0_81] : memref<1x384xf32, #tpu.memory_space<vmem>>, vector<1x384xf32>
    %c0_82 = arith.constant 0 : index
    %c0_83 = arith.constant 0 : index
    %c0_84 = arith.constant 0 : index
    %345 = vector.load %arg16[%c0_82, %c0_83, %c0_84] : memref<8x8x128xf32, #tpu.memory_space<vmem>>, vector<8x8x128xf32>
    %346 = vector.shape_cast %345 : vector<8x8x128xf32> to vector<64x128xf32>
    %cst_85 = arith.constant dense<0.000000e+00> : vector<64x384xf32>
    %347 = tpu.matmul %346, %343, %cst_85 {dimension_numbers = #tpu.dot_dimension_numbers<[1], [0], [0], [1], [0, 0, 1, 1], [], []>} : vector<64x128xf32>, vector<128x384xf32>, vector<64x384xf32> -> vector<64x384xf32>
    %348 = vector.broadcast %344 : vector<1x384xf32> to vector<64x384xf32>
    %349 = arith.addf %347, %348 : vector<64x384xf32>
    %350 = vector.shape_cast %349 : vector<64x384xf32> to vector<8x8x384xf32>
    %c0_86 = arith.constant 0 : index
    %c0_87 = arith.constant 0 : index
    %c0_88 = arith.constant 0 : index
    %351 = vector.load %arg15[%c0_86, %c0_87, %c0_88] : memref<8x8x384xf32, #tpu.memory_space<vmem>>, vector<8x8x384xf32>
    tpu.vector_store %arg15[%c0_86, %c0_87, %c0_88], %350 {strides = array<i32>} : memref<8x8x384xf32, #tpu.memory_space<vmem>>, vector<8x8x384xf32>,
    %c0_89 = arith.constant 0 : index
    %c0_90 = arith.constant 0 : index
    %352 = vector.load %arg8[%c0_89, %c0_90] : memref<128x384xf32, #tpu.memory_space<vmem>>, vector<128x384xf32>
    %c0_91 = arith.constant 0 : index
    %c0_92 = arith.constant 0 : index
    %353 = vector.load %arg9[%c0_91, %c0_92] : memref<1x128xf32, #tpu.memory_space<vmem>>, vector<1x128xf32>
    %cst_93 = arith.constant 0.000000e+00 : f32
    %354 = vector.broadcast %cst_93 : f32 to vector<8x128xf32>
    %c0_i32_94 = arith.constant 0 : i32
    %355 = arith.index_cast %c0_i32_94 : i32 to index
    %c0_95 = arith.constant 0 : index
    %c0_96 = arith.constant 0 : index
    %356 = vector.load %arg15[%355, %c0_95, %c0_96] : memref<8x8x384xf32, #tpu.memory_space<vmem>>, vector<1x8x384xf32>
    %357 = vector.shape_cast %356 : vector<1x8x384xf32> to vector<8x384xf32>
    %cst_97 = arith.constant dense<0.000000e+00> : vector<8x384xf32>
    %358 = tpu.matmul %354, %352, %cst_97 {dimension_numbers = #tpu.dot_dimension_numbers<[1], [0], [0], [1], [0, 0, 1, 1], [], []>} : vector<8x128xf32>, vector<128x384xf32>, vector<8x384xf32> -> vector<8x384xf32>
    %359 = vector.extract_strided_slice %357 {offsets = [0, 0], sizes = [8, 128], strides = [1, 1]} : vector<8x384xf32> to vector<8x128xf32>
    %360 = vector.extract_strided_slice %358 {offsets = [0, 0], sizes = [8, 128], strides = [1, 1]} : vector<8x384xf32> to vector<8x128xf32>
    %361 = arith.addf %359, %360 : vector<8x128xf32>
    %362 = arith.negf %361 : vector<8x128xf32>
    %363 = math.exp %362 : vector<8x128xf32>
    %cst_98 = arith.constant 1.000000e+00 : f32
    %364 = vector.broadcast %cst_98 : f32 to vector<8x128xf32>
    %365 = arith.addf %364, %363 : vector<8x128xf32>
    %366 = arith.divf %364, %365 : vector<8x128xf32>
    %367 = vector.extract_strided_slice %357 {offsets = [0, 128], sizes = [8, 128], strides = [1, 1]} : vector<8x384xf32> to vector<8x128xf32>
    %368 = vector.extract_strided_slice %358 {offsets = [0, 128], sizes = [8, 128], strides = [1, 1]} : vector<8x384xf32> to vector<8x128xf32>
    %369 = arith.addf %367, %368 : vector<8x128xf32>
    %370 = arith.negf %369 : vector<8x128xf32>
    %371 = math.exp %370 : vector<8x128xf32>
    %cst_99 = arith.constant 1.000000e+00 : f32
    %372 = vector.broadcast %cst_99 : f32 to vector<8x128xf32>
    %373 = arith.addf %372, %371 : vector<8x128xf32>
    %374 = arith.divf %372, %373 : vector<8x128xf32>
    %375 = vector.extract_strided_slice %357 {offsets = [0, 256], sizes = [8, 128], strides = [1, 1]} : vector<8x384xf32> to vector<8x128xf32>
    %376 = vector.extract_strided_slice %358 {offsets = [0, 256], sizes = [8, 128], strides = [1, 1]} : vector<8x384xf32> to vector<8x128xf32>
    %377 = vector.broadcast %353 : vector<1x128xf32> to vector<8x128xf32>
    %378 = arith.addf %376, %377 : vector<8x128xf32>
    %379 = arith.mulf %366, %378 : vector<8x128xf32>
    %380 = arith.addf %375, %379 : vector<8x128xf32>
    %381 = math.tanh %380 : vector<8x128xf32>
    %cst_100 = arith.constant 1.000000e+00 : f32
    %382 = vector.broadcast %cst_100 : f32 to vector<8x128xf32>
    %383 = arith.subf %382, %374 : vector<8x128xf32>
    %384 = arith.mulf %383, %381 : vector<8x128xf32>
    %385 = arith.mulf %374, %354 : vector<8x128xf32>
    %386 = arith.addf %384, %385 : vector<8x128xf32>
    %387 = vector.broadcast %c0_i32_94 : i32 to vector<8x1xi32>
    %388 = arith.cmpi slt, %387, %0 : vector<8x1xi32>
    %389 = vector.shape_cast %388 : vector<8x1xi1> to vector<8x1xi1>
    %390 = vector.broadcast %389 : vector<8x1xi1> to vector<8x128xi1>
    %391 = arith.select %390, %386, %354 : vector<8x128xi1>, vector<8x128xf32>
    %c1_i32_101 = arith.constant 1 : i32
    %392 = arith.index_cast %c1_i32_101 : i32 to index
    %c0_102 = arith.constant 0 : index
    %c0_103 = arith.constant 0 : index
    %393 = vector.load %arg15[%392, %c0_102, %c0_103] : memref<8x8x384xf32, #tpu.memory_space<vmem>>, vector<1x8x384xf32>
    %394 = vector.shape_cast %393 : vector<1x8x384xf32> to vector<8x384xf32>
    %cst_104 = arith.constant dense<0.000000e+00> : vector<8x384xf32>
    %395 = tpu.matmul %391, %352, %cst_104 {dimension_numbers = #tpu.dot_dimension_numbers<[1], [0], [0], [1], [0, 0, 1, 1], [], []>} : vector<8x128xf32>, vector<128x384xf32>, vector<8x384xf32> -> vector<8x384xf32>
    %396 = vector.extract_strided_slice %394 {offsets = [0, 0], sizes = [8, 128], strides = [1, 1]} : vector<8x384xf32> to vector<8x128xf32>
    %397 = vector.extract_strided_slice %395 {offsets = [0, 0], sizes = [8, 128], strides = [1, 1]} : vector<8x384xf32> to vector<8x128xf32>
    %398 = arith.addf %396, %397 : vector<8x128xf32>
    %399 = arith.negf %398 : vector<8x128xf32>
    %400 = math.exp %399 : vector<8x128xf32>
    %cst_105 = arith.constant 1.000000e+00 : f32
    %401 = vector.broadcast %cst_105 : f32 to vector<8x128xf32>
    %402 = arith.addf %401, %400 : vector<8x128xf32>
    %403 = arith.divf %401, %402 : vector<8x128xf32>
    %404 = vector.extract_strided_slice %394 {offsets = [0, 128], sizes = [8, 128], strides = [1, 1]} : vector<8x384xf32> to vector<8x128xf32>
    %405 = vector.extract_strided_slice %395 {offsets = [0, 128], sizes = [8, 128], strides = [1, 1]} : vector<8x384xf32> to vector<8x128xf32>
    %406 = arith.addf %404, %405 : vector<8x128xf32>
    %407 = arith.negf %406 : vector<8x128xf32>
    %408 = math.exp %407 : vector<8x128xf32>
    %cst_106 = arith.constant 1.000000e+00 : f32
    %409 = vector.broadcast %cst_106 : f32 to vector<8x128xf32>
    %410 = arith.addf %409, %408 : vector<8x128xf32>
    %411 = arith.divf %409, %410 : vector<8x128xf32>
    %412 = vector.extract_strided_slice %394 {offsets = [0, 256], sizes = [8, 128], strides = [1, 1]} : vector<8x384xf32> to vector<8x128xf32>
    %413 = vector.extract_strided_slice %395 {offsets = [0, 256], sizes = [8, 128], strides = [1, 1]} : vector<8x384xf32> to vector<8x128xf32>
    %414 = vector.broadcast %353 : vector<1x128xf32> to vector<8x128xf32>
    %415 = arith.addf %413, %414 : vector<8x128xf32>
    %416 = arith.mulf %403, %415 : vector<8x128xf32>
    %417 = arith.addf %412, %416 : vector<8x128xf32>
    %418 = math.tanh %417 : vector<8x128xf32>
    %cst_107 = arith.constant 1.000000e+00 : f32
    %419 = vector.broadcast %cst_107 : f32 to vector<8x128xf32>
    %420 = arith.subf %419, %411 : vector<8x128xf32>
    %421 = arith.mulf %420, %418 : vector<8x128xf32>
    %422 = arith.mulf %411, %391 : vector<8x128xf32>
    %423 = arith.addf %421, %422 : vector<8x128xf32>
    %424 = vector.broadcast %c1_i32_101 : i32 to vector<8x1xi32>
    %425 = arith.cmpi slt, %424, %0 : vector<8x1xi32>
    %426 = vector.shape_cast %425 : vector<8x1xi1> to vector<8x1xi1>
    %427 = vector.broadcast %426 : vector<8x1xi1> to vector<8x128xi1>
    %428 = arith.select %427, %423, %391 : vector<8x128xi1>, vector<8x128xf32>
    %c2_i32_108 = arith.constant 2 : i32
    %429 = arith.index_cast %c2_i32_108 : i32 to index
    %c0_109 = arith.constant 0 : index
    %c0_110 = arith.constant 0 : index
    %430 = vector.load %arg15[%429, %c0_109, %c0_110] : memref<8x8x384xf32, #tpu.memory_space<vmem>>, vector<1x8x384xf32>
    %431 = vector.shape_cast %430 : vector<1x8x384xf32> to vector<8x384xf32>
    %cst_111 = arith.constant dense<0.000000e+00> : vector<8x384xf32>
    %432 = tpu.matmul %428, %352, %cst_111 {dimension_numbers = #tpu.dot_dimension_numbers<[1], [0], [0], [1], [0, 0, 1, 1], [], []>} : vector<8x128xf32>, vector<128x384xf32>, vector<8x384xf32> -> vector<8x384xf32>
    %433 = vector.extract_strided_slice %431 {offsets = [0, 0], sizes = [8, 128], strides = [1, 1]} : vector<8x384xf32> to vector<8x128xf32>
    %434 = vector.extract_strided_slice %432 {offsets = [0, 0], sizes = [8, 128], strides = [1, 1]} : vector<8x384xf32> to vector<8x128xf32>
    %435 = arith.addf %433, %434 : vector<8x128xf32>
    %436 = arith.negf %435 : vector<8x128xf32>
    %437 = math.exp %436 : vector<8x128xf32>
    %cst_112 = arith.constant 1.000000e+00 : f32
    %438 = vector.broadcast %cst_112 : f32 to vector<8x128xf32>
    %439 = arith.addf %438, %437 : vector<8x128xf32>
    %440 = arith.divf %438, %439 : vector<8x128xf32>
    %441 = vector.extract_strided_slice %431 {offsets = [0, 128], sizes = [8, 128], strides = [1, 1]} : vector<8x384xf32> to vector<8x128xf32>
    %442 = vector.extract_strided_slice %432 {offsets = [0, 128], sizes = [8, 128], strides = [1, 1]} : vector<8x384xf32> to vector<8x128xf32>
    %443 = arith.addf %441, %442 : vector<8x128xf32>
    %444 = arith.negf %443 : vector<8x128xf32>
    %445 = math.exp %444 : vector<8x128xf32>
    %cst_113 = arith.constant 1.000000e+00 : f32
    %446 = vector.broadcast %cst_113 : f32 to vector<8x128xf32>
    %447 = arith.addf %446, %445 : vector<8x128xf32>
    %448 = arith.divf %446, %447 : vector<8x128xf32>
    %449 = vector.extract_strided_slice %431 {offsets = [0, 256], sizes = [8, 128], strides = [1, 1]} : vector<8x384xf32> to vector<8x128xf32>
    %450 = vector.extract_strided_slice %432 {offsets = [0, 256], sizes = [8, 128], strides = [1, 1]} : vector<8x384xf32> to vector<8x128xf32>
    %451 = vector.broadcast %353 : vector<1x128xf32> to vector<8x128xf32>
    %452 = arith.addf %450, %451 : vector<8x128xf32>
    %453 = arith.mulf %440, %452 : vector<8x128xf32>
    %454 = arith.addf %449, %453 : vector<8x128xf32>
    %455 = math.tanh %454 : vector<8x128xf32>
    %cst_114 = arith.constant 1.000000e+00 : f32
    %456 = vector.broadcast %cst_114 : f32 to vector<8x128xf32>
    %457 = arith.subf %456, %448 : vector<8x128xf32>
    %458 = arith.mulf %457, %455 : vector<8x128xf32>
    %459 = arith.mulf %448, %428 : vector<8x128xf32>
    %460 = arith.addf %458, %459 : vector<8x128xf32>
    %461 = vector.broadcast %c2_i32_108 : i32 to vector<8x1xi32>
    %462 = arith.cmpi slt, %461, %0 : vector<8x1xi32>
    %463 = vector.shape_cast %462 : vector<8x1xi1> to vector<8x1xi1>
    %464 = vector.broadcast %463 : vector<8x1xi1> to vector<8x128xi1>
    %465 = arith.select %464, %460, %428 : vector<8x128xi1>, vector<8x128xf32>
    %c3_i32_115 = arith.constant 3 : i32
    %466 = arith.index_cast %c3_i32_115 : i32 to index
    %c0_116 = arith.constant 0 : index
    %c0_117 = arith.constant 0 : index
    %467 = vector.load %arg15[%466, %c0_116, %c0_117] : memref<8x8x384xf32, #tpu.memory_space<vmem>>, vector<1x8x384xf32>
    %468 = vector.shape_cast %467 : vector<1x8x384xf32> to vector<8x384xf32>
    %cst_118 = arith.constant dense<0.000000e+00> : vector<8x384xf32>
    %469 = tpu.matmul %465, %352, %cst_118 {dimension_numbers = #tpu.dot_dimension_numbers<[1], [0], [0], [1], [0, 0, 1, 1], [], []>} : vector<8x128xf32>, vector<128x384xf32>, vector<8x384xf32> -> vector<8x384xf32>
    %470 = vector.extract_strided_slice %468 {offsets = [0, 0], sizes = [8, 128], strides = [1, 1]} : vector<8x384xf32> to vector<8x128xf32>
    %471 = vector.extract_strided_slice %469 {offsets = [0, 0], sizes = [8, 128], strides = [1, 1]} : vector<8x384xf32> to vector<8x128xf32>
    %472 = arith.addf %470, %471 : vector<8x128xf32>
    %473 = arith.negf %472 : vector<8x128xf32>
    %474 = math.exp %473 : vector<8x128xf32>
    %cst_119 = arith.constant 1.000000e+00 : f32
    %475 = vector.broadcast %cst_119 : f32 to vector<8x128xf32>
    %476 = arith.addf %475, %474 : vector<8x128xf32>
    %477 = arith.divf %475, %476 : vector<8x128xf32>
    %478 = vector.extract_strided_slice %468 {offsets = [0, 128], sizes = [8, 128], strides = [1, 1]} : vector<8x384xf32> to vector<8x128xf32>
    %479 = vector.extract_strided_slice %469 {offsets = [0, 128], sizes = [8, 128], strides = [1, 1]} : vector<8x384xf32> to vector<8x128xf32>
    %480 = arith.addf %478, %479 : vector<8x128xf32>
    %481 = arith.negf %480 : vector<8x128xf32>
    %482 = math.exp %481 : vector<8x128xf32>
    %cst_120 = arith.constant 1.000000e+00 : f32
    %483 = vector.broadcast %cst_120 : f32 to vector<8x128xf32>
    %484 = arith.addf %483, %482 : vector<8x128xf32>
    %485 = arith.divf %483, %484 : vector<8x128xf32>
    %486 = vector.extract_strided_slice %468 {offsets = [0, 256], sizes = [8, 128], strides = [1, 1]} : vector<8x384xf32> to vector<8x128xf32>
    %487 = vector.extract_strided_slice %469 {offsets = [0, 256], sizes = [8, 128], strides = [1, 1]} : vector<8x384xf32> to vector<8x128xf32>
    %488 = vector.broadcast %353 : vector<1x128xf32> to vector<8x128xf32>
    %489 = arith.addf %487, %488 : vector<8x128xf32>
    %490 = arith.mulf %477, %489 : vector<8x128xf32>
    %491 = arith.addf %486, %490 : vector<8x128xf32>
    %492 = math.tanh %491 : vector<8x128xf32>
    %cst_121 = arith.constant 1.000000e+00 : f32
    %493 = vector.broadcast %cst_121 : f32 to vector<8x128xf32>
    %494 = arith.subf %493, %485 : vector<8x128xf32>
    %495 = arith.mulf %494, %492 : vector<8x128xf32>
    %496 = arith.mulf %485, %465 : vector<8x128xf32>
    %497 = arith.addf %495, %496 : vector<8x128xf32>
    %498 = vector.broadcast %c3_i32_115 : i32 to vector<8x1xi32>
    %499 = arith.cmpi slt, %498, %0 : vector<8x1xi32>
    %500 = vector.shape_cast %499 : vector<8x1xi1> to vector<8x1xi1>
    %501 = vector.broadcast %500 : vector<8x1xi1> to vector<8x128xi1>
    %502 = arith.select %501, %497, %465 : vector<8x128xi1>, vector<8x128xf32>
    %c4_i32_122 = arith.constant 4 : i32
    %503 = arith.index_cast %c4_i32_122 : i32 to index
    %c0_123 = arith.constant 0 : index
    %c0_124 = arith.constant 0 : index
    %504 = vector.load %arg15[%503, %c0_123, %c0_124] : memref<8x8x384xf32, #tpu.memory_space<vmem>>, vector<1x8x384xf32>
    %505 = vector.shape_cast %504 : vector<1x8x384xf32> to vector<8x384xf32>
    %cst_125 = arith.constant dense<0.000000e+00> : vector<8x384xf32>
    %506 = tpu.matmul %502, %352, %cst_125 {dimension_numbers = #tpu.dot_dimension_numbers<[1], [0], [0], [1], [0, 0, 1, 1], [], []>} : vector<8x128xf32>, vector<128x384xf32>, vector<8x384xf32> -> vector<8x384xf32>
    %507 = vector.extract_strided_slice %505 {offsets = [0, 0], sizes = [8, 128], strides = [1, 1]} : vector<8x384xf32> to vector<8x128xf32>
    %508 = vector.extract_strided_slice %506 {offsets = [0, 0], sizes = [8, 128], strides = [1, 1]} : vector<8x384xf32> to vector<8x128xf32>
    %509 = arith.addf %507, %508 : vector<8x128xf32>
    %510 = arith.negf %509 : vector<8x128xf32>
    %511 = math.exp %510 : vector<8x128xf32>
    %cst_126 = arith.constant 1.000000e+00 : f32
    %512 = vector.broadcast %cst_126 : f32 to vector<8x128xf32>
    %513 = arith.addf %512, %511 : vector<8x128xf32>
    %514 = arith.divf %512, %513 : vector<8x128xf32>
    %515 = vector.extract_strided_slice %505 {offsets = [0, 128], sizes = [8, 128], strides = [1, 1]} : vector<8x384xf32> to vector<8x128xf32>
    %516 = vector.extract_strided_slice %506 {offsets = [0, 128], sizes = [8, 128], strides = [1, 1]} : vector<8x384xf32> to vector<8x128xf32>
    %517 = arith.addf %515, %516 : vector<8x128xf32>
    %518 = arith.negf %517 : vector<8x128xf32>
    %519 = math.exp %518 : vector<8x128xf32>
    %cst_127 = arith.constant 1.000000e+00 : f32
    %520 = vector.broadcast %cst_127 : f32 to vector<8x128xf32>
    %521 = arith.addf %520, %519 : vector<8x128xf32>
    %522 = arith.divf %520, %521 : vector<8x128xf32>
    %523 = vector.extract_strided_slice %505 {offsets = [0, 256], sizes = [8, 128], strides = [1, 1]} : vector<8x384xf32> to vector<8x128xf32>
    %524 = vector.extract_strided_slice %506 {offsets = [0, 256], sizes = [8, 128], strides = [1, 1]} : vector<8x384xf32> to vector<8x128xf32>
    %525 = vector.broadcast %353 : vector<1x128xf32> to vector<8x128xf32>
    %526 = arith.addf %524, %525 : vector<8x128xf32>
    %527 = arith.mulf %514, %526 : vector<8x128xf32>
    %528 = arith.addf %523, %527 : vector<8x128xf32>
    %529 = math.tanh %528 : vector<8x128xf32>
    %cst_128 = arith.constant 1.000000e+00 : f32
    %530 = vector.broadcast %cst_128 : f32 to vector<8x128xf32>
    %531 = arith.subf %530, %522 : vector<8x128xf32>
    %532 = arith.mulf %531, %529 : vector<8x128xf32>
    %533 = arith.mulf %522, %502 : vector<8x128xf32>
    %534 = arith.addf %532, %533 : vector<8x128xf32>
    %535 = vector.broadcast %c4_i32_122 : i32 to vector<8x1xi32>
    %536 = arith.cmpi slt, %535, %0 : vector<8x1xi32>
    %537 = vector.shape_cast %536 : vector<8x1xi1> to vector<8x1xi1>
    %538 = vector.broadcast %537 : vector<8x1xi1> to vector<8x128xi1>
    %539 = arith.select %538, %534, %502 : vector<8x128xi1>, vector<8x128xf32>
    %c5_i32_129 = arith.constant 5 : i32
    %540 = arith.index_cast %c5_i32_129 : i32 to index
    %c0_130 = arith.constant 0 : index
    %c0_131 = arith.constant 0 : index
    %541 = vector.load %arg15[%540, %c0_130, %c0_131] : memref<8x8x384xf32, #tpu.memory_space<vmem>>, vector<1x8x384xf32>
    %542 = vector.shape_cast %541 : vector<1x8x384xf32> to vector<8x384xf32>
    %cst_132 = arith.constant dense<0.000000e+00> : vector<8x384xf32>
    %543 = tpu.matmul %539, %352, %cst_132 {dimension_numbers = #tpu.dot_dimension_numbers<[1], [0], [0], [1], [0, 0, 1, 1], [], []>} : vector<8x128xf32>, vector<128x384xf32>, vector<8x384xf32> -> vector<8x384xf32>
    %544 = vector.extract_strided_slice %542 {offsets = [0, 0], sizes = [8, 128], strides = [1, 1]} : vector<8x384xf32> to vector<8x128xf32>
    %545 = vector.extract_strided_slice %543 {offsets = [0, 0], sizes = [8, 128], strides = [1, 1]} : vector<8x384xf32> to vector<8x128xf32>
    %546 = arith.addf %544, %545 : vector<8x128xf32>
    %547 = arith.negf %546 : vector<8x128xf32>
    %548 = math.exp %547 : vector<8x128xf32>
    %cst_133 = arith.constant 1.000000e+00 : f32
    %549 = vector.broadcast %cst_133 : f32 to vector<8x128xf32>
    %550 = arith.addf %549, %548 : vector<8x128xf32>
    %551 = arith.divf %549, %550 : vector<8x128xf32>
    %552 = vector.extract_strided_slice %542 {offsets = [0, 128], sizes = [8, 128], strides = [1, 1]} : vector<8x384xf32> to vector<8x128xf32>
    %553 = vector.extract_strided_slice %543 {offsets = [0, 128], sizes = [8, 128], strides = [1, 1]} : vector<8x384xf32> to vector<8x128xf32>
    %554 = arith.addf %552, %553 : vector<8x128xf32>
    %555 = arith.negf %554 : vector<8x128xf32>
    %556 = math.exp %555 : vector<8x128xf32>
    %cst_134 = arith.constant 1.000000e+00 : f32
    %557 = vector.broadcast %cst_134 : f32 to vector<8x128xf32>
    %558 = arith.addf %557, %556 : vector<8x128xf32>
    %559 = arith.divf %557, %558 : vector<8x128xf32>
    %560 = vector.extract_strided_slice %542 {offsets = [0, 256], sizes = [8, 128], strides = [1, 1]} : vector<8x384xf32> to vector<8x128xf32>
    %561 = vector.extract_strided_slice %543 {offsets = [0, 256], sizes = [8, 128], strides = [1, 1]} : vector<8x384xf32> to vector<8x128xf32>
    %562 = vector.broadcast %353 : vector<1x128xf32> to vector<8x128xf32>
    %563 = arith.addf %561, %562 : vector<8x128xf32>
    %564 = arith.mulf %551, %563 : vector<8x128xf32>
    %565 = arith.addf %560, %564 : vector<8x128xf32>
    %566 = math.tanh %565 : vector<8x128xf32>
    %cst_135 = arith.constant 1.000000e+00 : f32
    %567 = vector.broadcast %cst_135 : f32 to vector<8x128xf32>
    %568 = arith.subf %567, %559 : vector<8x128xf32>
    %569 = arith.mulf %568, %566 : vector<8x128xf32>
    %570 = arith.mulf %559, %539 : vector<8x128xf32>
    %571 = arith.addf %569, %570 : vector<8x128xf32>
    %572 = vector.broadcast %c5_i32_129 : i32 to vector<8x1xi32>
    %573 = arith.cmpi slt, %572, %0 : vector<8x1xi32>
    %574 = vector.shape_cast %573 : vector<8x1xi1> to vector<8x1xi1>
    %575 = vector.broadcast %574 : vector<8x1xi1> to vector<8x128xi1>
    %576 = arith.select %575, %571, %539 : vector<8x128xi1>, vector<8x128xf32>
    %c6_i32_136 = arith.constant 6 : i32
    %577 = arith.index_cast %c6_i32_136 : i32 to index
    %c0_137 = arith.constant 0 : index
    %c0_138 = arith.constant 0 : index
    %578 = vector.load %arg15[%577, %c0_137, %c0_138] : memref<8x8x384xf32, #tpu.memory_space<vmem>>, vector<1x8x384xf32>
    %579 = vector.shape_cast %578 : vector<1x8x384xf32> to vector<8x384xf32>
    %cst_139 = arith.constant dense<0.000000e+00> : vector<8x384xf32>
    %580 = tpu.matmul %576, %352, %cst_139 {dimension_numbers = #tpu.dot_dimension_numbers<[1], [0], [0], [1], [0, 0, 1, 1], [], []>} : vector<8x128xf32>, vector<128x384xf32>, vector<8x384xf32> -> vector<8x384xf32>
    %581 = vector.extract_strided_slice %579 {offsets = [0, 0], sizes = [8, 128], strides = [1, 1]} : vector<8x384xf32> to vector<8x128xf32>
    %582 = vector.extract_strided_slice %580 {offsets = [0, 0], sizes = [8, 128], strides = [1, 1]} : vector<8x384xf32> to vector<8x128xf32>
    %583 = arith.addf %581, %582 : vector<8x128xf32>
    %584 = arith.negf %583 : vector<8x128xf32>
    %585 = math.exp %584 : vector<8x128xf32>
    %cst_140 = arith.constant 1.000000e+00 : f32
    %586 = vector.broadcast %cst_140 : f32 to vector<8x128xf32>
    %587 = arith.addf %586, %585 : vector<8x128xf32>
    %588 = arith.divf %586, %587 : vector<8x128xf32>
    %589 = vector.extract_strided_slice %579 {offsets = [0, 128], sizes = [8, 128], strides = [1, 1]} : vector<8x384xf32> to vector<8x128xf32>
    %590 = vector.extract_strided_slice %580 {offsets = [0, 128], sizes = [8, 128], strides = [1, 1]} : vector<8x384xf32> to vector<8x128xf32>
    %591 = arith.addf %589, %590 : vector<8x128xf32>
    %592 = arith.negf %591 : vector<8x128xf32>
    %593 = math.exp %592 : vector<8x128xf32>
    %cst_141 = arith.constant 1.000000e+00 : f32
    %594 = vector.broadcast %cst_141 : f32 to vector<8x128xf32>
    %595 = arith.addf %594, %593 : vector<8x128xf32>
    %596 = arith.divf %594, %595 : vector<8x128xf32>
    %597 = vector.extract_strided_slice %579 {offsets = [0, 256], sizes = [8, 128], strides = [1, 1]} : vector<8x384xf32> to vector<8x128xf32>
    %598 = vector.extract_strided_slice %580 {offsets = [0, 256], sizes = [8, 128], strides = [1, 1]} : vector<8x384xf32> to vector<8x128xf32>
    %599 = vector.broadcast %353 : vector<1x128xf32> to vector<8x128xf32>
    %600 = arith.addf %598, %599 : vector<8x128xf32>
    %601 = arith.mulf %588, %600 : vector<8x128xf32>
    %602 = arith.addf %597, %601 : vector<8x128xf32>
    %603 = math.tanh %602 : vector<8x128xf32>
    %cst_142 = arith.constant 1.000000e+00 : f32
    %604 = vector.broadcast %cst_142 : f32 to vector<8x128xf32>
    %605 = arith.subf %604, %596 : vector<8x128xf32>
    %606 = arith.mulf %605, %603 : vector<8x128xf32>
    %607 = arith.mulf %596, %576 : vector<8x128xf32>
    %608 = arith.addf %606, %607 : vector<8x128xf32>
    %609 = vector.broadcast %c6_i32_136 : i32 to vector<8x1xi32>
    %610 = arith.cmpi slt, %609, %0 : vector<8x1xi32>
    %611 = vector.shape_cast %610 : vector<8x1xi1> to vector<8x1xi1>
    %612 = vector.broadcast %611 : vector<8x1xi1> to vector<8x128xi1>
    %613 = arith.select %612, %608, %576 : vector<8x128xi1>, vector<8x128xf32>
    %c7_i32_143 = arith.constant 7 : i32
    %614 = arith.index_cast %c7_i32_143 : i32 to index
    %c0_144 = arith.constant 0 : index
    %c0_145 = arith.constant 0 : index
    %615 = vector.load %arg15[%614, %c0_144, %c0_145] : memref<8x8x384xf32, #tpu.memory_space<vmem>>, vector<1x8x384xf32>
    %616 = vector.shape_cast %615 : vector<1x8x384xf32> to vector<8x384xf32>
    %cst_146 = arith.constant dense<0.000000e+00> : vector<8x384xf32>
    %617 = tpu.matmul %613, %352, %cst_146 {dimension_numbers = #tpu.dot_dimension_numbers<[1], [0], [0], [1], [0, 0, 1, 1], [], []>} : vector<8x128xf32>, vector<128x384xf32>, vector<8x384xf32> -> vector<8x384xf32>
    %618 = vector.extract_strided_slice %616 {offsets = [0, 0], sizes = [8, 128], strides = [1, 1]} : vector<8x384xf32> to vector<8x128xf32>
    %619 = vector.extract_strided_slice %617 {offsets = [0, 0], sizes = [8, 128], strides = [1, 1]} : vector<8x384xf32> to vector<8x128xf32>
    %620 = arith.addf %618, %619 : vector<8x128xf32>
    %621 = arith.negf %620 : vector<8x128xf32>
    %622 = math.exp %621 : vector<8x128xf32>
    %cst_147 = arith.constant 1.000000e+00 : f32
    %623 = vector.broadcast %cst_147 : f32 to vector<8x128xf32>
    %624 = arith.addf %623, %622 : vector<8x128xf32>
    %625 = arith.divf %623, %624 : vector<8x128xf32>
    %626 = vector.extract_strided_slice %616 {offsets = [0, 128], sizes = [8, 128], strides = [1, 1]} : vector<8x384xf32> to vector<8x128xf32>
    %627 = vector.extract_strided_slice %617 {offsets = [0, 128], sizes = [8, 128], strides = [1, 1]} : vector<8x384xf32> to vector<8x128xf32>
    %628 = arith.addf %626, %627 : vector<8x128xf32>
    %629 = arith.negf %628 : vector<8x128xf32>
    %630 = math.exp %629 : vector<8x128xf32>
    %cst_148 = arith.constant 1.000000e+00 : f32
    %631 = vector.broadcast %cst_148 : f32 to vector<8x128xf32>
    %632 = arith.addf %631, %630 : vector<8x128xf32>
    %633 = arith.divf %631, %632 : vector<8x128xf32>
    %634 = vector.extract_strided_slice %616 {offsets = [0, 256], sizes = [8, 128], strides = [1, 1]} : vector<8x384xf32> to vector<8x128xf32>
    %635 = vector.extract_strided_slice %617 {offsets = [0, 256], sizes = [8, 128], strides = [1, 1]} : vector<8x384xf32> to vector<8x128xf32>
    %636 = vector.broadcast %353 : vector<1x128xf32> to vector<8x128xf32>
    %637 = arith.addf %635, %636 : vector<8x128xf32>
    %638 = arith.mulf %625, %637 : vector<8x128xf32>
    %639 = arith.addf %634, %638 : vector<8x128xf32>
    %640 = math.tanh %639 : vector<8x128xf32>
    %cst_149 = arith.constant 1.000000e+00 : f32
    %641 = vector.broadcast %cst_149 : f32 to vector<8x128xf32>
    %642 = arith.subf %641, %633 : vector<8x128xf32>
    %643 = arith.mulf %642, %640 : vector<8x128xf32>
    %644 = arith.mulf %633, %613 : vector<8x128xf32>
    %645 = arith.addf %643, %644 : vector<8x128xf32>
    %646 = vector.broadcast %c7_i32_143 : i32 to vector<8x1xi32>
    %647 = arith.cmpi slt, %646, %0 : vector<8x1xi32>
    %648 = vector.shape_cast %647 : vector<8x1xi1> to vector<8x1xi1>
    %649 = vector.broadcast %648 : vector<8x1xi1> to vector<8x128xi1>
    %650 = arith.select %649, %645, %613 : vector<8x128xi1>, vector<8x128xf32>
    %c8_i32_150 = arith.constant 8 : i32
    %cst_151 = arith.constant dense<0.000000e+00> : vector<128xf32>
    %651 = vector.multi_reduction <add>, %650, %cst_151 [0] : vector<8x128xf32> to vector<128xf32>
    %652 = vector.shape_cast %651 : vector<128xf32> to vector<1x128xf32>
    %cst_152 = arith.constant 5.000000e-01 : f32
    %653 = vector.broadcast %cst_152 : f32 to vector<1x128xf32>
    %654 = arith.mulf %652, %653 : vector<1x128xf32>
    %c0_153 = arith.constant 0 : index
    %c0_154 = arith.constant 0 : index
    %655 = vector.load %arg10[%c0_153, %c0_154] : memref<128x128xf32, #tpu.memory_space<vmem>>, vector<128x128xf32>
    %cst_155 = arith.constant dense<0.000000e+00> : vector<1x128xf32>
    %656 = tpu.matmul %654, %655, %cst_155 {dimension_numbers = #tpu.dot_dimension_numbers<[1], [0], [0], [1], [0, 0, 1, 1], [], []>} : vector<1x128xf32>, vector<128x128xf32>, vector<1x128xf32> -> vector<1x128xf32>
    %c0_156 = arith.constant 0 : index
    %c0_157 = arith.constant 0 : index
    %657 = vector.load %arg11[%c0_156, %c0_157] : memref<1x128xf32, #tpu.memory_space<vmem>>, vector<1x128xf32>
    %658 = arith.addf %656, %657 : vector<1x128xf32>
    %659 = arith.negf %658 : vector<1x128xf32>
    %660 = math.exp %659 : vector<1x128xf32>
    %cst_158 = arith.constant 1.000000e+00 : f32
    %661 = vector.broadcast %cst_158 : f32 to vector<1x128xf32>
    %662 = arith.addf %661, %660 : vector<1x128xf32>
    %663 = arith.divf %661, %662 : vector<1x128xf32>
    %c0_159 = arith.constant 0 : index
    %c0_160 = arith.constant 0 : index
    %664 = vector.load %arg12[%c0_159, %c0_160] : memref<128x128xf32, #tpu.memory_space<vmem>>, vector<128x128xf32>
    %cst_161 = arith.constant dense<0.000000e+00> : vector<1x128xf32>
    %665 = tpu.matmul %663, %664, %cst_161 {dimension_numbers = #tpu.dot_dimension_numbers<[1], [0], [0], [1], [0, 0, 1, 1], [], []>} : vector<1x128xf32>, vector<128x128xf32>, vector<1x128xf32> -> vector<1x128xf32>
    %c0_162 = arith.constant 0 : index
    %c0_163 = arith.constant 0 : index
    %666 = vector.load %arg13[%c0_162, %c0_163] : memref<1x128xf32, #tpu.memory_space<vmem>>, vector<1x128xf32>
    %667 = arith.addf %665, %666 : vector<1x128xf32>
    %668 = arith.negf %667 : vector<1x128xf32>
    %669 = math.exp %668 : vector<1x128xf32>
    %cst_164 = arith.constant 1.000000e+00 : f32
    %670 = vector.broadcast %cst_164 : f32 to vector<1x128xf32>
    %671 = arith.addf %670, %669 : vector<1x128xf32>
    %672 = arith.divf %670, %671 : vector<1x128xf32>
    %c0_165 = arith.constant 0 : index
    %c0_166 = arith.constant 0 : index
    %673 = vector.load %arg14[%c0_165, %c0_166] : memref<1x128xf32, #tpu.memory_space<vmem>>, vector<1x128xf32>
    tpu.vector_store %arg14[%c0_165, %c0_166], %672 {strides = array<i32>} : memref<1x128xf32, #tpu.memory_space<vmem>>, vector<1x128xf32>,
    return
  }
  func.func @transform_0(%arg0: i32) -> (i32, i32) {
    %c0_i32 = arith.constant 0 : i32
    %c0_i32_0 = arith.constant 0 : i32
    %c0_i32_1 = arith.constant 0 : i32
    return %c0_i32, %c0_i32_0 : i32, i32
  }
  func.func @transform_1(%arg0: i32) -> (i32, i32, i32) {
    %c0_i32 = arith.constant 0 : i32
    %c0_i32_0 = arith.constant 0 : i32
    %c0_i32_1 = arith.constant 0 : i32
    %c0_i32_2 = arith.constant 0 : i32
    return %c0_i32, %c0_i32_0, %c0_i32_1 : i32, i32, i32
  }
  func.func @transform_2(%arg0: i32) -> (i32, i32) {
    %c0_i32 = arith.constant 0 : i32
    %c0_i32_0 = arith.constant 0 : i32
    %c0_i32_1 = arith.constant 0 : i32
    return %c0_i32, %c0_i32_0 : i32, i32
  }
  func.func @transform_3(%arg0: i32) -> (i32, i32) {
    %c0_i32 = arith.constant 0 : i32
    %c0_i32_0 = arith.constant 0 : i32
    %c0_i32_1 = arith.constant 0 : i32
    return %c0_i32, %c0_i32_0 : i32, i32
  }
  func.func @transform_4(%arg0: i32) -> (i32, i32) {
    %c0_i32 = arith.constant 0 : i32
    %c0_i32_0 = arith.constant 0 : i32
    %c0_i32_1 = arith.constant 0 : i32
    return %c0_i32, %c0_i32_0 : i32, i32
  }
  func.func @transform_5(%arg0: i32) -> (i32, i32) {
    %c0_i32 = arith.constant 0 : i32
    %c0_i32_0 = arith.constant 0 : i32
    %c0_i32_1 = arith.constant 0 : i32
    return %c0_i32, %c0_i32_0 : i32, i32
  }
  func.func @transform_6(%arg0: i32) -> (i32, i32) {
    %c0_i32 = arith.constant 0 : i32
    %c0_i32_0 = arith.constant 0 : i32
    %c0_i32_1 = arith.constant 0 : i32
    return %c0_i32, %c0_i32_0 : i32, i32
  }
  func.func @transform_7(%arg0: i32) -> (i32, i32) {
    %c0_i32 = arith.constant 0 : i32
    %c0_i32_0 = arith.constant 0 : i32
    %c0_i32_1 = arith.constant 0 : i32
    return %c0_i32, %c0_i32_0 : i32, i32
  }
  func.func @transform_8(%arg0: i32) -> (i32, i32) {
    %c0_i32 = arith.constant 0 : i32
    %c0_i32_0 = arith.constant 0 : i32
    %c0_i32_1 = arith.constant 0 : i32
    return %c0_i32, %c0_i32_0 : i32, i32
  }
  func.func @transform_9(%arg0: i32) -> (i32, i32) {
    %c0_i32 = arith.constant 0 : i32
    %c0_i32_0 = arith.constant 0 : i32
    %c0_i32_1 = arith.constant 0 : i32
    return %c0_i32, %c0_i32_0 : i32, i32
  }
  func.func @transform_10(%arg0: i32) -> (i32, i32) {
    %c0_i32 = arith.constant 0 : i32
    %c0_i32_0 = arith.constant 0 : i32
    %c0_i32_1 = arith.constant 0 : i32
    return %c0_i32, %c0_i32_0 : i32, i32
  }
  func.func @transform_11(%arg0: i32) -> (i32, i32) {
    %c0_i32 = arith.constant 0 : i32
    %c0_i32_0 = arith.constant 0 : i32
    %c0_i32_1 = arith.constant 0 : i32
    return %c0_i32, %c0_i32_0 : i32, i32
  }
  func.func @transform_12(%arg0: i32) -> (i32, i32) {
    %c0_i32 = arith.constant 0 : i32
    %c0_i32_0 = arith.constant 0 : i32
    %c0_i32_1 = arith.constant 0 : i32
    return %c0_i32, %c0_i32_0 : i32, i32
  }
  func.func @transform_13(%arg0: i32) -> (i32, i32) {
    %c0_i32 = arith.constant 0 : i32
    %c0_i32_0 = arith.constant 0 : i32
    %c0_i32_1 = arith.constant 0 : i32
    return %c0_i32, %c0_i32_0 : i32, i32
  }
}

</mosaic_0001>

<bundles_post_ra>
// kernel: _lambda_.1
= control target key start
LH: loop header
LB: loop body
LE: loop exit
PB: predicated region body
PF: predicated region fallthrough
CT: control target
= control target key end

     0   :  { %18 = vsyncpa [#allocation5], 0  ;;  %s4939_s0 = inlined_call_operand.vmem [shape: s32[8,1], index: 0, kind: input, shape index: {}]   ;;  %s4940_s1 = inlined_call_operand.vmem [shape: s32[8,8,1], index: 1, kind: input, shape index: {}]   ;;  %s4941_s2 = inlined_call_operand.hbm [shape: f32[128,384], index: 2, kind: input, shape index: {}]   ;;  %s4942_s3 = inlined_call_operand.hbm [shape: f32[128,384], index: 3, kind: input, shape index: {}]   ;;  %s4943_s4 = inlined_call_operand.vmem [shape: f32[1,128], index: 4, kind: input, shape index: {}]   ;;  %s4944_s5 = inlined_call_operand.hbm [shape: f32[128,384], index: 5, kind: input, shape index: {}]   ;;  %s4945_s6 = inlined_call_operand.vmem [shape: f32[1,384], index: 6, kind: input, shape index: {}]   ;;  %s4946_s7 = inlined_call_operand.hbm [shape: f32[128,384], index: 7, kind: input, shape index: {}]   ;;  %s4947_s8 = inlined_call_operand.vmem [shape: f32[1,128], index: 8, kind: input, shape index: {}]   ;;  %s4948_s9 = inlined_call_operand.hbm [shape: f32[128,128], index: 9, kind: input, shape index: {}]   ;;  %s4949_s10 = inlined_call_operand.vmem [shape: f32[1,128], index: 10, kind: input, shape index: {}]   ;;  %s4950_s11 = inlined_call_operand.hbm [shape: f32[128,128], index: 11, kind: input, shape index: {}]   ;;  %s4951_s12 = inlined_call_operand.vmem [shape: f32[1,128], index: 12, kind: input, shape index: {}]   ;;  %s4952_s13 = inlined_call_operand.vmem [shape: f32[1,128], index: 13, kind: output, shape index: {}]  }
   0x1   :  { %19 = vsyncpa [#allocation7], 0 }
   0x2   :  { %20 = vsyncpa [#allocation10], 0 }
   0x3   :  { %21 = vsyncpa [#allocation13], 0  ;;  %s43_s27 = sshll.u32 %s4942_s3, 4  ;;  %s3208_s28 = smov [#allocation6]   ;;  %s44_s27 = int_to_ptr.hbm [resolvable:$true] %s43_s27 }
   0x4   :  { %s45_s29 = sshll.u32 %s3208_s28, 4  ;;  %s73_s15 = sshll.u32 %s4946_s7, 4  ;;  %s46_s29 = int_to_ptr.vmem [resolvable:$true] %s45_s29  ;;  %s74_s15 = int_to_ptr.hbm [resolvable:$true] %s73_s15 }
   0x5   :  { %s3209_s16 = smov 384   ;;  %s3210_s17 = smov 24  }
   0x6   :  { %51 = dma.hbm_to_vmem [thread:$0]  %s44_s27, 6144, %s46_s29, [#allocation7], %s3209_s16, %s3209_s16, %s3210_s17  }
   0x7   :  { %s3211_s18 = smov [#allocation9]   ;;  %s30_s22 = sshll.u32 %s4941_s2, 4  ;;  %s31_s22 = int_to_ptr.hbm [resolvable:$true] %s30_s22 }
   0x8   :  { %s75_s19 = sshll.u32 %s3211_s18, 4  ;;  %s58_s24 = sshll.u32 %s4944_s5, 4  ;;  %s76_s19 = int_to_ptr.vmem [resolvable:$true] %s75_s19  ;;  %s59_s24 = int_to_ptr.hbm [resolvable:$true] %s58_s24 }
   0x9   :  { %81 = dma.hbm_to_vmem [thread:$0]  %s74_s15, 6144, %s76_s19, [#allocation10], %s3209_s16, %s3209_s16, %s3210_s17  }
   0xa   :  { %s3212_s25 = smov [#allocation4]   ;;  %s3213_s7 = smov [#allocation8]  }
   0xb   :  { %s32_s26 = sshll.u32 %s3212_s25, 4  ;;  %s60_s27 = sshll.u32 %s3213_s7, 4  ;;  %s33_s26 = int_to_ptr.vmem [resolvable:$true] %s32_s26  ;;  %s61_s27 = int_to_ptr.vmem [resolvable:$true] %s60_s27 }
   0xc   :  { %38 = dma.hbm_to_vmem [thread:$0]  %s31_s22, 6144, %s33_s26, [#allocation5], %s3209_s16, %s3209_s16, %s3210_s17  }
   0xd   :  { %s88_s30 = sshll.u32 %s4948_s9, 4  ;;  %s3214_s2 = smov [#allocation11]   ;;  %s89_s30 = int_to_ptr.hbm [resolvable:$true] %s88_s30 }
   0xe   :  { %66 = dma.hbm_to_vmem [thread:$0]  %s59_s24, 6144, %s61_s27, [#allocation7], %s3209_s16, %s3209_s16, %s3210_s17  }
   0xf   :  { %s90_s14 = sshll.u32 %s3214_s2, 4  ;;  %s103_s5 = sshll.u32 %s4950_s11, 4  ;;  %s91_s14 = int_to_ptr.vmem [resolvable:$true] %s90_s14  ;;  %s104_s5 = int_to_ptr.hbm [resolvable:$true] %s103_s5 }
  0x10   :  { %s3215_s19 = smov 128   ;;  %s3216_s20 = smov 8  }
  0x11   :  { %96 = dma.hbm_to_vmem [thread:$0]  %s89_s30, 2048, %s91_s14, [#allocation10], %s3215_s19, %s3215_s19, %s3216_s20  }
  0x12   :  { %s3217_s21 = smov [#allocation12]  }
  0x13   :  { %s105_s22 = sshll.u32 %s3217_s21, 4  ;;  %s106_s22 = int_to_ptr.vmem [resolvable:$true] %s105_s22 }
  0x14   :  { %111 = dma.hbm_to_vmem [thread:$0]  %s104_s5, 2048, %s106_s22, [#allocation13], %s3215_s19, %s3215_s19, %s3216_s20  }
  0x15   :  { %3200 = dma.done.wait [#allocation5], 6144  }
  0x16   :  { %3201 = vsyncadd [#allocation5], 4294961152 }
  0x17   :  { %3202 = dma.done.wait [#allocation7], 12288  }
  0x18   :  { %3203 = vsyncadd [#allocation7], 4294955008 }
  0x19   :  { %3204 = dma.done.wait [#allocation10], 8192  }
  0x1a   :  { %3205 = vsyncadd [#allocation10], 4294959104 }
  0x1b   :  { %3206 = dma.done.wait [#allocation13], 2048  }
  0x1c   :  { %3207 = vsyncadd [#allocation13], 4294965248  ;;  %v3218_v0 = vmov 0   ;;  %v189_v1 = vld [vmem:[%s4940_s1 + $0x10] sm:$0xff]  ;;  %v187_v2 = vld [vmem:[%s4940_s1] sm:$0xff] }
  0x1d   :  { %2786 = vset.pattern.permute.xlu1 %v3218_v0  ;;  %2785 = vset.pattern.permute.xlu0 %v3218_v0  ;;  %v191_v3 = vld [vmem:[%s4940_s1 + $0x20] sm:$0xff]  ;;  %v190_v4 = vld [vmem:[%s4940_s1 + $0x18] sm:$0xff]  ;;  %v188_v5 = vld [vmem:[%s4940_s1 + $0x8] sm:$0xff] }
  0x1e   :  { %2787 = vset.pattern.permute.xlu2 %v3218_v0  ;;  %204 = vperm.xlu1 %2786, %v189_v1   ;;  %v192_v6 = vld [vmem:[%s4940_s1 + $0x28] sm:$0xff]  ;;  %v3332_v8 = vld [vmem:[#allocation6 + $0x150] sm:$0xff]  ;;  %v3335_v9 = vld [vmem:[#allocation6 + $0x138] sm:$0xff] }
  0x1f   :  { %198 = vperm.xlu0 %2785, %v187_v2   ;;  %210 = vperm.xlu2 %2787, %v191_v3   ;;  %v3330_v7 = vld [vmem:[#allocation6 + $0x168] sm:$0xff]  ;;  %v3340_v10 = vld [vmem:[%s4939_s0] sm:$0xff]  ;;  %v194_v12 = vld [vmem:[%s4940_s1 + $0x38] sm:$0xff] }
  0x20   :  { %444 = vmatpush.msra.mxu3 %v3330_v7  ;;  %vm555_vm0 = vcmp.gt.s32.totalorder %v3340_v10, 0  ;;  %v3344_v11 = vld [vmem:[#allocation6 + $0x120] sm:$0xff]  ;;  %v193_v13 = vld [vmem:[%s4940_s1 + $0x30] sm:$0xff]  ;;  %v3353_v14 = vld [vmem:[#allocation6 + $0x108] sm:$0xff]  ;;  %vm796_vm1 = vcmp.gt.s32.totalorder %v3340_v10, 2  ;;  %vm675_vm2 = vcmp.gt.s32.totalorder %v3340_v10, 1 }
  0x21   :  { %v184_v15 = vld [vmem:[#allocation4 + $0x168] sm:$0xff]  ;;  %v185_v16 = vld [vmem:[#allocation4 + $0x170] sm:$0xff]  ;;  %v556_v17 = vsel %vm555_vm0, 1, %v3218_v0  ;;  %v186_v18 = vld [vmem:[#allocation4 + $0x178] sm:$0xff]  ;;  %vm917_vm3 = vcmp.gt.s32.totalorder %v3340_v10, 3  ;;  %v797_v29 = vsel %vm796_vm1, 1, %v3218_v0 }
  0x22   :  { %445 = vmatpush.msra.mxu3 %v3332_v8  ;;  %245 = vmatpush.msra.mxu0 %v184_v15  ;;  %v3357_v19 = vld [vmem:[#allocation6 + $0xf0] sm:$0xff]  ;;  %v182_v21 = vld [vmem:[#allocation4 + $0x158] sm:$0xff]  ;;  %v183_v22 = vld [vmem:[#allocation4 + $0x160] sm:$0xff]  ;;  %v676_v30 = vsel %vm675_vm2, 1, %v3218_v0  ;;  %v918_v33 = vsel %vm917_vm3, 1, %v3218_v0  ;;  %vm1159_vm4 = vcmp.gt.s32.totalorder %v3340_v10, 5 }
  0x23   :  { %v181_v20 = vld [vmem:[#allocation4 + $0x150] sm:$0xff]  ;;  %286 = vmatpush.msra.mxu1 %v185_v16  ;;  %v3362_v23 = vld [vmem:[#allocation6 + $0xd8] sm:$0xff]  ;;  %327 = vmatpush.msra.mxu2 %v186_v18  ;;  %v179_v25 = vld [vmem:[#allocation4 + $0x140] sm:$0xff]  ;;  %vm1038_vm5 = vcmp.gt.s32.totalorder %v3340_v10, 4  ;;  %vm1280_vm6 = vcmp.gt.s32.totalorder %v3340_v10, 6  ;;  %v1160_v45 = vsel %vm1159_vm4, 1, %v3218_v0 }
  0x24   :  { %446 = vmatpush.msra.mxu3 %v3335_v9  ;;  %v178_v24 = vld [vmem:[#allocation4 + $0x138] sm:$0xff]  ;;  %246 = vmatpush.msra.mxu0 %v181_v20  ;;  %v180_v26 = vld [vmem:[#allocation4 + $0x148] sm:$0xff]  ;;  %v3366_v27 = vld [vmem:[#allocation6 + $0xc0] sm:$0xff]  ;;  %v1039_v46 = vsel %vm1038_vm5, 1, %v3218_v0  ;;  %v1281_v49 = vsel %vm1280_vm6, 1, %v3218_v0  ;;  %vm1401_vm7 = vcmp.gt.s32.totalorder %v3340_v10, 7 }
  0x25   :  { %287 = vmatpush.msra.mxu1 %v182_v21  ;;  %328 = vmatpush.msra.mxu2 %v183_v22  ;;  %v175_v28 = vld [vmem:[#allocation4 + $0x120] sm:$0xff]  ;;  %v3371_v31 = vld [vmem:[#allocation6 + $0xa8] sm:$0xff]  ;;  %v177_v34 = vld [vmem:[#allocation4 + $0x130] sm:$0xff]  ;;  %v1402_v61 = vsel %vm1401_vm7, 1, %v3218_v0 }
  0x26   :  { %207 = vperm.xlu1 %2786, %v190_v4   ;;  %447 = vmatpush.msra.mxu3 %v3344_v11  ;;  %v176_v32 = vld [vmem:[#allocation4 + $0x128] sm:$0xff]  ;;  %v3375_v35 = vld [vmem:[#allocation6 + $0x90] sm:$0xff]  ;;  %v174_v38 = vld [vmem:[#allocation4 + $0x118] sm:$0xff] }
  0x27   :  { %201 = vperm.xlu0 %2785, %v188_v5   ;;  %213 = vperm.xlu2 %2787, %v192_v6   ;;  %v172_v36 = vld [vmem:[#allocation4 + $0x108] sm:$0xff]  ;;  %v173_v37 = vld [vmem:[#allocation4 + $0x110] sm:$0xff]  ;;  %v3380_v39 = vld [vmem:[#allocation6 + $0x78] sm:$0xff]  ;;  %v4953_v5 = vmov 0.0  }
  0x28   :  { %448 = vmatpush.msra.mxu3 %v3353_v14  ;;  %247 = vmatpush.msra.mxu0 %v178_v24  ;;  %v169_v40 = vld [vmem:[#allocation4 + $0xf0] sm:$0xff]  ;;  %v170_v41 = vld [vmem:[#allocation4 + $0xf8] sm:$0xff]  ;;  %v171_v42 = vld [vmem:[#allocation4 + $0x100] sm:$0xff] }
  0x29   :  { %288 = vmatpush.msra.mxu1 %v179_v25  ;;  %329 = vmatpush.msra.mxu2 %v180_v26  ;;  %v3384_v43 = vld [vmem:[#allocation6 + $0x60] sm:$0xff]  ;;  %v166_v44 = vld [vmem:[#allocation4 + $0xd8] sm:$0xff]  ;;  %v3389_v47 = vld [vmem:[#allocation6 + $0x48] sm:$0xff] }
  0x2a   :  { %449 = vmatpush.msra.mxu3 %v3357_v19  ;;  %248 = vmatpush.msra.mxu0 %v175_v28  ;;  %v167_v48 = vld [vmem:[#allocation4 + $0xe0] sm:$0xff]  ;;  %v168_v50 = vld [vmem:[#allocation4 + $0xe8] sm:$0xff]  ;;  %v3393_v51 = vld [vmem:[#allocation6 + $0x30] sm:$0xff] }
  0x2b   :  { %289 = vmatpush.msra.mxu1 %v176_v32  ;;  %330 = vmatpush.msra.mxu2 %v177_v34  ;;  %v163_v52 = vld [vmem:[#allocation4 + $0xc0] sm:$0xff]  ;;  %v164_v53 = vld [vmem:[#allocation4 + $0xc8] sm:$0xff]  ;;  %v165_v54 = vld [vmem:[#allocation4 + $0xd0] sm:$0xff] }
  0x2c   :  { %450 = vmatpush.msra.mxu3 %v3362_v23  ;;  %249 = vmatpush.msra.mxu0 %v172_v36  ;;  %v3397_v55 = vld [vmem:[#allocation6 + $0x18] sm:$0xff]  ;;  %v160_v56 = vld [vmem:[#allocation4 + $0xa8] sm:$0xff]  ;;  %v161_v57 = vld [vmem:[#allocation4 + $0xb0] sm:$0xff] }
  0x2d   :  { %290 = vmatpush.msra.mxu1 %v173_v37  ;;  %331 = vmatpush.msra.mxu2 %v174_v38  ;;  %4990 = vst [vmem:[#allocation18_spill] sm:$0xff] %v3397_v55  ;;  %v162_v58 = vld [vmem:[#allocation4 + $0xb8] sm:$0xff]  ;;  %v3400_v59 = vld [vmem:[#allocation6] sm:$0xff]  ;;  %v157_v60 = vld [vmem:[#allocation4 + $0x90] sm:$0xff] }
  0x2e   :  { %219 = vperm.xlu1 %2786, %v194_v12   ;;  %451 = vmatpush.msra.mxu3 %v3366_v27  ;;  %4991 = vst [vmem:[#allocation19_spill] sm:$0xff] %v3400_v59  ;;  %v3404_v62 = vld [vmem:[#allocation6 + $0x170] sm:$0xff]  ;;  %v158_v63 = vld [vmem:[#allocation4 + $0x98] sm:$0xff]  ;;  %v159_v2 = vld [vmem:[#allocation4 + $0xa0] sm:$0xff] }
  0x2f   :  { %216 = vperm.xlu0 %2785, %v193_v13   ;;  %558 = vperm.xlu2 %2787, %v556_v17   ;;  %v3407_v1 = vld [vmem:[#allocation6 + $0x158] sm:$0xff]  ;;  %v155_v4 = vld [vmem:[#allocation4 + $0x80] sm:$0xff]  ;;  %v156_v6 = vld [vmem:[#allocation4 + $0x88] sm:$0xff] }
  0x30   :  { %452 = vmatpush.msra.mxu3 %v3371_v31  ;;  %250 = vmatpush.msra.mxu0 %v169_v40  ;;  %v154_v3 = vld [vmem:[#allocation4 + $0x78] sm:$0xff]  ;;  %v3410_v0 = vld [vmem:[#allocation6 + $0x140] sm:$0xff]  ;;  %v152_v12 = vld [vmem:[#allocation4 + $0x68] sm:$0xff] }
  0x31   :  { %291 = vmatpush.msra.mxu1 %v170_v41  ;;  %332 = vmatpush.msra.mxu2 %v171_v42  ;;  %v151_v10 = vld [vmem:[#allocation4 + $0x60] sm:$0xff]  ;;  %v3414_v13 = vld [vmem:[#allocation6 + $0x128] sm:$0xff]  ;;  %v153_v15 = vld [vmem:[#allocation4 + $0x70] sm:$0xff] }
  0x32   :  { %453 = vmatpush.msra.mxu3 %v3375_v35  ;;  %251 = vmatpush.msra.mxu0 %v166_v44  ;;  %v148_v16 = vld [vmem:[#allocation4 + $0x48] sm:$0xff]  ;;  %v149_v17 = vld [vmem:[#allocation4 + $0x50] sm:$0xff]  ;;  %v150_v20 = vld [vmem:[#allocation4 + $0x58] sm:$0xff] }
  0x33   :  { %292 = vmatpush.msra.mxu1 %v167_v48  ;;  %333 = vmatpush.msra.mxu2 %v168_v50  ;;  %v3417_v18 = vld [vmem:[#allocation6 + $0x110] sm:$0xff]  ;;  %v146_v22 = vld [vmem:[#allocation4 + $0x38] sm:$0xff]  ;;  %v147_v25 = vld [vmem:[#allocation4 + $0x40] sm:$0xff] }
  0x34   :  { %454 = vmatpush.msra.mxu3 %v3380_v39  ;;  %252 = vmatpush.msra.mxu0 %v163_v52  ;;  %v145_v21 = vld [vmem:[#allocation4 + $0x30] sm:$0xff]  ;;  %v3420_v24 = vld [vmem:[#allocation6 + $0xf8] sm:$0xff]  ;;  %v143_v28 = vld [vmem:[#allocation4 + $0x20] sm:$0xff] }
  0x35   :  { %293 = vmatpush.msra.mxu1 %v164_v53  ;;  %334 = vmatpush.msra.mxu2 %v165_v54  ;;  %v142_v26 = vld [vmem:[#allocation4 + $0x18] sm:$0xff]  ;;  %v3426_v32 = vld [vmem:[#allocation6 + $0xc8] sm:$0xff]  ;;  %v3435_v36 = vld [vmem:[#allocation6 + $0x80] sm:$0xff] }
  0x36   :  { %799 = vperm.xlu1 %2786, %v797_v29   ;;  %455 = vmatpush.msra.mxu3 %v3384_v43  ;;  %v3423_v29 = vld [vmem:[#allocation6 + $0xe0] sm:$0xff]  ;;  %v3432_v34 = vld [vmem:[#allocation6 + $0x98] sm:$0xff]  ;;  %v3438_v37 = vld [vmem:[#allocation6 + $0x68] sm:$0xff] }
  0x37   :  { %678 = vperm.xlu0 %2785, %v676_v30   ;;  %920 = vperm.xlu2 %2787, %v918_v33   ;;  %v144_v30 = vld [vmem:[#allocation4 + $0x28] sm:$0xff]  ;;  %v3429_v33 = vld [vmem:[#allocation6 + $0xb0] sm:$0xff]  ;;  %v3444_v40 = vld [vmem:[#allocation6 + $0x38] sm:$0xff] }
  0x38   :  { %456 = vmatpush.msra.mxu3 %v3389_v47  ;;  %253 = vmatpush.msra.mxu0 %v160_v56  ;;  %v3441_v38 = vld [vmem:[#allocation6 + $0x50] sm:$0xff]  ;;  %v3447_v41 = vld [vmem:[#allocation6 + $0x20] sm:$0xff]  ;;  %v3450_v42 = vld [vmem:[#allocation6 + $0x8] sm:$0xff]  ;;  %v195_v56 = vlaneseq }
  0x39   :  { %294 = vmatpush.msra.mxu1 %v161_v57  ;;  %335 = vmatpush.msra.mxu2 %v162_v58  ;;  %4992 = vst [vmem:[#allocation20_spill] sm:$0xff] %v3447_v41  ;;  %v139_v44 = vld [vmem:[#allocation4] sm:$0xff]  ;;  %v3456_v48 = vld [vmem:[#allocation6 + $0x178] sm:$0xff]  ;;  %v3472_v50 = vld [vmem:[#allocation6 + $0x148] sm:$0xff] }
  0x3a   :  { %457 = vmatpush.msra.mxu3 %v3393_v51  ;;  %254 = vmatpush.msra.mxu0 %v157_v60  ;;  %4993 = vst [vmem:[#allocation21_spill] sm:$0xff] %v3450_v42  ;;  %v3474_v52 = vld [vmem:[#allocation6 + $0x130] sm:$0xff]  ;;  %v3488_v53 = vld [vmem:[#allocation6 + $0x118] sm:$0xff]  ;;  %v3490_v54 = vld [vmem:[#allocation6 + $0x100] sm:$0xff]  ;;  %v3511_v60 = vand.u32 127, %v195_v56 }
  0x3b   :  { %295 = vmatpush.msra.mxu1 %v158_v63  ;;  %336 = vmatpush.msra.mxu2 %v159_v2  ;;  %v3504_v57 = vld [vmem:[#allocation6 + $0xe8] sm:$0xff]  ;;  %v3506_v58 = vld [vmem:[#allocation6 + $0xd0] sm:$0xff]  ;;  %v3220_v63 = vmov 1.0   ;;  %v3525_v2 = vld [vmem:[#allocation6 + $0xb8] sm:$0xff] }
  0x3c   :  { %458 = vmatpush.msra.mxu3 %v3397_v55  ;;  %255 = vmatpush.msra.mxu0 %v154_v3  ;;  %v3527_v3 = vld [vmem:[#allocation6 + $0xa0] sm:$0xff] }
  0x3d   :  { %296 = vmatpush.msra.mxu1 %v155_v4  ;;  %337 = vmatpush.msra.mxu2 %v156_v6  ;;  %v3544_v6 = vld [vmem:[#allocation6 + $0x88] sm:$0xff] }
  0x3e   :  { %1162 = vperm.xlu1 %2786, %v1160_v45   ;;  %459 = vmatpush.msra.mxu3 %v3400_v59  ;;  %v140_v45 = vld [vmem:[#allocation4 + $0x8] sm:$0xff] }
  0x3f   :  { %1041 = vperm.xlu0 %2785, %v1039_v46   ;;  %1283 = vperm.xlu2 %2787, %v1281_v49   ;;  %v141_v46 = vld [vmem:[#allocation4 + $0x10] sm:$0xff]  ;;  %v3458_v49 = vld [vmem:[#allocation6 + $0x160] sm:$0xff] }
  0x40   :  { %464 = vmatpush.msrb.mxu3 %v3404_v62  ;;  %256 = vmatpush.msra.mxu0 %v151_v10  ;;  %v3546_v10 = vld [vmem:[#allocation6 + $0x70] sm:$0xff] }
  0x41   :  { %460 = vmatmul.f32.vlgmr.msra.gmra.mxu3 %v4953_v5  ;;  %297 = vmatpush.msra.mxu1 %v152_v12 }
  0x42   :  { %465 = vmatpush.msrb.mxu3 %v3407_v1  ;;  %338 = vmatpush.msra.mxu2 %v153_v15  ;;  %v3563_v15 = vld [vmem:[#allocation6 + $0x58] sm:$0xff] }
  0x43   :  { %257 = vmatpush.msra.mxu0 %v148_v16  ;;  %298 = vmatpush.msra.mxu1 %v149_v17  ;;  %v3565_v16 = vld [vmem:[#allocation6 + $0x40] sm:$0xff] }
  0x44   :  { %466 = vmatpush.msrb.mxu3 %v3410_v0  ;;  %339 = vmatpush.msra.mxu2 %v150_v20  ;;  %v3582_v20 = vld [vmem:[#allocation6 + $0x28] sm:$0xff] }
  0x45   :  { %258 = vmatpush.msra.mxu0 %v145_v21  ;;  %299 = vmatpush.msra.mxu1 %v146_v22  ;;  %4994 = vst [vmem:[#allocation22_spill] sm:$0xff] %v3582_v20  ;;  %v3584_v21 = vld [vmem:[#allocation6 + $0x10] sm:$0xff] }
  0x46   :  { %467 = vmatpush.msrb.mxu3 %v3414_v13  ;;  %340 = vmatpush.msra.mxu2 %v147_v25  ;;  %4995 = vst [vmem:[#allocation23_spill] sm:$0xff] %v3584_v21 }
  0x47   :  { %1404 = vperm.xlu0 %2785, %v1402_v61   ;;  %259 = vmatpush.msra.mxu0 %v142_v26 }
  0x48   :  { %468 = vmatpush.msrb.mxu3 %v3417_v18  ;;  %300 = vmatpush.msra.mxu1 %v143_v28 }
  0x49   :  { %341 = vmatpush.msra.mxu2 %v144_v30  ;;  %260 = vmatpush.msra.mxu0 %v139_v44 }
  0x4a   :  { %469 = vmatpush.msrb.mxu3 %v3420_v24  ;;  %301 = vmatpush.msra.mxu1 %v140_v45 }
  0x4b   :  { %342 = vmatpush.msra.mxu2 %v141_v46  ;;  %484 = vmatpush.msrb.mxu0 %v3456_v48 }
  0x4c   :  { %470 = vmatpush.msrb.mxu3 %v3423_v29  ;;  %567 = vmatpush.msrb.mxu1 %v3330_v7 }
  0x4d   :  { %587 = vmatpush.msrb.mxu2 %v3404_v62  ;;  %485 = vmatpush.msrb.mxu0 %v3458_v49 }
  0x4e   :  { %471 = vmatpush.msrb.mxu3 %v3426_v32  ;;  %568 = vmatpush.msrb.mxu1 %v3332_v8 }
  0x4f   :  { %588 = vmatpush.msrb.mxu2 %v3407_v1  ;;  %486 = vmatpush.msrb.mxu0 %v3472_v50 }
  0x50   :  { %472 = vmatpush.msrb.mxu3 %v3429_v33  ;;  %569 = vmatpush.msrb.mxu1 %v3335_v9 }
  0x51   :  { %589 = vmatpush.msrb.mxu2 %v3410_v0  ;;  %487 = vmatpush.msrb.mxu0 %v3474_v52 }
  0x52   :  { %473 = vmatpush.msrb.mxu3 %v3432_v34  ;;  %570 = vmatpush.msrb.mxu1 %v3344_v11 }
  0x53   :  { %590 = vmatpush.msrb.mxu2 %v3414_v13  ;;  %488 = vmatpush.msrb.mxu0 %v3488_v53 }
  0x54   :  { %474 = vmatpush.msrb.mxu3 %v3435_v36  ;;  %571 = vmatpush.msrb.mxu1 %v3353_v14 }
  0x55   :  { %591 = vmatpush.msrb.mxu2 %v3417_v18  ;;  %489 = vmatpush.msrb.mxu0 %v3490_v54 }
  0x56   :  { %475 = vmatpush.msrb.mxu3 %v3438_v37  ;;  %572 = vmatpush.msrb.mxu1 %v3357_v19 }
  0x57   :  { %592 = vmatpush.msrb.mxu2 %v3420_v24  ;;  %490 = vmatpush.msrb.mxu0 %v3504_v57 }
  0x58   :  { %476 = vmatpush.msrb.mxu3 %v3441_v38  ;;  %573 = vmatpush.msrb.mxu1 %v3362_v23 }
  0x59   :  { %593 = vmatpush.msrb.mxu2 %v3423_v29  ;;  %491 = vmatpush.msrb.mxu0 %v3506_v58 }
  0x5a   :  { %477 = vmatpush.msrb.mxu3 %v3444_v40  ;;  %574 = vmatpush.msrb.mxu1 %v3366_v27 }
  0x5b   :  { %594 = vmatpush.msrb.mxu2 %v3426_v32  ;;  %492 = vmatpush.msrb.mxu0 %v3525_v2 }
  0x5c   :  { %478 = vmatpush.msrb.mxu3 %v3447_v41  ;;  %575 = vmatpush.msrb.mxu1 %v3371_v31 }
  0x5d   :  { %595 = vmatpush.msrb.mxu2 %v3429_v33  ;;  %493 = vmatpush.msrb.mxu0 %v3527_v3 }
  0x5e   :  { %479 = vmatpush.msrb.mxu3 %v3450_v42  ;;  %576 = vmatpush.msrb.mxu1 %v3375_v35 }
  0x5f   :  { %480 = vmatmul.f32.vlgmr.msrb.gmra.mxu3 %v4953_v5  ;;  %596 = vmatpush.msrb.mxu2 %v3432_v34 }
  0x60   :  { %607 = vmatpush.msra.mxu3 %v3456_v48  ;;  %577 = vmatpush.msrb.mxu1 %v3380_v39 }
  0x61   :  { %597 = vmatpush.msrb.mxu2 %v3435_v36  ;;  %494 = vmatpush.msrb.mxu0 %v3544_v6 }
  0x62   :  { %608 = vmatpush.msra.mxu3 %v3458_v49  ;;  %578 = vmatpush.msrb.mxu1 %v3384_v43 }
  0x63   :  { %598 = vmatpush.msrb.mxu2 %v3438_v37  ;;  %495 = vmatpush.msrb.mxu0 %v3546_v10 }
  0x64   :  { %609 = vmatpush.msra.mxu3 %v3472_v50  ;;  %579 = vmatpush.msrb.mxu1 %v3389_v47 }
  0x65   :  { %599 = vmatpush.msrb.mxu2 %v3441_v38  ;;  %496 = vmatpush.msrb.mxu0 %v3563_v15 }
  0x66   :  { %610 = vmatpush.msra.mxu3 %v3474_v52  ;;  %580 = vmatpush.msrb.mxu1 %v3393_v51 }
  0x67   :  { %600 = vmatpush.msrb.mxu2 %v3444_v40  ;;  %497 = vmatpush.msrb.mxu0 %v3565_v16 }
  0x68   :  { %611 = vmatpush.msra.mxu3 %v3488_v53  ;;  %581 = vmatpush.msrb.mxu1 %v3397_v55 }
  0x69   :  { %601 = vmatpush.msrb.mxu2 %v3447_v41  ;;  %498 = vmatpush.msrb.mxu0 %v3582_v20 }
  0x6a   :  { %612 = vmatpush.msra.mxu3 %v3490_v54  ;;  %582 = vmatpush.msrb.mxu1 %v3400_v59 }
  0x6b   :  { %602 = vmatpush.msrb.mxu2 %v3450_v42  ;;  %499 = vmatpush.msrb.mxu0 %v3584_v21 }
  0x6c   :  { %613 = vmatpush.msra.mxu3 %v3504_v57 }
  0x6e   :  { %614 = vmatpush.msra.mxu3 %v3506_v58 }
  0x70   :  { %615 = vmatpush.msra.mxu3 %v3525_v2 }
  0x72   :  { %616 = vmatpush.msra.mxu3 %v3527_v3 }
  0x74   :  { %617 = vmatpush.msra.mxu3 %v3544_v6 }
  0x76   :  { %618 = vmatpush.msra.mxu3 %v3546_v10 }
  0x78   :  { %619 = vmatpush.msra.mxu3 %v3563_v15 }
  0x79   :  { %v211_v22 = vpop.permute.xlu2 %210 }
  0x7a   :  { %620 = vmatpush.msra.mxu3 %v3565_v16  ;;  %vm225_vm12 = vcmp.eq.s32.totalorder %v3511_v60, %v211_v22 }
  0x7c   :  { %621 = vmatpush.msra.mxu3 %v3582_v20 }
  0x7e   :  { %622 = vmatpush.msra.mxu3 %v3584_v21 }
  0x80   :  { %809 = vmatpush.msrb.mxu3 %v3330_v7 }
  0x81   :  { %v214_v25 = vpop.permute.xlu2 %213 }
  0x82   :  { %810 = vmatpush.msrb.mxu3 %v3332_v8  ;;  %vm226_vm13 = vcmp.eq.s32.totalorder %v3511_v60, %v214_v25 }
  0x84   :  { %811 = vmatpush.msrb.mxu3 %v3335_v9 }
  0x86   :  { %812 = vmatpush.msrb.mxu3 %v3344_v11 }
  0x88   :  { %813 = vmatpush.msrb.mxu3 %v3353_v14 }
  0x8a   :  { %814 = vmatpush.msrb.mxu3 %v3357_v19 }
  0x8c   :  { %815 = vmatpush.msrb.mxu3 %v3362_v23 }
  0x8e   :  { %816 = vmatpush.msrb.mxu3 %v3366_v27 }
  0x90   :  { %v205_v12 = vpop.permute.xlu1 %204  ;;  %817 = vmatpush.msrb.mxu3 %v3371_v31 }
  0x91   :  { %v199_v61 = vpop.permute.xlu0 %198  ;;  %vm223_vm10 = vcmp.eq.s32.totalorder %v3511_v60, %v205_v12 }
  0x92   :  { %vm221_vm8 = vcmp.eq.s32.totalorder %v3511_v60, %v199_v61  ;;  %818 = vmatpush.msrb.mxu3 %v3375_v35 }
  0x93   :  { %2705 = vmatmul.msk.f32.vlgmr.msra.gmra.mxu0 %vm221_vm8, %v3220_v63  ;;  %2713 = vmatmul.msk.f32.vlgmr.msra.gmra.mxu1 %vm221_vm8, %v3220_v63 }
  0x94   :  { %2721 = vmatmul.msk.f32.vlgmr.msra.gmra.mxu2 %vm221_vm8, %v3220_v63  ;;  %708 = vmatpush.msra.mxu1 %v3404_v62 }
  0x95   :  { %728 = vmatpush.msra.mxu2 %v3456_v48  ;;  %688 = vmatpush.msra.mxu0 %v3330_v7 }
  0x96   :  { %709 = vmatpush.msra.mxu1 %v3407_v1  ;;  %819 = vmatpush.msrb.mxu3 %v3380_v39 }
  0x97   :  { %729 = vmatpush.msra.mxu2 %v3458_v49  ;;  %689 = vmatpush.msra.mxu0 %v3332_v8 }
  0x98   :  { %710 = vmatpush.msra.mxu1 %v3410_v0  ;;  %v208_v17 = vpop.permute.xlu1 %207  ;;  %820 = vmatpush.msrb.mxu3 %v3384_v43 }
  0x99   :  { %v202_v4 = vpop.permute.xlu0 %201  ;;  %730 = vmatpush.msra.mxu2 %v3472_v50  ;;  %vm224_vm11 = vcmp.eq.s32.totalorder %v3511_v60, %v208_v17  ;;  %690 = vmatpush.msra.mxu0 %v3335_v9 }
  0x9a   :  { %vm222_vm9 = vcmp.eq.s32.totalorder %v3511_v60, %v202_v4  ;;  %711 = vmatpush.msra.mxu1 %v3414_v13  ;;  %821 = vmatpush.msrb.mxu3 %v3389_v47 }
  0x9b   :  { %2706 = vmatmul.msk.f32.gmra.mxu0 %vm222_vm9, %v3220_v63  ;;  %2714 = vmatmul.msk.f32.gmra.mxu1 %vm222_vm9, %v3220_v63 }
  0x9c   :  { %2722 = vmatmul.msk.f32.gmra.mxu2 %vm222_vm9, %v3220_v63  ;;  %712 = vmatpush.msra.mxu1 %v3417_v18 }
  0x9d   :  { %731 = vmatpush.msra.mxu2 %v3474_v52  ;;  %691 = vmatpush.msra.mxu0 %v3344_v11 }
  0x9e   :  { %713 = vmatpush.msra.mxu1 %v3420_v24  ;;  %822 = vmatpush.msrb.mxu3 %v3393_v51 }
  0x9f   :  { %732 = vmatpush.msra.mxu2 %v3488_v53  ;;  %692 = vmatpush.msra.mxu0 %v3353_v14 }
  0xa0   :  { %714 = vmatpush.msra.mxu1 %v3423_v29  ;;  %v220_v28 = vpop.permute.xlu1 %219  ;;  %823 = vmatpush.msrb.mxu3 %v3397_v55 }
  0xa1   :  { %733 = vmatpush.msra.mxu2 %v3490_v54  ;;  %693 = vmatpush.msra.mxu0 %v3357_v19  ;;  %v217_v26 = vpop.permute.xlu0 %216  ;;  %vm228_vm15 = vcmp.eq.s32.totalorder %v3511_v60, %v220_v28 }
  0xa2   :  { %715 = vmatpush.msra.mxu1 %v3426_v32  ;;  %vm227_vm14 = vcmp.eq.s32.totalorder %v3511_v60, %v217_v26  ;;  %824 = vmatpush.msrb.mxu3 %v3400_v59 }
  0xa3   :  { %2707 = vmatmul.msk.f32.gmra.mxu0 %vm223_vm10, %v3220_v63  ;;  %2715 = vmatmul.msk.f32.gmra.mxu1 %vm223_vm10, %v3220_v63 }
  0xa4   :  { %2723 = vmatmul.msk.f32.gmra.mxu2 %vm223_vm10, %v3220_v63  ;;  %716 = vmatpush.msra.mxu1 %v3429_v33 }
  0xa5   :  { %734 = vmatpush.msra.mxu2 %v3504_v57  ;;  %694 = vmatpush.msra.mxu0 %v3362_v23 }
  0xa6   :  { %717 = vmatpush.msra.mxu1 %v3432_v34 }
  0xa7   :  { %735 = vmatpush.msra.mxu2 %v3506_v58  ;;  %695 = vmatpush.msra.mxu0 %v3366_v27 }
  0xa8   :  { %718 = vmatpush.msra.mxu1 %v3435_v36 }
  0xa9   :  { %736 = vmatpush.msra.mxu2 %v3525_v2  ;;  %696 = vmatpush.msra.mxu0 %v3371_v31 }
  0xaa   :  { %719 = vmatpush.msra.mxu1 %v3438_v37 }
  0xab   :  { %2708 = vmatmul.msk.f32.gmra.mxu0 %vm224_vm11, %v3220_v63  ;;  %2716 = vmatmul.msk.f32.gmra.mxu1 %vm224_vm11, %v3220_v63 }
  0xac   :  { %2724 = vmatmul.msk.f32.gmra.mxu2 %vm224_vm11, %v3220_v63  ;;  %720 = vmatpush.msra.mxu1 %v3441_v38 }
  0xad   :  { %737 = vmatpush.msra.mxu2 %v3527_v3  ;;  %697 = vmatpush.msra.mxu0 %v3375_v35 }
  0xae   :  { %721 = vmatpush.msra.mxu1 %v3444_v40 }
  0xaf   :  { %738 = vmatpush.msra.mxu2 %v3544_v6  ;;  %698 = vmatpush.msra.mxu0 %v3380_v39 }
  0xb0   :  { %722 = vmatpush.msra.mxu1 %v3447_v41 }
  0xb1   :  { %739 = vmatpush.msra.mxu2 %v3546_v10  ;;  %699 = vmatpush.msra.mxu0 %v3384_v43 }
  0xb2   :  { %723 = vmatpush.msra.mxu1 %v3450_v42 }
  0xb3   :  { %2709 = vmatmul.msk.f32.gmra.mxu0 %vm225_vm12, %v3220_v63  ;;  %2717 = vmatmul.msk.f32.gmra.mxu1 %vm225_vm12, %v3220_v63 }
  0xb4   :  { %2725 = vmatmul.msk.f32.gmra.mxu2 %vm225_vm12, %v3220_v63  ;;  %700 = vmatpush.msra.mxu0 %v3389_v47 }
  0xb5   :  { %740 = vmatpush.msra.mxu2 %v3563_v15 }
  0xb6   :  { %701 = vmatpush.msra.mxu0 %v3393_v51 }
  0xb7   :  { %741 = vmatpush.msra.mxu2 %v3565_v16 }
  0xb8   :  { %702 = vmatpush.msra.mxu0 %v3397_v55 }
  0xb9   :  { %742 = vmatpush.msra.mxu2 %v3582_v20 }
  0xba   :  { %703 = vmatpush.msra.mxu0 %v3400_v59 }
  0xbb   :  { %2710 = vmatmul.msk.f32.gmra.mxu0 %vm226_vm13, %v3220_v63  ;;  %2718 = vmatmul.msk.f32.gmra.mxu1 %vm226_vm13, %v3220_v63 }
  0xbc   :  { %2726 = vmatmul.msk.f32.gmra.mxu2 %vm226_vm13, %v3220_v63 }
  0xbd   :  { %743 = vmatpush.msra.mxu2 %v3584_v21 }
  0xc3   :  { %2711 = vmatmul.msk.f32.gmra.mxu0 %vm227_vm14, %v3220_v63  ;;  %2719 = vmatmul.msk.f32.gmra.mxu1 %vm227_vm14, %v3220_v63 }
  0xc4   :  { %2727 = vmatmul.msk.f32.gmra.mxu2 %vm227_vm14, %v3220_v63  ;;  %v461_v45 = vpop.f32.mrf.mxu3 }
  0xcb   :  { %2712 = vmatmul.msk.f32.gmra.mxu0 %vm228_vm15, %v3220_v63  ;;  %2720 = vmatmul.msk.f32.gmra.mxu1 %vm228_vm15, %v3220_v63 }
  0xcc   :  { %2728 = vmatmul.msk.f32.gmra.mxu2 %vm228_vm15, %v3220_v63 }
  0xd3   :  { %500 = vmatmul.f32.vlgmr.msrb.gmra.mxu0 %v4953_v5 }
  0xd4   :  { %829 = vmatpush.msrb.mxu0 %v3404_v62 }
  0xd6   :  { %830 = vmatpush.msrb.mxu0 %v3407_v1 }
  0xd8   :  { %831 = vmatpush.msrb.mxu0 %v3410_v0 }
  0xda   :  { %832 = vmatpush.msrb.mxu0 %v3414_v13 }
  0xdc   :  { %833 = vmatpush.msrb.mxu0 %v3417_v18 }
  0xde   :  { %834 = vmatpush.msrb.mxu0 %v3420_v24 }
  0xe0   :  { %835 = vmatpush.msrb.mxu0 %v3423_v29 }
  0xe2   :  { %836 = vmatpush.msrb.mxu0 %v3426_v32  ;;  %v481_v63 = vpop.f32.mrf.mxu3 }
  0xe4   :  { %837 = vmatpush.msrb.mxu0 %v3429_v33 }
  0xe6   :  { %838 = vmatpush.msrb.mxu0 %v3432_v34 }
  0xe8   :  { %839 = vmatpush.msrb.mxu0 %v3435_v36 }
  0xea   :  { %840 = vmatpush.msrb.mxu0 %v3438_v37 }
  0xec   :  { %841 = vmatpush.msrb.mxu0 %v3441_v38 }
  0xee   :  { %842 = vmatpush.msrb.mxu0 %v3444_v40 }
  0xf0   :  { %843 = vmatpush.msrb.mxu0 %v3447_v41 }
  0xf2   :  { %844 = vmatpush.msrb.mxu0 %v3450_v42 }
 0x110   :  { %v262_v30 = vpop.f32.mrf.mxu0  ;;  %v303_v61 = vpop.f32.mrf.mxu1 }
 0x111   :  { %v504_v56 = vadd.f32 %v461_v45, %v262_v30  ;;  %v524_v4 = vadd.f32 %v481_v63, %v303_v61 }
 0x113   :  { %v2729_v60 = vmul.f32 -1.442695, %v504_v56  ;;  %v2730_v17 = vmul.f32 -1.442695, %v524_v4 }
 0x115   :  { %2790 = vpow2.f32 %v2729_v60 }
 0x116   :  { %2792 = vpow2.f32 %v2730_v17 }
 0x117   :  { %v344_v21 = vpop.f32.mrf.mxu2 }
 0x118   :  { %v3666_v44 = vpop.f32.mrf.mxu0 }
 0x119   :  { %4996 = vst [vmem:[#allocation24_spill] sm:$0xff] %v3666_v44 }
 0x11b   :  { %v2791_v22 = vpop.eup %2790 }
 0x11c   :  { %v508_v26 = vadd.f32 1.0, %v2791_v22  ;;  %v2793_v28 = vpop.eup %2792 }
 0x11d   :  { %v528_v44 = vadd.f32 1.0, %v2793_v28  ;;  %v3683_v28 = vld [vmem:[%s4943_s4] ss:$0 sm:$0xff] }
 0x11e   :  { %2794 = vrcp.f32 %v508_v26  ;;  %v520_v22 = vand.u32 2147483648, %v508_v26  ;;  %vm514_vm1 = vweird.f32 %v508_v26 }
 0x11f   :  { %2796 = vrcp.f32 %v528_v44  ;;  %vm534_vm5 = vweird.f32 %v528_v44 }
 0x120   :  { %v3668_v46 = vpop.f32.mrf.mxu0 }
 0x121   :  { %4997 = vst [vmem:[#allocation25_spill] sm:$0xff] %v3668_v46 }
 0x124   :  { %v2795_v46 = vpop.eup %2794 }
 0x125   :  { %v510_v30 = vmul.f32 %v2795_v46, %v508_v26  ;;  %v2797_v56 = vpop.eup %2796  ;;  %vm515_vm0 = vweird.f32 %v2795_v46 }
 0x126   :  { %v530_v63 = vmul.f32 %v2797_v56, %v528_v44  ;;  %vm516_vm2 = vmor %vm514_vm1, %vm515_vm0  ;;  %vm535_vm4 = vweird.f32 %v2797_v56 }
 0x127   :  { %v511_v61 = vsub.f32 1.0, %v510_v30  ;;  %v521_v30 = vor.u32 1.1754944e-38, %v520_v22  ;;  %vm536_vm6 = vmor %vm534_vm5, %vm535_vm4 }
 0x128   :  { %v3670_v12 = vpop.f32.mrf.mxu0  ;;  %v531_v17 = vsub.f32 1.0, %v530_v63 }
 0x129   :  { %4998 = vst [vmem:[#allocation26_spill] sm:$0xff] %v3670_v12  ;;  %v512_v60 = vmul.f32 %v2795_v46, %v511_v61 }
 0x12b   :  { %v513_v12 = vadd.f32 %v2795_v46, %v512_v60  ;;  %v540_v60 = vand.u32 2147483648, %v528_v44 }
 0x12d   :  { %v541_v20 = vor.u32 1.1754944e-38, %v540_v60 }
 0x130   :  { %v3672_v25 = vpop.f32.mrf.mxu0 }
 0x131   :  { %4999 = vst [vmem:[#allocation27_spill] sm:$0xff] %v3672_v25  ;;  %v518_v25 = vand.u32 2147483647, %v508_v26  ;;  %v538_v26 = vand.u32 2147483647, %v528_v44 }
 0x133   :  { %vm519_vm3 = vcmp.eq.f32.partialorder %v518_v25, 8.507059e+37  ;;  %vm539_vm7 = vcmp.eq.f32.partialorder %v538_v26, 8.507059e+37 }
 0x138   :  { %v3674_v5 = vpop.f32.mrf.mxu0 }
 0x139   :  { %5000 = vst [vmem:[#allocation28_spill] sm:$0xff] %v3674_v5  ;;  %v532_v5 = vmul.f32 %v2797_v56, %v531_v17 }
 0x140   :  { %v3676_v45 = vpop.f32.mrf.mxu0 }
 0x141   :  { %5001 = vst [vmem:[#allocation29_spill] sm:$0xff] %v3676_v45  ;;  %v517_v45 = vsel %vm516_vm2, %v2795_v46, %v513_v12 }
 0x142   :  { %v522_v63 = vsel %vm519_vm3, %v521_v30, %v517_v45 }
 0x148   :  { %v3678_v4 = vpop.f32.mrf.mxu0 }
 0x149   :  { %5002 = vst [vmem:[#allocation30_spill] sm:$0xff] %v3678_v4  ;;  %v533_v4 = vadd.f32 %v2797_v56, %v532_v5 }
 0x14b   :  { %v537_v55 = vsel %vm536_vm6, %v2797_v56, %v533_v4  ;;  %v5015_v56 = vld [vmem:[#allocation24_spill] sm:$0xff] }
 0x14c   :  { %v542_v46 = vsel %vm539_vm7, %v541_v20, %v537_v55 }
 0x14d   :  { %v551_v12 = vsub.f32 1.0, %v542_v46  ;;  %v553_v22 = vmul.f32 0.0, %v542_v46 }
 0x150   :  { %v501_v42 = vpop.f32.mrf.mxu0 }
 0x151   :  { %v547_v61 = vadd.f32 %v3683_v28, %v501_v42  ;;  %v3686_v42 = vpop.permute.xlu2 %558 }
 0x152   :  { %vm560_vm8 = vcmp.eq.s32.totalorder %v3686_v42, 1  ;;  %v4591_v42 = vld [vmem:[#allocation9 + $0x150] sm:$0xff] }
 0x153   :  { %v548_v59 = vmul.f32 %v547_v61, %v522_v63 }
 0x155   :  { %v549_v41 = vadd.f32 %v548_v59, %v344_v21 }
 0x157   :  { %2798 = vtanh.f32 %v549_v41 }
 0x15d   :  { %v2799_v17 = vpop.eup %2798 }
 0x15e   :  { %v552_v25 = vmul.f32 %v2799_v17, %v551_v12 }
 0x160   :  { %v3688_v5 = vadd.f32 %v553_v22, %v552_v25 }
 0x162   :  { %2731 = vmatmul.msk.f32.vlgmr.msrb.gmra.mxu1 %vm560_vm8, %v3688_v5  ;;  %2732 = vmatmul.msk.f32.vlgmr.msrb.gmra.mxu2 %vm560_vm8, %v3688_v5 }
 0x163   :  { %2733 = vmatmul.msk.f32.vlgmr.msra.gmra.mxu3 %vm560_vm8, %v3688_v5  ;;  %849 = vmatpush.msrb.mxu1 %v3456_v48 }
 0x164   :  { %930 = vmatpush.msrb.mxu2 %v3330_v7  ;;  %950 = vmatpush.msra.mxu3 %v3404_v62  ;;  %v5003_v7 = vld [vmem:[#allocation22_spill] sm:$0xff] }
 0x165   :  { %850 = vmatpush.msrb.mxu1 %v3458_v49 }
 0x166   :  { %931 = vmatpush.msrb.mxu2 %v3332_v8  ;;  %951 = vmatpush.msra.mxu3 %v3407_v1  ;;  %v5004_v8 = vld [vmem:[#allocation18_spill] sm:$0xff] }
 0x167   :  { %851 = vmatpush.msrb.mxu1 %v3472_v50 }
 0x168   :  { %932 = vmatpush.msrb.mxu2 %v3335_v9  ;;  %952 = vmatpush.msra.mxu3 %v3410_v0  ;;  %v5005_v9 = vld [vmem:[#allocation20_spill] sm:$0xff] }
 0x169   :  { %852 = vmatpush.msrb.mxu1 %v3474_v52 }
 0x16a   :  { %933 = vmatpush.msrb.mxu2 %v3344_v11  ;;  %953 = vmatpush.msra.mxu3 %v3414_v13  ;;  %v5006_v11 = vld [vmem:[#allocation23_spill] sm:$0xff] }
 0x16b   :  { %853 = vmatpush.msrb.mxu1 %v3488_v53 }
 0x16c   :  { %934 = vmatpush.msrb.mxu2 %v3353_v14  ;;  %954 = vmatpush.msra.mxu3 %v3417_v18  ;;  %v5007_v14 = vld [vmem:[#allocation19_spill] sm:$0xff] }
 0x16d   :  { %854 = vmatpush.msrb.mxu1 %v3490_v54 }
 0x16e   :  { %935 = vmatpush.msrb.mxu2 %v3357_v19  ;;  %955 = vmatpush.msra.mxu3 %v3420_v24  ;;  %v5008_v19 = vld [vmem:[#allocation21_spill] sm:$0xff] }
 0x16f   :  { %855 = vmatpush.msrb.mxu1 %v3504_v57 }
 0x170   :  { %936 = vmatpush.msrb.mxu2 %v3362_v23  ;;  %956 = vmatpush.msra.mxu3 %v3423_v29  ;;  %v306_v23 = vpop.f32.mrf.mxu1 }
 0x171   :  { %856 = vmatpush.msrb.mxu1 %v3506_v58 }
 0x172   :  { %937 = vmatpush.msrb.mxu2 %v3366_v27  ;;  %957 = vmatpush.msra.mxu3 %v3426_v32  ;;  %v347_v27 = vpop.f32.mrf.mxu2 }
 0x173   :  { %857 = vmatpush.msrb.mxu1 %v3525_v2 }
 0x174   :  { %938 = vmatpush.msrb.mxu2 %v3371_v31  ;;  %958 = vmatpush.msra.mxu3 %v3429_v33 }
 0x175   :  { %858 = vmatpush.msrb.mxu1 %v3527_v3 }
 0x176   :  { %939 = vmatpush.msrb.mxu2 %v3375_v35  ;;  %959 = vmatpush.msra.mxu3 %v3432_v34 }
 0x177   :  { %859 = vmatpush.msrb.mxu1 %v3544_v6 }
 0x178   :  { %940 = vmatpush.msrb.mxu2 %v3380_v39  ;;  %960 = vmatpush.msra.mxu3 %v3435_v36  ;;  %v3748_v31 = vpop.f32.mrf.mxu1 }
 0x179   :  { %860 = vmatpush.msrb.mxu1 %v3546_v10 }
 0x17a   :  { %941 = vmatpush.msrb.mxu2 %v3384_v43  ;;  %961 = vmatpush.msra.mxu3 %v3438_v37  ;;  %v3750_v35 = vpop.f32.mrf.mxu2 }
 0x17b   :  { %861 = vmatpush.msrb.mxu1 %v3563_v15 }
 0x17c   :  { %942 = vmatpush.msrb.mxu2 %v3389_v47  ;;  %962 = vmatpush.msra.mxu3 %v3441_v38 }
 0x17d   :  { %862 = vmatpush.msrb.mxu1 %v3565_v16 }
 0x17e   :  { %943 = vmatpush.msrb.mxu2 %v3393_v51  ;;  %963 = vmatpush.msra.mxu3 %v3444_v40 }
 0x17f   :  { %863 = vmatpush.msrb.mxu1 %v5003_v7 }
 0x180   :  { %944 = vmatpush.msrb.mxu2 %v5004_v8  ;;  %964 = vmatpush.msra.mxu3 %v5005_v9  ;;  %v3752_v39 = vpop.f32.mrf.mxu1 }
 0x181   :  { %864 = vmatpush.msrb.mxu1 %v5006_v11 }
 0x182   :  { %945 = vmatpush.msrb.mxu2 %v5007_v14  ;;  %965 = vmatpush.msra.mxu3 %v5008_v19  ;;  %v3754_v43 = vpop.f32.mrf.mxu2 }
 0x188   :  { %v3756_v47 = vpop.f32.mrf.mxu1 }
 0x18a   :  { %v3758_v51 = vpop.f32.mrf.mxu2 }
 0x190   :  { %v3760_v55 = vpop.f32.mrf.mxu1 }
 0x191   :  { %5009 = vst [vmem:[#allocation22_spill] sm:$0xff] %v3760_v55 }
 0x192   :  { %v3762_v59 = vpop.f32.mrf.mxu2 }
 0x193   :  { %5010 = vst [vmem:[#allocation18_spill] sm:$0xff] %v3762_v59 }
 0x198   :  { %v3764_v41 = vpop.f32.mrf.mxu1 }
 0x199   :  { %5011 = vst [vmem:[#allocation20_spill] sm:$0xff] %v3764_v41 }
 0x19a   :  { %v3766_v20 = vpop.f32.mrf.mxu2 }
 0x19b   :  { %5012 = vst [vmem:[#allocation23_spill] sm:$0xff] %v3766_v20 }
 0x1a0   :  { %v3768_v21 = vpop.f32.mrf.mxu1 }
 0x1a1   :  { %5013 = vst [vmem:[#allocation19_spill] sm:$0xff] %v3768_v21 }
 0x1a2   :  { %v3770_v44 = vpop.f32.mrf.mxu2 }
 0x1a3   :  { %5014 = vst [vmem:[#allocation21_spill] sm:$0xff] %v3770_v44 }
 0x1df   :  { %v584_v45 = vpop.f32.mrf.mxu1 }
 0x1e0   :  { %v627_v4 = vadd.f32 %v584_v45, %v5015_v56 }
 0x1e2   :  { %v2734_v30 = vmul.f32 -1.442695, %v627_v4 }
 0x1e4   :  { %2800 = vpow2.f32 %v2734_v30 }
 0x1e5   :  { %v604_v61 = vpop.f32.mrf.mxu2 }
 0x1e6   :  { %v647_v63 = vadd.f32 %v604_v61, %v306_v23  ;;  %v624_v56 = vpop.f32.mrf.mxu3 }
 0x1e8   :  { %v2735_v60 = vmul.f32 -1.442695, %v647_v63 }
 0x1ea   :  { %v2801_v26 = vpop.eup %2800  ;;  %2802 = vpow2.f32 %v2735_v60  ;;  %v667_v60 = vadd.f32 %v3683_v28, %v624_v56  ;;  %v3777_v56 = vpop.permute.xlu0 %678 }
 0x1eb   :  { %v631_v46 = vadd.f32 1.0, %v2801_v26  ;;  %5016 = vst [vmem:[#allocation24_spill] sm:$0xff] %v3777_v56  ;;  %vm680_vm1 = vcmp.eq.s32.totalorder %v3777_v56, 1 }
 0x1ed   :  { %2804 = vrcp.f32 %v631_v46  ;;  %v643_v14 = vand.u32 2147483648, %v631_v46  ;;  %v641_v21 = vand.u32 2147483647, %v631_v46  ;;  %vm637_vm10 = vweird.f32 %v631_v46 }
 0x1ef   :  { %v644_v23 = vor.u32 1.1754944e-38, %v643_v14  ;;  %vm642_vm12 = vcmp.eq.f32.partialorder %v641_v21, 8.507059e+37  ;;  %v561_v21 = vsel %vm560_vm8, %v3688_v5, 0.0 }
 0x1f0   :  { %v2803_v12 = vpop.eup %2802 }
 0x1f1   :  { %v651_v17 = vadd.f32 1.0, %v2803_v12 }
 0x1f3   :  { %v2805_v25 = vpop.eup %2804  ;;  %2806 = vrcp.f32 %v651_v17  ;;  %vm657_vm14 = vweird.f32 %v651_v17 }
 0x1f4   :  { %v633_v22 = vmul.f32 %v2805_v25, %v631_v46  ;;  %vm638_vm9 = vweird.f32 %v2805_v25 }
 0x1f5   :  { %vm639_vm11 = vmor %vm637_vm10, %vm638_vm9 }
 0x1f6   :  { %v634_v8 = vsub.f32 1.0, %v633_v22  ;;  %v663_v22 = vand.u32 2147483648, %v651_v17 }
 0x1f8   :  { %v635_v44 = vmul.f32 %v2805_v25, %v634_v8  ;;  %v661_v8 = vand.u32 2147483647, %v651_v17  ;;  %v664_v55 = vor.u32 1.1754944e-38, %v663_v22 }
 0x1f9   :  { %v2807_v45 = vpop.eup %2806 }
 0x1fa   :  { %v653_v4 = vmul.f32 %v2807_v45, %v651_v17  ;;  %v636_v30 = vadd.f32 %v2805_v25, %v635_v44  ;;  %vm658_vm13 = vweird.f32 %v2807_v45  ;;  %vm662_vm0 = vcmp.eq.f32.partialorder %v661_v8, 8.507059e+37 }
 0x1fb   :  { %vm659_vm15 = vmor %vm657_vm14, %vm658_vm13 }
 0x1fc   :  { %v654_v61 = vsub.f32 1.0, %v653_v4  ;;  %v640_v63 = vsel %vm639_vm11, %v2805_v25, %v636_v30 }
 0x1fd   :  { %v645_v26 = vsel %vm642_vm12, %v644_v23, %v640_v63 }
 0x1fe   :  { %v655_v12 = vmul.f32 %v2807_v45, %v654_v61  ;;  %v668_v20 = vmul.f32 %v667_v60, %v645_v26 }
 0x200   :  { %v656_v41 = vadd.f32 %v2807_v45, %v655_v12  ;;  %v669_v59 = vadd.f32 %v668_v20, %v347_v27  ;;  %v3803_v20 = vld [vmem:[#allocation6 + $0x120] sm:$0xff] }
 0x202   :  { %v660_v44 = vsel %vm659_vm15, %v2807_v45, %v656_v41  ;;  %2808 = vtanh.f32 %v669_v59  ;;  %v3793_v59 = vld [vmem:[#allocation6 + $0x150] sm:$0xff]  ;;  %v3798_v41 = vld [vmem:[#allocation6 + $0x138] sm:$0xff] }
 0x203   :  { %v665_v46 = vsel %vm662_vm0, %v664_v55, %v660_v44  ;;  %v3788_v55 = vld [vmem:[#allocation6 + $0x168] sm:$0xff]  ;;  %v5017_v45 = vld [vmem:[#allocation25_spill] sm:$0xff] }
 0x204   :  { %v671_v14 = vsub.f32 1.0, %v665_v46  ;;  %v673_v30 = vmul.f32 %v665_v46, %v561_v21 }
 0x208   :  { %v2809_v25 = vpop.eup %2808 }
 0x209   :  { %v672_v4 = vmul.f32 %v2809_v25, %v671_v14 }
 0x20b   :  { %v674_v23 = vadd.f32 %v673_v30, %v672_v4 }
 0x20d   :  { %v3782_v27 = vsel %vm680_vm1, %v674_v23, %v561_v21 }
 0x20e   :  { %704 = vmatmul.f32.vlgmr.msra.gmra.mxu0 %v3782_v27  ;;  %724 = vmatmul.f32.vlgmr.msra.gmra.mxu1 %v3782_v27 }
 0x20f   :  { %744 = vmatmul.f32.vlgmr.msra.gmra.mxu2 %v3782_v27  ;;  %970 = vmatpush.msra.mxu0 %v3456_v48 }
 0x210   :  { %1051 = vmatpush.msra.mxu1 %v3788_v55  ;;  %1071 = vmatpush.msra.mxu2 %v3404_v62  ;;  %v3808_v62 = vld [vmem:[#allocation6 + $0x108] sm:$0xff] }
 0x211   :  { %971 = vmatpush.msra.mxu0 %v3458_v49 }
 0x212   :  { %1052 = vmatpush.msra.mxu1 %v3793_v59  ;;  %1072 = vmatpush.msra.mxu2 %v3407_v1  ;;  %v3813_v1 = vld [vmem:[#allocation6 + $0xf0] sm:$0xff] }
 0x213   :  { %972 = vmatpush.msra.mxu0 %v3472_v50 }
 0x214   :  { %1053 = vmatpush.msra.mxu1 %v3798_v41  ;;  %1073 = vmatpush.msra.mxu2 %v3410_v0  ;;  %v3818_v0 = vld [vmem:[#allocation6 + $0xd8] sm:$0xff] }
 0x215   :  { %973 = vmatpush.msra.mxu0 %v3474_v52 }
 0x216   :  { %1054 = vmatpush.msra.mxu1 %v3803_v20  ;;  %1074 = vmatpush.msra.mxu2 %v3414_v13  ;;  %v3823_v13 = vld [vmem:[#allocation6 + $0xc0] sm:$0xff] }
 0x217   :  { %974 = vmatpush.msra.mxu0 %v3488_v53 }
 0x218   :  { %1055 = vmatpush.msra.mxu1 %v3808_v62  ;;  %1075 = vmatpush.msra.mxu2 %v3417_v18  ;;  %v3828_v18 = vld [vmem:[#allocation6 + $0xa8] sm:$0xff] }
 0x219   :  { %975 = vmatpush.msra.mxu0 %v3490_v54 }
 0x21a   :  { %1056 = vmatpush.msra.mxu1 %v3813_v1  ;;  %1076 = vmatpush.msra.mxu2 %v3420_v24  ;;  %v3833_v24 = vld [vmem:[#allocation6 + $0x90] sm:$0xff] }
 0x21b   :  { %976 = vmatpush.msra.mxu0 %v3504_v57 }
 0x21c   :  { %1057 = vmatpush.msra.mxu1 %v3818_v0  ;;  %1077 = vmatpush.msra.mxu2 %v3423_v29  ;;  %v3838_v29 = vld [vmem:[#allocation6 + $0x78] sm:$0xff] }
 0x21d   :  { %977 = vmatpush.msra.mxu0 %v3506_v58 }
 0x21e   :  { %1058 = vmatpush.msra.mxu1 %v3823_v13  ;;  %1078 = vmatpush.msra.mxu2 %v3426_v32  ;;  %v3843_v32 = vld [vmem:[#allocation6 + $0x60] sm:$0xff] }
 0x21f   :  { %978 = vmatpush.msra.mxu0 %v3525_v2 }
 0x220   :  { %1059 = vmatpush.msra.mxu1 %v3828_v18  ;;  %1079 = vmatpush.msra.mxu2 %v3429_v33  ;;  %v3848_v33 = vld [vmem:[#allocation6 + $0x48] sm:$0xff] }
 0x221   :  { %979 = vmatpush.msra.mxu0 %v3527_v3 }
 0x222   :  { %1060 = vmatpush.msra.mxu1 %v3833_v24  ;;  %1080 = vmatpush.msra.mxu2 %v3432_v34  ;;  %v3853_v34 = vld [vmem:[#allocation6 + $0x30] sm:$0xff] }
 0x223   :  { %980 = vmatpush.msra.mxu0 %v3544_v6 }
 0x224   :  { %1061 = vmatpush.msra.mxu1 %v3838_v29  ;;  %1081 = vmatpush.msra.mxu2 %v3435_v36  ;;  %v3858_v36 = vld [vmem:[#allocation6 + $0x18] sm:$0xff] }
 0x225   :  { %981 = vmatpush.msra.mxu0 %v3546_v10 }
 0x226   :  { %1062 = vmatpush.msra.mxu1 %v3843_v32  ;;  %1082 = vmatpush.msra.mxu2 %v3438_v37  ;;  %v3863_v37 = vld [vmem:[#allocation6] sm:$0xff] }
 0x227   :  { %982 = vmatpush.msra.mxu0 %v3563_v15 }
 0x228   :  { %1063 = vmatpush.msra.mxu1 %v3848_v33  ;;  %1083 = vmatpush.msra.mxu2 %v3441_v38 }
 0x229   :  { %983 = vmatpush.msra.mxu0 %v3565_v16 }
 0x22a   :  { %1064 = vmatpush.msra.mxu1 %v3853_v34  ;;  %1084 = vmatpush.msra.mxu2 %v3444_v40 }
 0x22b   :  { %984 = vmatpush.msra.mxu0 %v5003_v7 }
 0x22c   :  { %1065 = vmatpush.msra.mxu1 %v3858_v36  ;;  %1085 = vmatpush.msra.mxu2 %v5005_v9 }
 0x22d   :  { %985 = vmatpush.msra.mxu0 %v5006_v11 }
 0x22e   :  { %1066 = vmatpush.msra.mxu1 %v3863_v37  ;;  %1086 = vmatpush.msra.mxu2 %v5008_v19 }
 0x28b   :  { %v705_v38 = vpop.f32.mrf.mxu0  ;;  %v725_v17 = vpop.f32.mrf.mxu1 }
 0x28c   :  { %v748_v40 = vadd.f32 %v705_v38, %v5017_v45  ;;  %v768_v61 = vadd.f32 %v725_v17, %v3748_v31 }
 0x28e   :  { %v2736_v63 = vmul.f32 -1.442695, %v748_v40  ;;  %v2737_v60 = vmul.f32 -1.442695, %v768_v61 }
 0x290   :  { %2810 = vpow2.f32 %v2736_v63 }
 0x291   :  { %2812 = vpow2.f32 %v2737_v60 }
 0x292   :  { %v745_v23 = vpop.f32.mrf.mxu2 }
 0x293   :  { %v788_v40 = vadd.f32 %v3683_v28, %v745_v23  ;;  %v3895_v23 = vld [vmem:[#allocation6 + $0x140] sm:$0xff] }
 0x296   :  { %v2811_v26 = vpop.eup %2810 }
 0x297   :  { %v2813_v9 = vpop.eup %2812  ;;  %v752_v12 = vadd.f32 1.0, %v2811_v26 }
 0x298   :  { %v772_v22 = vadd.f32 1.0, %v2813_v9 }
 0x299   :  { %2814 = vrcp.f32 %v752_v12  ;;  %v764_v21 = vand.u32 2147483648, %v752_v12  ;;  %v762_v31 = vand.u32 2147483647, %v752_v12  ;;  %vm758_vm3 = vweird.f32 %v752_v12 }
 0x29a   :  { %2816 = vrcp.f32 %v772_v22  ;;  %v784_v60 = vand.u32 2147483648, %v772_v22  ;;  %vm778_vm7 = vweird.f32 %v772_v22  ;;  %v782_v9 = vand.u32 2147483647, %v772_v22 }
 0x29b   :  { %v765_v17 = vor.u32 1.1754944e-38, %v764_v21  ;;  %vm763_vm5 = vcmp.eq.f32.partialorder %v762_v31, 8.507059e+37  ;;  %v3871_v21 = vpop.permute.xlu1 %799 }
 0x29c   :  { %vm783_vm10 = vcmp.eq.f32.partialorder %v782_v9, 8.507059e+37  ;;  %5018 = vst [vmem:[#allocation25_spill] sm:$0xff] %v3871_v21  ;;  %vm801_vm11 = vcmp.eq.s32.totalorder %v3871_v21, 1 }
 0x29f   :  { %v2815_v8 = vpop.eup %2814 }
 0x2a0   :  { %v2817_v44 = vpop.eup %2816  ;;  %v754_v46 = vmul.f32 %v2815_v8, %v752_v12  ;;  %vm759_vm2 = vweird.f32 %v2815_v8 }
 0x2a1   :  { %v774_v19 = vmul.f32 %v2817_v44, %v772_v22  ;;  %vm760_vm4 = vmor %vm758_vm3, %vm759_vm2  ;;  %vm779_vm6 = vweird.f32 %v2817_v44 }
 0x2a2   :  { %v755_v14 = vsub.f32 1.0, %v754_v46  ;;  %vm780_vm9 = vmor %vm778_vm7, %vm779_vm6 }
 0x2a3   :  { %v775_v25 = vsub.f32 1.0, %v774_v19 }
 0x2a4   :  { %v756_v4 = vmul.f32 %v2815_v8, %v755_v14  ;;  %v785_v14 = vor.u32 1.1754944e-38, %v784_v60 }
 0x2a5   :  { %v776_v30 = vmul.f32 %v2817_v44, %v775_v25 }
 0x2a6   :  { %v757_v38 = vadd.f32 %v2815_v8, %v756_v4 }
 0x2a7   :  { %v777_v61 = vadd.f32 %v2817_v44, %v776_v30 }
 0x2a8   :  { %v761_v45 = vsel %vm760_vm4, %v2815_v8, %v757_v38 }
 0x2a9   :  { %v766_v63 = vsel %vm763_vm5, %v765_v17, %v761_v45  ;;  %v781_v19 = vsel %vm780_vm9, %v2817_v44, %v777_v61  ;;  %v3890_v44 = vld [vmem:[#allocation6 + $0x158] sm:$0xff]  ;;  %v5019_v45 = vld [vmem:[#allocation26_spill] sm:$0xff] }
 0x2aa   :  { %v789_v26 = vmul.f32 %v788_v40, %v766_v63  ;;  %v786_v12 = vsel %vm783_vm10, %v785_v14, %v781_v19 }
 0x2ab   :  { %v792_v25 = vsub.f32 1.0, %v786_v12  ;;  %v794_v31 = vmul.f32 %v786_v12, %v3782_v27 }
 0x2ac   :  { %v790_v46 = vadd.f32 %v789_v26, %v3750_v35  ;;  %v3885_v35 = vld [vmem:[#allocation6 + $0x170] sm:$0xff] }
 0x2ae   :  { %2818 = vtanh.f32 %v790_v46 }
 0x2b4   :  { %v2819_v8 = vpop.eup %2818 }
 0x2b5   :  { %v793_v4 = vmul.f32 %v2819_v8, %v792_v25 }
 0x2b7   :  { %v795_v30 = vadd.f32 %v794_v31, %v793_v4 }
 0x2b9   :  { %v3878_v22 = vsel %vm801_vm11, %v795_v30, %v3782_v27 }
 0x2ba   :  { %825 = vmatmul.f32.vlgmr.msrb.gmra.mxu3 %v3878_v22  ;;  %845 = vmatmul.f32.vlgmr.msrb.gmra.mxu0 %v3878_v22 }
 0x2bb   :  { %865 = vmatmul.f32.vlgmr.msrb.gmra.mxu1 %v3878_v22  ;;  %1091 = vmatpush.msrb.mxu3 %v3456_v48  ;;  %v3900_v48 = vld [vmem:[#allocation6 + $0x128] sm:$0xff] }
 0x2bc   :  { %1172 = vmatpush.msrb.mxu0 %v3788_v55  ;;  %1192 = vmatpush.msrb.mxu1 %v3885_v35 }
 0x2bd   :  { %1092 = vmatpush.msrb.mxu3 %v3458_v49  ;;  %v3905_v49 = vld [vmem:[#allocation6 + $0x110] sm:$0xff] }
 0x2be   :  { %1173 = vmatpush.msrb.mxu0 %v3793_v59  ;;  %1193 = vmatpush.msrb.mxu1 %v3890_v44 }
 0x2bf   :  { %1093 = vmatpush.msrb.mxu3 %v3472_v50  ;;  %v3910_v50 = vld [vmem:[#allocation6 + $0xf8] sm:$0xff] }
 0x2c0   :  { %1174 = vmatpush.msrb.mxu0 %v3798_v41  ;;  %1194 = vmatpush.msrb.mxu1 %v3895_v23 }
 0x2c1   :  { %1094 = vmatpush.msrb.mxu3 %v3474_v52  ;;  %v3915_v52 = vld [vmem:[#allocation6 + $0xe0] sm:$0xff] }
 0x2c2   :  { %1175 = vmatpush.msrb.mxu0 %v3803_v20  ;;  %1195 = vmatpush.msrb.mxu1 %v3900_v48 }
 0x2c3   :  { %1095 = vmatpush.msrb.mxu3 %v3488_v53  ;;  %v3920_v53 = vld [vmem:[#allocation6 + $0xc8] sm:$0xff] }
 0x2c4   :  { %1176 = vmatpush.msrb.mxu0 %v3808_v62  ;;  %1196 = vmatpush.msrb.mxu1 %v3905_v49 }
 0x2c5   :  { %1096 = vmatpush.msrb.mxu3 %v3490_v54  ;;  %v3925_v54 = vld [vmem:[#allocation6 + $0xb0] sm:$0xff] }
 0x2c6   :  { %1177 = vmatpush.msrb.mxu0 %v3813_v1  ;;  %1197 = vmatpush.msrb.mxu1 %v3910_v50 }
 0x2c7   :  { %1097 = vmatpush.msrb.mxu3 %v3504_v57  ;;  %v3930_v57 = vld [vmem:[#allocation6 + $0x98] sm:$0xff] }
 0x2c8   :  { %1178 = vmatpush.msrb.mxu0 %v3818_v0  ;;  %1198 = vmatpush.msrb.mxu1 %v3915_v52 }
 0x2c9   :  { %1098 = vmatpush.msrb.mxu3 %v3506_v58  ;;  %v3935_v58 = vld [vmem:[#allocation6 + $0x80] sm:$0xff] }
 0x2ca   :  { %1179 = vmatpush.msrb.mxu0 %v3823_v13  ;;  %1199 = vmatpush.msrb.mxu1 %v3920_v53 }
 0x2cb   :  { %1099 = vmatpush.msrb.mxu3 %v3525_v2  ;;  %v3940_v2 = vld [vmem:[#allocation6 + $0x68] sm:$0xff] }
 0x2cc   :  { %1180 = vmatpush.msrb.mxu0 %v3828_v18  ;;  %1200 = vmatpush.msrb.mxu1 %v3925_v54 }
 0x2cd   :  { %1100 = vmatpush.msrb.mxu3 %v3527_v3  ;;  %v3945_v3 = vld [vmem:[#allocation6 + $0x50] sm:$0xff] }
 0x2ce   :  { %1181 = vmatpush.msrb.mxu0 %v3833_v24  ;;  %1201 = vmatpush.msrb.mxu1 %v3930_v57 }
 0x2cf   :  { %1101 = vmatpush.msrb.mxu3 %v3544_v6  ;;  %v3950_v6 = vld [vmem:[#allocation6 + $0x38] sm:$0xff] }
 0x2d0   :  { %1182 = vmatpush.msrb.mxu0 %v3838_v29  ;;  %1202 = vmatpush.msrb.mxu1 %v3935_v58 }
 0x2d1   :  { %1102 = vmatpush.msrb.mxu3 %v3546_v10  ;;  %v3955_v10 = vld [vmem:[#allocation6 + $0x20] sm:$0xff] }
 0x2d2   :  { %1183 = vmatpush.msrb.mxu0 %v3843_v32  ;;  %1203 = vmatpush.msrb.mxu1 %v3940_v2 }
 0x2d3   :  { %1103 = vmatpush.msrb.mxu3 %v3563_v15  ;;  %v3960_v15 = vld [vmem:[#allocation6 + $0x8] sm:$0xff] }
 0x2d4   :  { %1184 = vmatpush.msrb.mxu0 %v3848_v33  ;;  %1204 = vmatpush.msrb.mxu1 %v3945_v3 }
 0x2d5   :  { %1104 = vmatpush.msrb.mxu3 %v3565_v16 }
 0x2d6   :  { %1185 = vmatpush.msrb.mxu0 %v3853_v34  ;;  %1205 = vmatpush.msrb.mxu1 %v3950_v6 }
 0x2d7   :  { %1105 = vmatpush.msrb.mxu3 %v5003_v7 }
 0x2d8   :  { %1186 = vmatpush.msrb.mxu0 %v3858_v36  ;;  %1206 = vmatpush.msrb.mxu1 %v3955_v10 }
 0x2d9   :  { %1106 = vmatpush.msrb.mxu3 %v5006_v11 }
 0x2da   :  { %1187 = vmatpush.msrb.mxu0 %v3863_v37  ;;  %1207 = vmatpush.msrb.mxu1 %v3960_v15 }
 0x337   :  { %v846_v16 = vpop.f32.mrf.mxu0 }
 0x338   :  { %v889_v38 = vadd.f32 %v846_v16, %v3752_v39  ;;  %v866_v30 = vpop.f32.mrf.mxu1 }
 0x33a   :  { %v2739_v17 = vmul.f32 -1.442695, %v889_v38 }
 0x33c   :  { %2820 = vpow2.f32 %v2739_v17  ;;  %v909_v17 = vadd.f32 %v3683_v28, %v866_v30  ;;  %v3989_v30 = vld [vmem:[#allocation6 + $0x148] sm:$0xff] }
 0x33d   :  { %v826_v7 = vpop.f32.mrf.mxu3 }
 0x33e   :  { %v869_v40 = vadd.f32 %v826_v7, %v5019_v45 }
 0x340   :  { %v2738_v61 = vmul.f32 -1.442695, %v869_v40 }
 0x342   :  { %v2821_v63 = vpop.eup %2820  ;;  %2822 = vpow2.f32 %v2738_v61 }
 0x343   :  { %v893_v60 = vadd.f32 1.0, %v2821_v63 }
 0x345   :  { %2824 = vrcp.f32 %v893_v60  ;;  %v905_v61 = vand.u32 2147483648, %v893_v60  ;;  %vm899_vm2 = vweird.f32 %v893_v60 }
 0x348   :  { %v2823_v11 = vpop.eup %2822 }
 0x349   :  { %v873_v26 = vadd.f32 1.0, %v2823_v11  ;;  %v903_v11 = vand.u32 2147483647, %v893_v60 }
 0x34b   :  { %2826 = vrcp.f32 %v873_v26  ;;  %v2825_v9 = vpop.eup %2824  ;;  %v885_v39 = vand.u32 2147483648, %v873_v26  ;;  %v883_v4 = vand.u32 2147483647, %v873_v26  ;;  %vm879_vm13 = vweird.f32 %v873_v26 }
 0x34c   :  { %v895_v46 = vmul.f32 %v2825_v9, %v893_v60  ;;  %vm900_vm0 = vweird.f32 %v2825_v9  ;;  %vm904_vm4 = vcmp.eq.f32.partialorder %v903_v11, 8.507059e+37 }
 0x34d   :  { %v886_v38 = vor.u32 1.1754944e-38, %v885_v39  ;;  %vm884_vm15 = vcmp.eq.f32.partialorder %v883_v4, 8.507059e+37  ;;  %vm901_vm3 = vmor %vm899_vm2, %vm900_vm0  ;;  %v3968_v4 = vpop.permute.xlu2 %920 }
 0x34e   :  { %v896_v12 = vsub.f32 1.0, %v895_v46  ;;  %5020 = vst [vmem:[#allocation26_spill] sm:$0xff] %v3968_v4  ;;  %vm922_vm5 = vcmp.eq.s32.totalorder %v3968_v4, 1 }
 0x350   :  { %v897_v31 = vmul.f32 %v2825_v9, %v896_v12  ;;  %v906_v12 = vor.u32 1.1754944e-38, %v905_v61 }
 0x351   :  { %v2827_v19 = vpop.eup %2826 }
 0x352   :  { %v875_v14 = vmul.f32 %v2827_v19, %v873_v26  ;;  %vm880_vm12 = vweird.f32 %v2827_v19  ;;  %v898_v45 = vadd.f32 %v2825_v9, %v897_v31 }
 0x353   :  { %vm881_vm14 = vmor %vm879_vm13, %vm880_vm12 }
 0x354   :  { %v876_v25 = vsub.f32 1.0, %v875_v14  ;;  %v902_v14 = vsel %vm901_vm3, %v2825_v9, %v898_v45  ;;  %v3984_v9 = vld [vmem:[#allocation6 + $0x160] sm:$0xff] }
 0x355   :  { %v907_v26 = vsel %vm904_vm4, %v906_v12, %v902_v14 }
 0x356   :  { %v877_v8 = vmul.f32 %v2827_v19, %v876_v25  ;;  %v913_v25 = vsub.f32 1.0, %v907_v26 }
 0x358   :  { %v878_v16 = vadd.f32 %v2827_v19, %v877_v8 }
 0x35a   :  { %v882_v7 = vsel %vm881_vm14, %v2827_v19, %v878_v16  ;;  %v915_v19 = vmul.f32 %v907_v26, %v3878_v22  ;;  %v3994_v16 = vld [vmem:[#allocation6 + $0x130] sm:$0xff] }
 0x35b   :  { %v887_v40 = vsel %vm884_vm15, %v886_v38, %v882_v7 }
 0x35c   :  { %v910_v63 = vmul.f32 %v909_v17, %v887_v40 }
 0x35e   :  { %v911_v46 = vadd.f32 %v910_v63, %v3754_v43  ;;  %v3979_v43 = vld [vmem:[#allocation6 + $0x178] sm:$0xff] }
 0x360   :  { %2828 = vtanh.f32 %v911_v46 }
 0x366   :  { %v2829_v39 = vpop.eup %2828 }
 0x367   :  { %v914_v8 = vmul.f32 %v2829_v39, %v913_v25 }
 0x369   :  { %v916_v31 = vadd.f32 %v915_v19, %v914_v8 }
 0x36b   :  { %v3974_v60 = vsel %vm922_vm5, %v916_v31, %v3878_v22 }
 0x36c   :  { %946 = vmatmul.f32.vlgmr.msrb.gmra.mxu2 %v3974_v60  ;;  %966 = vmatmul.f32.vlgmr.msra.gmra.mxu3 %v3974_v60 }
 0x36d   :  { %986 = vmatmul.f32.vlgmr.msra.gmra.mxu0 %v3974_v60  ;;  %1212 = vmatpush.msrb.mxu2 %v3979_v43 }
 0x36e   :  { %1293 = vmatpush.msra.mxu3 %v3788_v55  ;;  %1313 = vmatpush.msra.mxu0 %v3885_v35  ;;  %v3999_v55 = vld [vmem:[#allocation6 + $0x118] sm:$0xff]  ;;  %v5021_v35 = vld [vmem:[#allocation27_spill] sm:$0xff] }
 0x36f   :  { %1213 = vmatpush.msrb.mxu2 %v3984_v9 }
 0x370   :  { %1294 = vmatpush.msra.mxu3 %v3793_v59  ;;  %1314 = vmatpush.msra.mxu0 %v3890_v44  ;;  %v4004_v59 = vld [vmem:[#allocation6 + $0x100] sm:$0xff] }
 0x371   :  { %1214 = vmatpush.msrb.mxu2 %v3989_v30 }
 0x372   :  { %1295 = vmatpush.msra.mxu3 %v3798_v41  ;;  %1315 = vmatpush.msra.mxu0 %v3895_v23  ;;  %v4009_v41 = vld [vmem:[#allocation6 + $0xe8] sm:$0xff] }
 0x373   :  { %1215 = vmatpush.msrb.mxu2 %v3994_v16 }
 0x374   :  { %1296 = vmatpush.msra.mxu3 %v3803_v20  ;;  %1316 = vmatpush.msra.mxu0 %v3900_v48  ;;  %v4014_v20 = vld [vmem:[#allocation6 + $0xd0] sm:$0xff] }
 0x375   :  { %1216 = vmatpush.msrb.mxu2 %v3999_v55 }
 0x376   :  { %1297 = vmatpush.msra.mxu3 %v3808_v62  ;;  %1317 = vmatpush.msra.mxu0 %v3905_v49  ;;  %v4019_v62 = vld [vmem:[#allocation6 + $0xb8] sm:$0xff] }
 0x377   :  { %1217 = vmatpush.msrb.mxu2 %v4004_v59 }
 0x378   :  { %1298 = vmatpush.msra.mxu3 %v3813_v1  ;;  %1318 = vmatpush.msra.mxu0 %v3910_v50  ;;  %v4024_v1 = vld [vmem:[#allocation6 + $0xa0] sm:$0xff] }
 0x379   :  { %1218 = vmatpush.msrb.mxu2 %v4009_v41 }
 0x37a   :  { %1299 = vmatpush.msra.mxu3 %v3818_v0  ;;  %1319 = vmatpush.msra.mxu0 %v3915_v52  ;;  %v4029_v0 = vld [vmem:[#allocation6 + $0x88] sm:$0xff] }
 0x37b   :  { %1219 = vmatpush.msrb.mxu2 %v4014_v20 }
 0x37c   :  { %1300 = vmatpush.msra.mxu3 %v3823_v13  ;;  %1320 = vmatpush.msra.mxu0 %v3920_v53  ;;  %v4034_v13 = vld [vmem:[#allocation6 + $0x70] sm:$0xff] }
 0x37d   :  { %1220 = vmatpush.msrb.mxu2 %v4019_v62 }
 0x37e   :  { %1301 = vmatpush.msra.mxu3 %v3828_v18  ;;  %1321 = vmatpush.msra.mxu0 %v3925_v54  ;;  %v4039_v18 = vld [vmem:[#allocation6 + $0x58] sm:$0xff] }
 0x37f   :  { %1221 = vmatpush.msrb.mxu2 %v4024_v1 }
 0x380   :  { %1302 = vmatpush.msra.mxu3 %v3833_v24  ;;  %1322 = vmatpush.msra.mxu0 %v3930_v57  ;;  %v4044_v24 = vld [vmem:[#allocation6 + $0x40] sm:$0xff] }
 0x381   :  { %1222 = vmatpush.msrb.mxu2 %v4029_v0 }
 0x382   :  { %1303 = vmatpush.msra.mxu3 %v3838_v29  ;;  %1323 = vmatpush.msra.mxu0 %v3935_v58  ;;  %v4049_v29 = vld [vmem:[#allocation6 + $0x28] sm:$0xff] }
 0x383   :  { %1223 = vmatpush.msrb.mxu2 %v4034_v13 }
 0x384   :  { %1304 = vmatpush.msra.mxu3 %v3843_v32  ;;  %1324 = vmatpush.msra.mxu0 %v3940_v2  ;;  %v4054_v32 = vld [vmem:[#allocation6 + $0x10] sm:$0xff] }
 0x385   :  { %1224 = vmatpush.msrb.mxu2 %v4039_v18 }
 0x386   :  { %1305 = vmatpush.msra.mxu3 %v3848_v33  ;;  %1325 = vmatpush.msra.mxu0 %v3945_v3 }
 0x387   :  { %1225 = vmatpush.msrb.mxu2 %v4044_v24 }
 0x388   :  { %1306 = vmatpush.msra.mxu3 %v3853_v34  ;;  %1326 = vmatpush.msra.mxu0 %v3950_v6 }
 0x389   :  { %1226 = vmatpush.msrb.mxu2 %v4049_v29 }
 0x38a   :  { %1307 = vmatpush.msra.mxu3 %v3858_v36  ;;  %1327 = vmatpush.msra.mxu0 %v3955_v10 }
 0x38b   :  { %1227 = vmatpush.msrb.mxu2 %v4054_v32 }
 0x38c   :  { %1308 = vmatpush.msra.mxu3 %v3863_v37  ;;  %1328 = vmatpush.msra.mxu0 %v3960_v15 }
 0x3ea   :  { %v987_v15 = vpop.f32.mrf.mxu0 }
 0x3eb   :  { %v1030_v45 = vadd.f32 %v3683_v28, %v987_v15  ;;  %v4063_v28 = vpop.permute.xlu0 %1041 }
 0x3ec   :  { %5022 = vst [vmem:[#allocation27_spill] sm:$0xff] %v4063_v28  ;;  %vm1043_vm0 = vcmp.eq.s32.totalorder %v4063_v28, 1 }
 0x3ef   :  { %v947_v33 = vpop.f32.mrf.mxu2  ;;  %v967_v34 = vpop.f32.mrf.mxu3 }
 0x3f0   :  { %v990_v44 = vadd.f32 %v947_v33, %v5021_v35  ;;  %v1010_v23 = vadd.f32 %v967_v34, %v3756_v47 }
 0x3f2   :  { %v2740_v48 = vmul.f32 -1.442695, %v990_v44  ;;  %v2741_v49 = vmul.f32 -1.442695, %v1010_v23  ;;  %v1428_v44 = vld [vmem:[#allocation8 + $0x90] sm:$0xff] }
 0x3f4   :  { %2830 = vpow2.f32 %v2740_v48 }
 0x3f5   :  { %2832 = vpow2.f32 %v2741_v49  ;;  %v1425_v49 = vld [vmem:[#allocation8 + $0x78] sm:$0xff] }
 0x3fa   :  { %v2831_v36 = vpop.eup %2830 }
 0x3fb   :  { %v2833_v50 = vpop.eup %2832  ;;  %v994_v52 = vadd.f32 1.0, %v2831_v36  ;;  %v1422_v36 = vld [vmem:[#allocation8 + $0x60] sm:$0xff] }
 0x3fc   :  { %v1014_v53 = vadd.f32 1.0, %v2833_v50  ;;  %v1419_v50 = vld [vmem:[#allocation8 + $0x48] sm:$0xff] }
 0x3fd   :  { %2834 = vrcp.f32 %v994_v52  ;;  %v1006_v3 = vand.u32 2147483648, %v994_v52  ;;  %v1004_v47 = vand.u32 2147483647, %v994_v52  ;;  %vm1000_vm7 = vweird.f32 %v994_v52 }
 0x3fe   :  { %2836 = vrcp.f32 %v1014_v53  ;;  %v1026_v46 = vand.u32 2147483648, %v1014_v53  ;;  %vm1020_vm13 = vweird.f32 %v1014_v53  ;;  %v1024_v14 = vand.u32 2147483647, %v1014_v53 }
 0x3ff   :  { %v1007_v7 = vor.u32 1.1754944e-38, %v1006_v3  ;;  %vm1005_vm10 = vcmp.eq.f32.partialorder %v1004_v47, 8.507059e+37 }
 0x400   :  { %v1027_v25 = vor.u32 1.1754944e-38, %v1026_v46  ;;  %vm1025_vm15 = vcmp.eq.f32.partialorder %v1024_v14, 8.507059e+37 }
 0x403   :  { %v2835_v54 = vpop.eup %2834 }
 0x404   :  { %v2837_v37 = vpop.eup %2836  ;;  %v996_v57 = vmul.f32 %v2835_v54, %v994_v52  ;;  %vm1001_vm6 = vweird.f32 %v2835_v54  ;;  %v1416_v52 = vld [vmem:[#allocation8 + $0x30] sm:$0xff] }
 0x405   :  { %v1016_v58 = vmul.f32 %v2837_v37, %v1014_v53  ;;  %vm1002_vm9 = vmor %vm1000_vm7, %vm1001_vm6  ;;  %vm1021_vm12 = vweird.f32 %v2837_v37 }
 0x406   :  { %v997_v2 = vsub.f32 1.0, %v996_v57  ;;  %vm1022_vm14 = vmor %vm1020_vm13, %vm1021_vm12 }
 0x407   :  { %v1017_v6 = vsub.f32 1.0, %v1016_v58  ;;  %v1410_v58 = vld [vmem:[#allocation8] sm:$0xff] }
 0x408   :  { %v998_v10 = vmul.f32 %v2835_v54, %v997_v2 }
 0x409   :  { %v1018_v38 = vmul.f32 %v2837_v37, %v1017_v6 }
 0x40a   :  { %v999_v17 = vadd.f32 %v2835_v54, %v998_v10 }
 0x40b   :  { %v1019_v63 = vadd.f32 %v2837_v37, %v1018_v38 }
 0x40c   :  { %v1003_v40 = vsel %vm1002_vm9, %v2835_v54, %v999_v17 }
 0x40d   :  { %v1008_v61 = vsel %vm1005_vm10, %v1007_v7, %v1003_v40  ;;  %v1023_v26 = vsel %vm1022_vm14, %v2837_v37, %v1019_v63  ;;  %v1413_v37 = vld [vmem:[#allocation8 + $0x18] sm:$0xff]  ;;  %v4096_v63 = vld [vmem:[%s4943_s4] ss:$0 sm:$0xff] }
 0x40e   :  { %v1031_v11 = vmul.f32 %v1030_v45, %v1008_v61  ;;  %v1028_v39 = vsel %vm1025_vm15, %v1027_v25, %v1023_v26 }
 0x40f   :  { %v1034_v19 = vsub.f32 1.0, %v1028_v39  ;;  %v1036_v33 = vmul.f32 %v1028_v39, %v3974_v60 }
 0x410   :  { %v1032_v12 = vadd.f32 %v1031_v11, %v3758_v51 }
 0x412   :  { %2838 = vtanh.f32 %v1032_v12 }
 0x418   :  { %v2839_v8 = vpop.eup %2838 }
 0x419   :  { %v1035_v31 = vmul.f32 %v2839_v8, %v1034_v19  ;;  %v5025_v19 = vld [vmem:[#allocation18_spill] sm:$0xff] }
 0x41b   :  { %v1037_v34 = vadd.f32 %v1036_v33, %v1035_v31 }
 0x41d   :  { %v4070_v51 = vsel %vm1043_vm0, %v1037_v34, %v3974_v60 }
 0x41e   :  { %1067 = vmatmul.f32.vlgmr.msra.gmra.mxu1 %v4070_v51  ;;  %1087 = vmatmul.f32.vlgmr.msra.gmra.mxu2 %v4070_v51 }
 0x41f   :  { %1107 = vmatmul.f32.vlgmr.msrb.gmra.mxu3 %v4070_v51  ;;  %1333 = vmatpush.msra.mxu1 %v3979_v43  ;;  %v1455_v43 = vld [vmem:[#allocation8 + $0x168] sm:$0xff] }
 0x420   :  { %1474 = vmatpush.msra.mxu2 %v1455_v43 }
 0x421   :  { %1334 = vmatpush.msra.mxu1 %v3984_v9  ;;  %v1452_v9 = vld [vmem:[#allocation8 + $0x150] sm:$0xff] }
 0x422   :  { %1475 = vmatpush.msra.mxu2 %v1452_v9 }
 0x423   :  { %1335 = vmatpush.msra.mxu1 %v3989_v30  ;;  %v1449_v30 = vld [vmem:[#allocation8 + $0x138] sm:$0xff] }
 0x424   :  { %1476 = vmatpush.msra.mxu2 %v1449_v30  ;;  %v4100_v30 = vpop.permute.xlu1 %1162 }
 0x425   :  { %1336 = vmatpush.msra.mxu1 %v3994_v16  ;;  %v1446_v16 = vld [vmem:[#allocation8 + $0x120] sm:$0xff]  ;;  %vm1164_vm13 = vcmp.eq.s32.totalorder %v4100_v30, 1 }
 0x426   :  { %1477 = vmatpush.msra.mxu2 %v1446_v16 }
 0x427   :  { %1337 = vmatpush.msra.mxu1 %v3999_v55 }
 0x429   :  { %1338 = vmatpush.msra.mxu1 %v4004_v59  ;;  %v1443_v59 = vld [vmem:[#allocation8 + $0x108] sm:$0xff] }
 0x42a   :  { %1478 = vmatpush.msra.mxu2 %v1443_v59 }
 0x42b   :  { %1339 = vmatpush.msra.mxu1 %v4009_v41  ;;  %v5023_v41 = vld [vmem:[#allocation28_spill] sm:$0xff] }
 0x42c   :  { %5026 = vst [vmem:[#allocation28_spill] sm:$0xff] %v4100_v30 }
 0x42d   :  { %1340 = vmatpush.msra.mxu1 %v4014_v20 }
 0x42f   :  { %1341 = vmatpush.msra.mxu1 %v4019_v62  ;;  %v1440_v62 = vld [vmem:[#allocation8 + $0xf0] sm:$0xff] }
 0x430   :  { %1479 = vmatpush.msra.mxu2 %v1440_v62  ;;  %v4123_v62 = vld [vmem:[#allocation9 + $0x150] sm:$0xff] }
 0x431   :  { %1342 = vmatpush.msra.mxu1 %v4024_v1 }
 0x433   :  { %1343 = vmatpush.msra.mxu1 %v4029_v0  ;;  %v1437_v0 = vld [vmem:[#allocation8 + $0xd8] sm:$0xff] }
 0x434   :  { %1480 = vmatpush.msra.mxu2 %v1437_v0  ;;  %v4129_v0 = vld [vmem:[#allocation9 + $0x120] sm:$0xff] }
 0x435   :  { %1344 = vmatpush.msra.mxu1 %v4034_v13 }
 0x437   :  { %1345 = vmatpush.msra.mxu1 %v4039_v18  ;;  %v1434_v18 = vld [vmem:[#allocation8 + $0xc0] sm:$0xff] }
 0x438   :  { %1481 = vmatpush.msra.mxu2 %v1434_v18  ;;  %v1457_v18 = vld [vmem:[#allocation8 + $0x178] sm:$0xff] }
 0x439   :  { %1346 = vmatpush.msra.mxu1 %v4044_v24  ;;  %v5024_v24 = vld [vmem:[#allocation22_spill] sm:$0xff] }
 0x43b   :  { %1347 = vmatpush.msra.mxu1 %v4049_v29 }
 0x43d   :  { %1348 = vmatpush.msra.mxu1 %v4054_v32  ;;  %v1431_v32 = vld [vmem:[#allocation8 + $0xa8] sm:$0xff] }
 0x43e   :  { %1482 = vmatpush.msra.mxu2 %v1431_v32  ;;  %v1454_v32 = vld [vmem:[#allocation8 + $0x160] sm:$0xff] }
 0x440   :  { %1483 = vmatpush.msra.mxu2 %v1428_v44  ;;  %v1450_v44 = vld [vmem:[#allocation8 + $0x140] sm:$0xff] }
 0x442   :  { %1484 = vmatpush.msra.mxu2 %v1425_v49  ;;  %v1447_v49 = vld [vmem:[#allocation8 + $0x128] sm:$0xff] }
 0x444   :  { %1485 = vmatpush.msra.mxu2 %v1422_v36  ;;  %v1448_v36 = vld [vmem:[#allocation8 + $0x130] sm:$0xff] }
 0x446   :  { %1486 = vmatpush.msra.mxu2 %v1419_v50  ;;  %v4141_v50 = vld [vmem:[#allocation9 + $0xc0] sm:$0xff] }
 0x448   :  { %1487 = vmatpush.msra.mxu2 %v1416_v52 }
 0x44a   :  { %1488 = vmatpush.msra.mxu2 %v1413_v37  ;;  %v1445_v37 = vld [vmem:[#allocation8 + $0x118] sm:$0xff] }
 0x44c   :  { %1489 = vmatpush.msra.mxu2 %v1410_v58  ;;  %v5027_v58 = vld [vmem:[#allocation29_spill] sm:$0xff] }
 0x49b   :  { %v1068_v55 = vpop.f32.mrf.mxu1 }
 0x49c   :  { %v1111_v20 = vadd.f32 %v1068_v55, %v5023_v41 }
 0x49e   :  { %v2742_v1 = vmul.f32 -1.442695, %v1111_v20  ;;  %v4120_v20 = vld [vmem:[#allocation9 + $0x168] sm:$0xff] }
 0x4a0   :  { %2840 = vpow2.f32 %v2742_v1  ;;  %v4126_v1 = vld [vmem:[#allocation9 + $0x138] sm:$0xff] }
 0x4a1   :  { %v1088_v13 = vpop.f32.mrf.mxu2 }
 0x4a2   :  { %v1131_v29 = vadd.f32 %v1088_v13, %v5024_v24  ;;  %v1108_v38 = vpop.f32.mrf.mxu3  ;;  %v1456_v13 = vld [vmem:[#allocation8 + $0x170] sm:$0xff]  ;;  %v4132_v24 = vld [vmem:[#allocation9 + $0x108] sm:$0xff] }
 0x4a3   :  { %v1151_v11 = vadd.f32 %v4096_v63, %v1108_v38  ;;  %1515 = vmatpush.msrb.mxu3 %v1456_v13  ;;  %v4167_v13 = vld [vmem:[#allocation9] sm:$0xff] }
 0x4a4   :  { %v2743_v35 = vmul.f32 -1.442695, %v1131_v29  ;;  %v1453_v29 = vld [vmem:[#allocation8 + $0x158] sm:$0xff]  ;;  %5030 = vst [vmem:[#allocation18_spill] sm:$0xff] %v4167_v13 }
 0x4a5   :  { %1516 = vmatpush.msrb.mxu3 %v1453_v29  ;;  %v1421_v29 = vld [vmem:[#allocation8 + $0x58] sm:$0xff] }
 0x4a6   :  { %v2841_v23 = vpop.eup %2840  ;;  %2842 = vpow2.f32 %v2743_v35  ;;  %v4135_v35 = vld [vmem:[#allocation9 + $0xf0] sm:$0xff] }
 0x4a7   :  { %v1115_v48 = vadd.f32 1.0, %v2841_v23  ;;  %v1451_v23 = vld [vmem:[#allocation8 + $0x148] sm:$0xff]  ;;  %1517 = vmatpush.msrb.mxu3 %v1450_v44  ;;  %v1418_v44 = vld [vmem:[#allocation8 + $0x40] sm:$0xff] }
 0x4a9   :  { %2844 = vrcp.f32 %v1115_v48  ;;  %v1127_v6 = vand.u32 2147483648, %v1115_v48  ;;  %v1125_v47 = vand.u32 2147483647, %v1115_v48  ;;  %vm1121_vm3 = vweird.f32 %v1115_v48  ;;  %1518 = vmatpush.msrb.mxu3 %v1447_v49 }
 0x4ab   :  { %v1128_v45 = vor.u32 1.1754944e-38, %v1127_v6  ;;  %vm1126_vm6 = vcmp.eq.f32.partialorder %v1125_v47, 8.507059e+37  ;;  %v1442_v47 = vld [vmem:[#allocation8 + $0x100] sm:$0xff] }
 0x4ac   :  { %v2843_v53 = vpop.eup %2842 }
 0x4ad   :  { %v1135_v54 = vadd.f32 1.0, %v2843_v53 }
 0x4af   :  { %v2845_v57 = vpop.eup %2844  ;;  %2846 = vrcp.f32 %v1135_v54  ;;  %v1147_v12 = vand.u32 2147483648, %v1135_v54  ;;  %v1145_v25 = vand.u32 2147483647, %v1135_v54  ;;  %vm1141_vm9 = vweird.f32 %v1135_v54 }
 0x4b0   :  { %v1117_v2 = vmul.f32 %v2845_v57, %v1115_v48  ;;  %vm1122_vm2 = vweird.f32 %v2845_v57  ;;  %v4138_v48 = vld [vmem:[#allocation9 + $0xd8] sm:$0xff] }
 0x4b1   :  { %vm1123_vm4 = vmor %vm1121_vm3, %vm1122_vm2  ;;  %v1148_v31 = vor.u32 1.1754944e-38, %v1147_v12  ;;  %vm1146_vm12 = vcmp.eq.f32.partialorder %v1145_v25, 8.507059e+37  ;;  %v1433_v12 = vld [vmem:[#allocation8 + $0xb8] sm:$0xff] }
 0x4b2   :  { %v1118_v3 = vsub.f32 1.0, %v1117_v2  ;;  %v1429_v25 = vld [vmem:[#allocation8 + $0x98] sm:$0xff] }
 0x4b4   :  { %v1119_v10 = vmul.f32 %v2845_v57, %v1118_v3  ;;  %v5028_v3 = vld [vmem:[#allocation20_spill] sm:$0xff] }
 0x4b5   :  { %v2847_v15 = vpop.eup %2846 }
 0x4b6   :  { %v1137_v17 = vmul.f32 %v2847_v15, %v1135_v54  ;;  %v1120_v7 = vadd.f32 %v2845_v57, %v1119_v10  ;;  %vm1142_vm7 = vweird.f32 %v2847_v15  ;;  %v1444_v54 = vld [vmem:[#allocation8 + $0x110] sm:$0xff]  ;;  %v1441_v10 = vld [vmem:[#allocation8 + $0xf8] sm:$0xff] }
 0x4b7   :  { %vm1143_vm10 = vmor %vm1141_vm9, %vm1142_vm7  ;;  %1519 = vmatpush.msrb.mxu3 %v1444_v54 }
 0x4b8   :  { %v1138_v40 = vsub.f32 1.0, %v1137_v17  ;;  %v1124_v61 = vsel %vm1123_vm4, %v2845_v57, %v1120_v7  ;;  %v4144_v57 = vld [vmem:[#allocation9 + $0xa8] sm:$0xff]  ;;  %v1438_v7 = vld [vmem:[#allocation8 + $0xe0] sm:$0xff] }
 0x4b9   :  { %v1129_v46 = vsel %vm1126_vm6, %v1128_v45, %v1124_v61  ;;  %1520 = vmatpush.msrb.mxu3 %v1441_v10  ;;  %v1439_v45 = vld [vmem:[#allocation8 + $0xe8] sm:$0xff] }
 0x4ba   :  { %v1139_v14 = vmul.f32 %v2847_v15, %v1138_v40  ;;  %v1152_v26 = vmul.f32 %v1151_v11, %v1129_v46  ;;  %v4152_v40 = vld [vmem:[#allocation9 + $0x78] sm:$0xff]  ;;  %v1435_v61 = vld [vmem:[#allocation8 + $0xc8] sm:$0xff]  ;;  %v1436_v11 = vld [vmem:[#allocation8 + $0xd0] sm:$0xff] }
 0x4bb   :  { %1521 = vmatpush.msrb.mxu3 %v1438_v7  ;;  %v4155_v46 = vld [vmem:[#allocation9 + $0x60] sm:$0xff] }
 0x4bc   :  { %v1140_v39 = vadd.f32 %v2847_v15, %v1139_v14  ;;  %v1153_v8 = vadd.f32 %v1152_v26, %v5025_v19  ;;  %v1432_v14 = vld [vmem:[#allocation8 + $0xb0] sm:$0xff]  ;;  %v4158_v26 = vld [vmem:[#allocation9 + $0x48] sm:$0xff] }
 0x4bd   :  { %1522 = vmatpush.msrb.mxu3 %v1435_v61  ;;  %v4161_v19 = vld [vmem:[#allocation9 + $0x30] sm:$0xff] }
 0x4be   :  { %v1144_v33 = vsel %vm1143_vm10, %v2847_v15, %v1140_v39  ;;  %2848 = vtanh.f32 %v1153_v8  ;;  %v4149_v15 = vld [vmem:[#allocation9 + $0x90] sm:$0xff]  ;;  %v1430_v39 = vld [vmem:[#allocation8 + $0xa0] sm:$0xff] }
 0x4bf   :  { %v1149_v34 = vsel %vm1146_vm12, %v1148_v31, %v1144_v33  ;;  %1523 = vmatpush.msrb.mxu3 %v1432_v14 }
 0x4c0   :  { %v1155_v43 = vsub.f32 1.0, %v1149_v34  ;;  %v1157_v55 = vmul.f32 %v1149_v34, %v4070_v51  ;;  %v1426_v34 = vld [vmem:[#allocation8 + $0x80] sm:$0xff] }
 0x4c1   :  { %1524 = vmatpush.msrb.mxu3 %v1429_v25 }
 0x4c3   :  { %1525 = vmatpush.msrb.mxu3 %v1426_v34 }
 0x4c4   :  { %v2849_v9 = vpop.eup %2848 }
 0x4c5   :  { %v1156_v16 = vmul.f32 %v2849_v9, %v1155_v43  ;;  %v1427_v43 = vld [vmem:[#allocation8 + $0x88] sm:$0xff]  ;;  %v4164_v9 = vld [vmem:[#allocation9 + $0x18] sm:$0xff] }
 0x4c6   :  { %5029 = vst [vmem:[#allocation22_spill] sm:$0xff] %v4164_v9 }
 0x4c7   :  { %v1158_v59 = vadd.f32 %v1157_v55, %v1156_v16  ;;  %v1423_v55 = vld [vmem:[#allocation8 + $0x68] sm:$0xff] }
 0x4c8   :  { %1526 = vmatpush.msrb.mxu3 %v1423_v55 }
 0x4c9   :  { %v4107_v41 = vsel %vm1164_vm13, %v1158_v59, %v4070_v51  ;;  %v1424_v59 = vld [vmem:[#allocation8 + $0x70] sm:$0xff] }
 0x4ca   :  { %1188 = vmatmul.f32.vlgmr.msrb.gmra.mxu0 %v4107_v41  ;;  %1208 = vmatmul.f32.vlgmr.msrb.gmra.mxu1 %v4107_v41 }
 0x4cb   :  { %1228 = vmatmul.f32.vlgmr.msrb.gmra.mxu2 %v4107_v41  ;;  %1673 = vmatpush.msrb.mxu1 %v4120_v20 }
 0x4cc   :  { %1556 = vmatpush.msrb.mxu0 %v1457_v18  ;;  %v1420_v18 = vld [vmem:[#allocation8 + $0x50] sm:$0xff] }
 0x4cd   :  { %1674 = vmatpush.msrb.mxu1 %v4123_v62  ;;  %1527 = vmatpush.msrb.mxu3 %v1420_v18 }
 0x4ce   :  { %1557 = vmatpush.msrb.mxu0 %v1454_v32  ;;  %v1417_v32 = vld [vmem:[#allocation8 + $0x38] sm:$0xff] }
 0x4cf   :  { %1675 = vmatpush.msrb.mxu1 %v4126_v1  ;;  %1528 = vmatpush.msrb.mxu3 %v1417_v32 }
 0x4d0   :  { %1558 = vmatpush.msrb.mxu0 %v1451_v23 }
 0x4d1   :  { %1676 = vmatpush.msrb.mxu1 %v4129_v0 }
 0x4d2   :  { %1559 = vmatpush.msrb.mxu0 %v1448_v36 }
 0x4d3   :  { %2769 = vmatmul.msk.f32.vlgmr.msra.gmra.mxu2 %vm560_vm8, %v3688_v5  ;;  %1677 = vmatpush.msrb.mxu1 %v4132_v24 }
 0x4d4   :  { %1560 = vmatpush.msrb.mxu0 %v1445_v37 }
 0x4d5   :  { %1678 = vmatpush.msrb.mxu1 %v4135_v35 }
 0x4d6   :  { %1561 = vmatpush.msrb.mxu0 %v1442_v47 }
 0x4d7   :  { %1679 = vmatpush.msrb.mxu1 %v4138_v48 }
 0x4d8   :  { %1562 = vmatpush.msrb.mxu0 %v1439_v45 }
 0x4d9   :  { %1680 = vmatpush.msrb.mxu1 %v4141_v50 }
 0x4da   :  { %1563 = vmatpush.msrb.mxu0 %v1436_v11 }
 0x4db   :  { %1493 = vmatmul.f32.gmra.mxu2 %v3782_v27  ;;  %1681 = vmatpush.msrb.mxu1 %v4144_v57 }
 0x4dc   :  { %1564 = vmatpush.msrb.mxu0 %v1433_v12 }
 0x4dd   :  { %1682 = vmatpush.msrb.mxu1 %v4149_v15 }
 0x4de   :  { %1565 = vmatpush.msrb.mxu0 %v1430_v39 }
 0x4df   :  { %1683 = vmatpush.msrb.mxu1 %v4152_v40 }
 0x4e0   :  { %1566 = vmatpush.msrb.mxu0 %v1427_v43 }
 0x4e1   :  { %1684 = vmatpush.msrb.mxu1 %v4155_v46 }
 0x4e2   :  { %1567 = vmatpush.msrb.mxu0 %v1424_v59 }
 0x4e3   :  { %1496 = vmatmul.f32.gmra.mxu2 %v3878_v22  ;;  %1685 = vmatpush.msrb.mxu1 %v4158_v26 }
 0x4e4   :  { %1568 = vmatpush.msrb.mxu0 %v1421_v29  ;;  %v4172_v29 = vpop.permute.xlu2 %1283 }
 0x4e5   :  { %1686 = vmatpush.msrb.mxu1 %v4161_v19  ;;  %5032 = vst [vmem:[#allocation29_spill] sm:$0xff] %v4172_v29  ;;  %vm1285_vm10 = vcmp.eq.s32.totalorder %v4172_v29, 1  ;;  %v4383_v29 = vld [vmem:[#allocation9 + $0x10] sm:$0xff] }
 0x4e6   :  { %1569 = vmatpush.msrb.mxu0 %v1418_v44  ;;  %5041 = vst [vmem:[#allocation32_spill] sm:$0xff] %v4383_v29 }
 0x4e7   :  { %1687 = vmatpush.msrb.mxu1 %v4164_v9 }
 0x4e9   :  { %1688 = vmatpush.msrb.mxu1 %v4167_v13 }
 0x4eb   :  { %1499 = vmatmul.f32.gmra.mxu2 %v3974_v60 }
 0x4f3   :  { %1502 = vmatmul.f32.gmra.mxu2 %v4070_v51 }
 0x4fb   :  { %1505 = vmatmul.f32.gmra.mxu2 %v4107_v41 }
 0x547   :  { %v1189_v52 = vpop.f32.mrf.mxu0  ;;  %v1209_v53 = vpop.f32.mrf.mxu1 }
 0x548   :  { %v1232_v2 = vadd.f32 %v1189_v52, %v5027_v58  ;;  %v1252_v6 = vadd.f32 %v1209_v53, %v5028_v3  ;;  %v1414_v52 = vld [vmem:[#allocation8 + $0x20] sm:$0xff]  ;;  %v1415_v53 = vld [vmem:[#allocation8 + $0x28] sm:$0xff] }
 0x549   :  { %1529 = vmatpush.msrb.mxu3 %v1414_v52  ;;  %1570 = vmatpush.msrb.mxu0 %v1415_v53  ;;  %v1411_v58 = vld [vmem:[#allocation8 + $0x8] sm:$0xff]  ;;  %v4191_v52 = vld [vmem:[#allocation9 + $0x140] sm:$0xff] }
 0x54a   :  { %v2744_v38 = vmul.f32 -1.442695, %v1232_v2  ;;  %v2745_v17 = vmul.f32 -1.442695, %v1252_v6  ;;  %v1412_v2 = vld [vmem:[#allocation8 + $0x10] sm:$0xff]  ;;  %v4196_v53 = vld [vmem:[#allocation9 + $0x128] sm:$0xff] }
 0x54b   :  { %1530 = vmatpush.msrb.mxu3 %v1411_v58  ;;  %1571 = vmatpush.msrb.mxu0 %v1412_v2  ;;  %v4212_v58 = vld [vmem:[#allocation9 + $0xf8] sm:$0xff]  ;;  %v4216_v2 = vld [vmem:[#allocation9 + $0xe0] sm:$0xff] }
 0x54c   :  { %2850 = vpow2.f32 %v2744_v38 }
 0x54d   :  { %2852 = vpow2.f32 %v2745_v17 }
 0x54e   :  { %v1229_v17 = vpop.f32.mrf.mxu2 }
 0x54f   :  { %v1272_v11 = vadd.f32 %v4096_v63, %v1229_v17  ;;  %v4255_v17 = vld [vmem:[#allocation9 + $0x178] sm:$0xff] }
 0x550   :  { %1713 = vmatpush.msrb.mxu2 %v4255_v17 }
 0x552   :  { %v2851_v8 = vpop.eup %2850 }
 0x553   :  { %v2853_v31 = vpop.eup %2852  ;;  %v1236_v33 = vadd.f32 1.0, %v2851_v8 }
 0x554   :  { %v1256_v16 = vadd.f32 1.0, %v2853_v31  ;;  %v5031_v31 = vld [vmem:[#allocation23_spill] sm:$0xff] }
 0x555   :  { %2854 = vrcp.f32 %v1236_v33  ;;  %v1248_v6 = vand.u32 2147483648, %v1236_v33  ;;  %v1246_v47 = vand.u32 2147483647, %v1236_v33  ;;  %vm1242_vm15 = vweird.f32 %v1236_v33 }
 0x556   :  { %2856 = vrcp.f32 %v1256_v16  ;;  %v1268_v25 = vand.u32 2147483648, %v1256_v16  ;;  %vm1262_vm6 = vweird.f32 %v1256_v16  ;;  %v1266_v8 = vand.u32 2147483647, %v1256_v16 }
 0x557   :  { %v1249_v45 = vor.u32 1.1754944e-38, %v1248_v6  ;;  %vm1247_vm3 = vcmp.eq.f32.partialorder %v1246_v47, 8.507059e+37  ;;  %v4232_v6 = vld [vmem:[#allocation9 + $0x98] sm:$0xff]  ;;  %v4242_v47 = vld [vmem:[#allocation9 + $0x68] sm:$0xff] }
 0x558   :  { %v1269_v55 = vor.u32 1.1754944e-38, %v1268_v25  ;;  %vm1267_vm9 = vcmp.eq.f32.partialorder %v1266_v8, 8.507059e+37  ;;  %v5037_v8 = vld [vmem:[#allocation30_spill] sm:$0xff] }
 0x55b   :  { %v2855_v23 = vpop.eup %2854 }
 0x55c   :  { %v2857_v49 = vpop.eup %2856  ;;  %v1238_v36 = vmul.f32 %v2855_v23, %v1236_v33  ;;  %vm1243_vm14 = vweird.f32 %v2855_v23 }
 0x55d   :  { %v1258_v54 = vmul.f32 %v2857_v49, %v1256_v16  ;;  %vm1244_vm2 = vmor %vm1242_vm15, %vm1243_vm14  ;;  %vm1263_vm4 = vweird.f32 %v2857_v49 }
 0x55e   :  { %v1239_v37 = vsub.f32 1.0, %v1238_v36  ;;  %vm1264_vm7 = vmor %vm1262_vm6, %vm1263_vm4  ;;  %v4187_v36 = vld [vmem:[#allocation9 + $0x158] sm:$0xff] }
 0x55f   :  { %v1259_v3 = vsub.f32 1.0, %v1258_v54  ;;  %v4201_v54 = vld [vmem:[#allocation9 + $0x110] sm:$0xff] }
 0x560   :  { %v1240_v10 = vmul.f32 %v2855_v23, %v1239_v37  ;;  %v5033_v37 = vmov 0.0  }
 0x561   :  { %v1260_v38 = vmul.f32 %v2857_v49, %v1259_v3  ;;  %v4221_v3 = vld [vmem:[#allocation9 + $0xc8] sm:$0xff] }
 0x562   :  { %v1241_v7 = vadd.f32 %v2855_v23, %v1240_v10  ;;  %v4237_v10 = vld [vmem:[#allocation9 + $0x80] sm:$0xff] }
 0x563   :  { %v1261_v14 = vadd.f32 %v2857_v49, %v1260_v38  ;;  %v4253_v38 = vld [vmem:[#allocation9 + $0x38] sm:$0xff] }
 0x564   :  { %v1245_v61 = vsel %vm1244_vm2, %v2855_v23, %v1241_v7  ;;  %v4260_v7 = vld [vmem:[#allocation9 + $0x20] sm:$0xff] }
 0x565   :  { %v1250_v12 = vsel %vm1247_vm3, %v1249_v45, %v1245_v61  ;;  %v1265_v43 = vsel %vm1264_vm7, %v2857_v49, %v1261_v14  ;;  %v4181_v49 = vld [vmem:[#allocation9 + $0x170] sm:$0xff]  ;;  %5034 = vst [vmem:[#allocation20_spill] sm:$0xff] %v4260_v7  ;;  %v4265_v45 = vld [vmem:[#allocation9 + $0x8] sm:$0xff] }
 0x566   :  { %v1273_v39 = vmul.f32 %v1272_v11, %v1250_v12  ;;  %v1270_v33 = vsel %vm1267_vm9, %v1269_v55, %v1265_v43  ;;  %5035 = vst [vmem:[#allocation23_spill] sm:$0xff] %v4265_v45  ;;  %v4317_v14 = vld [vmem:[#allocation9 + $0x130] sm:$0xff]  ;;  %v4319_v12 = vld [vmem:[#allocation9 + $0x118] sm:$0xff] }
 0x567   :  { %v1276_v59 = vsub.f32 1.0, %v1270_v33  ;;  %v1278_v44 = vmul.f32 %v1270_v33, %v4107_v41  ;;  %v4334_v55 = vld [vmem:[#allocation9 + $0xd0] sm:$0xff] }
 0x568   :  { %v1274_v34 = vadd.f32 %v1273_v39, %v5031_v31  ;;  %v4323_v39 = vld [vmem:[#allocation9 + $0x100] sm:$0xff] }
 0x56a   :  { %2858 = vtanh.f32 %v1274_v34  ;;  %v4329_v34 = vld [vmem:[#allocation9 + $0xe8] sm:$0xff] }
 0x570   :  { %v2859_v18 = vpop.eup %2858 }
 0x571   :  { %v1277_v32 = vmul.f32 %v2859_v18, %v1276_v59  ;;  %v4341_v18 = vld [vmem:[#allocation9 + $0xb8] sm:$0xff] }
 0x573   :  { %v1279_v23 = vadd.f32 %v1278_v44, %v1277_v32  ;;  %v4351_v44 = vld [vmem:[#allocation9 + $0xa0] sm:$0xff] }
 0x575   :  { %v4179_v16 = vsel %vm1285_vm10, %v1279_v23, %v4107_v41 }
 0x576   :  { %1309 = vmatmul.f32.vlgmr.msra.gmra.mxu3 %v4179_v16  ;;  %1329 = vmatmul.f32.vlgmr.msra.gmra.mxu0 %v4179_v16 }
 0x577   :  { %1349 = vmatmul.f32.vlgmr.msra.gmra.mxu1 %v4179_v16  ;;  %1508 = vmatmul.f32.gmra.mxu2 %v4179_v16 }
 0x578   :  { %1693 = vmatpush.msra.mxu1 %v4181_v49  ;;  %1788 = vmatpush.msra.mxu3 %v4120_v20 }
 0x579   :  { %1808 = vmatpush.msra.mxu0 %v4181_v49 }
 0x57a   :  { %1694 = vmatpush.msra.mxu1 %v4187_v36  ;;  %1789 = vmatpush.msra.mxu3 %v4123_v62 }
 0x57b   :  { %1809 = vmatpush.msra.mxu0 %v4187_v36 }
 0x57c   :  { %1695 = vmatpush.msra.mxu1 %v4191_v52  ;;  %1790 = vmatpush.msra.mxu3 %v4126_v1 }
 0x57d   :  { %1810 = vmatpush.msra.mxu0 %v4191_v52 }
 0x57e   :  { %1696 = vmatpush.msra.mxu1 %v4196_v53  ;;  %2770 = vmatmul.msk.f32.vlgmr.msrb.gmra.mxu3 %vm560_vm8, %v3688_v5 }
 0x57f   :  { %2771 = vmatmul.msk.f32.vlgmr.msrb.gmra.mxu0 %vm560_vm8, %v3688_v5  ;;  %1689 = vmatmul.f32.vlgmr.msrb.gmra.mxu1 %v5033_v37  ;;  %v4226_v5 = vld [vmem:[#allocation9 + $0xb0] sm:$0xff] }
 0x580   :  { %1697 = vmatpush.msra.mxu1 %v4201_v54  ;;  %1791 = vmatpush.msra.mxu3 %v4129_v0 }
 0x581   :  { %1811 = vmatpush.msra.mxu0 %v4196_v53 }
 0x582   :  { %1698 = vmatpush.msra.mxu1 %v4212_v58  ;;  %1792 = vmatpush.msra.mxu3 %v4132_v24 }
 0x583   :  { %1812 = vmatpush.msra.mxu0 %v4201_v54 }
 0x584   :  { %1699 = vmatpush.msra.mxu1 %v4216_v2  ;;  %1793 = vmatpush.msra.mxu3 %v4135_v35 }
 0x585   :  { %1813 = vmatpush.msra.mxu0 %v4212_v58 }
 0x586   :  { %1700 = vmatpush.msra.mxu1 %v4221_v3  ;;  %1534 = vmatmul.f32.gmra.mxu3 %v3782_v27 }
 0x587   :  { %1575 = vmatmul.f32.gmra.mxu0 %v3782_v27  ;;  %1794 = vmatpush.msra.mxu3 %v4138_v48  ;;  %v4247_v27 = vld [vmem:[#allocation9 + $0x50] sm:$0xff] }
 0x588   :  { %1701 = vmatpush.msra.mxu1 %v4226_v5  ;;  %1814 = vmatpush.msra.mxu0 %v4216_v2 }
 0x589   :  { %1795 = vmatpush.msra.mxu3 %v4141_v50 }
 0x58a   :  { %1702 = vmatpush.msra.mxu1 %v4232_v6  ;;  %1815 = vmatpush.msra.mxu0 %v4221_v3 }
 0x58b   :  { %1796 = vmatpush.msra.mxu3 %v4144_v57 }
 0x58c   :  { %1703 = vmatpush.msra.mxu1 %v4237_v10  ;;  %1816 = vmatpush.msra.mxu0 %v4226_v5 }
 0x58d   :  { %1797 = vmatpush.msra.mxu3 %v4149_v15 }
 0x58e   :  { %1704 = vmatpush.msra.mxu1 %v4242_v47  ;;  %1537 = vmatmul.f32.gmra.mxu3 %v3878_v22 }
 0x58f   :  { %1578 = vmatmul.f32.gmra.mxu0 %v3878_v22  ;;  %1798 = vmatpush.msra.mxu3 %v4152_v40  ;;  %v4306_v22 = vld [vmem:[#allocation9 + $0x160] sm:$0xff] }
 0x590   :  { %1705 = vmatpush.msra.mxu1 %v4247_v27  ;;  %1817 = vmatpush.msra.mxu0 %v4232_v6 }
 0x591   :  { %1799 = vmatpush.msra.mxu3 %v4155_v46  ;;  %1714 = vmatpush.msrb.mxu2 %v4306_v22 }
 0x592   :  { %1706 = vmatpush.msra.mxu1 %v4253_v38  ;;  %1818 = vmatpush.msra.mxu0 %v4237_v10 }
 0x593   :  { %1800 = vmatpush.msra.mxu3 %v4158_v26 }
 0x594   :  { %1707 = vmatpush.msra.mxu1 %v4260_v7  ;;  %1819 = vmatpush.msra.mxu0 %v4242_v47 }
 0x595   :  { %1801 = vmatpush.msra.mxu3 %v4161_v19 }
 0x596   :  { %1708 = vmatpush.msra.mxu1 %v4265_v45  ;;  %1540 = vmatmul.f32.gmra.mxu3 %v3974_v60 }
 0x597   :  { %1709 = vmatmul.f32.vlgmr.msra.gmra.mxu1 %v5033_v37  ;;  %1581 = vmatmul.f32.gmra.mxu0 %v3974_v60  ;;  %v4308_v60 = vld [vmem:[#allocation9 + $0x148] sm:$0xff] }
 0x598   :  { %1828 = vmatpush.msrb.mxu1 %v4255_v17  ;;  %1802 = vmatpush.msra.mxu3 %v4164_v9 }
 0x599   :  { %1820 = vmatpush.msra.mxu0 %v4247_v27  ;;  %1715 = vmatpush.msrb.mxu2 %v4308_v60 }
 0x59a   :  { %1803 = vmatpush.msra.mxu3 %v4167_v13  ;;  %1829 = vmatpush.msrb.mxu1 %v4306_v22 }
 0x59b   :  { %1821 = vmatpush.msra.mxu0 %v4253_v38  ;;  %1716 = vmatpush.msrb.mxu2 %v4317_v14 }
 0x59c   :  { %1920 = vmatpush.msrb.mxu3 %v4181_v49  ;;  %1830 = vmatpush.msrb.mxu1 %v4308_v60 }
 0x59d   :  { %1822 = vmatpush.msra.mxu0 %v4260_v7  ;;  %1717 = vmatpush.msrb.mxu2 %v4319_v12 }
 0x59e   :  { %1921 = vmatpush.msrb.mxu3 %v4187_v36  ;;  %1831 = vmatpush.msrb.mxu1 %v4317_v14 }
 0x59f   :  { %1543 = vmatmul.f32.gmra.mxu3 %v4070_v51  ;;  %1584 = vmatmul.f32.gmra.mxu0 %v4070_v51 }
 0x5a0   :  { %1922 = vmatpush.msrb.mxu3 %v4191_v52  ;;  %1823 = vmatpush.msra.mxu0 %v4265_v45 }
 0x5a1   :  { %1832 = vmatpush.msrb.mxu1 %v4319_v12  ;;  %1718 = vmatpush.msrb.mxu2 %v4323_v39 }
 0x5a2   :  { %1940 = vmatpush.msrb.mxu0 %v4255_v17  ;;  %1923 = vmatpush.msrb.mxu3 %v4196_v53 }
 0x5a3   :  { %1833 = vmatpush.msrb.mxu1 %v4323_v39  ;;  %1719 = vmatpush.msrb.mxu2 %v4329_v34 }
 0x5a4   :  { %1924 = vmatpush.msrb.mxu3 %v4201_v54  ;;  %1941 = vmatpush.msrb.mxu0 %v4306_v22 }
 0x5a5   :  { %1834 = vmatpush.msrb.mxu1 %v4329_v34  ;;  %1720 = vmatpush.msrb.mxu2 %v4334_v55 }
 0x5a6   :  { %1925 = vmatpush.msrb.mxu3 %v4212_v58  ;;  %1942 = vmatpush.msrb.mxu0 %v4308_v60 }
 0x5a7   :  { %1546 = vmatmul.f32.gmra.mxu3 %v4107_v41  ;;  %1587 = vmatmul.f32.gmra.mxu0 %v4107_v41  ;;  %v5036_v41 = vld [vmem:[#allocation19_spill] sm:$0xff] }
 0x5a8   :  { %1926 = vmatpush.msrb.mxu3 %v4216_v2  ;;  %1943 = vmatpush.msrb.mxu0 %v4317_v14 }
 0x5a9   :  { %1835 = vmatpush.msrb.mxu1 %v4334_v55  ;;  %1721 = vmatpush.msrb.mxu2 %v4341_v18 }
 0x5aa   :  { %1927 = vmatpush.msrb.mxu3 %v4221_v3  ;;  %1944 = vmatpush.msrb.mxu0 %v4319_v12 }
 0x5ab   :  { %1836 = vmatpush.msrb.mxu1 %v4341_v18  ;;  %1722 = vmatpush.msrb.mxu2 %v4351_v44 }
 0x5ac   :  { %1928 = vmatpush.msrb.mxu3 %v4226_v5  ;;  %1945 = vmatpush.msrb.mxu0 %v4323_v39 }
 0x5ad   :  { %1837 = vmatpush.msrb.mxu1 %v4351_v44 }
 0x5ae   :  { %1929 = vmatpush.msrb.mxu3 %v4232_v6  ;;  %1946 = vmatpush.msrb.mxu0 %v4329_v34 }
 0x5af   :  { %1549 = vmatmul.f32.gmra.mxu3 %v4179_v16  ;;  %1590 = vmatmul.f32.gmra.mxu0 %v4179_v16 }
 0x5b0   :  { %1930 = vmatpush.msrb.mxu3 %v4237_v10  ;;  %1947 = vmatpush.msrb.mxu0 %v4334_v55 }
 0x5b2   :  { %1931 = vmatpush.msrb.mxu3 %v4242_v47  ;;  %1948 = vmatpush.msrb.mxu0 %v4341_v18 }
 0x5b4   :  { %1932 = vmatpush.msrb.mxu3 %v4247_v27  ;;  %1949 = vmatpush.msrb.mxu0 %v4351_v44 }
 0x5b6   :  { %1933 = vmatpush.msrb.mxu3 %v4253_v38 }
 0x5b8   :  { %1934 = vmatpush.msrb.mxu3 %v4260_v7 }
 0x5ba   :  { %1935 = vmatpush.msrb.mxu3 %v4265_v45 }
 0x5f3   :  { %v1330_v51 = vpop.f32.mrf.mxu0 }
 0x5f4   :  { %v1373_v61 = vadd.f32 %v1330_v51, %v5036_v41  ;;  %v4355_v51 = vld [vmem:[#allocation9 + $0x88] sm:$0xff] }
 0x5f5   :  { %1723 = vmatpush.msrb.mxu2 %v4355_v51  ;;  %1838 = vmatpush.msrb.mxu1 %v4355_v51 }
 0x5f6   :  { %v2747_v11 = vmul.f32 -1.442695, %v1373_v61  ;;  %v4362_v61 = vld [vmem:[#allocation9 + $0x70] sm:$0xff]  ;;  %1950 = vmatpush.msrb.mxu0 %v4355_v51 }
 0x5f7   :  { %1724 = vmatpush.msrb.mxu2 %v4362_v61  ;;  %1839 = vmatpush.msrb.mxu1 %v4362_v61 }
 0x5f8   :  { %2860 = vpow2.f32 %v2747_v11  ;;  %v4367_v11 = vld [vmem:[#allocation9 + $0x58] sm:$0xff]  ;;  %1951 = vmatpush.msrb.mxu0 %v4362_v61 }
 0x5f9   :  { %v1310_v25 = vpop.f32.mrf.mxu3  ;;  %5038 = vst [vmem:[#allocation19_spill] sm:$0xff] %v4367_v11  ;;  %1725 = vmatpush.msrb.mxu2 %v4367_v11  ;;  %1840 = vmatpush.msrb.mxu1 %v4367_v11 }
 0x5fa   :  { %v1353_v31 = vadd.f32 %v1310_v25, %v5037_v8  ;;  %v4374_v8 = vld [vmem:[#allocation9 + $0x40] sm:$0xff]  ;;  %1952 = vmatpush.msrb.mxu0 %v4367_v11 }
 0x5fb   :  { %5039 = vst [vmem:[#allocation30_spill] sm:$0xff] %v4374_v8  ;;  %1726 = vmatpush.msrb.mxu2 %v4374_v8  ;;  %1841 = vmatpush.msrb.mxu1 %v4374_v8 }
 0x5fc   :  { %v2746_v43 = vmul.f32 -1.442695, %v1353_v31  ;;  %1953 = vmatpush.msrb.mxu0 %v4374_v8 }
 0x5fe   :  { %v2861_v33 = vpop.eup %2860  ;;  %2862 = vpow2.f32 %v2746_v43 }
 0x5ff   :  { %v4339_v59 = vadd.f32 1.0, %v2861_v33  ;;  %v4379_v33 = vld [vmem:[#allocation9 + $0x28] sm:$0xff] }
 0x600   :  { %5040 = vst [vmem:[#allocation31_spill] sm:$0xff] %v4379_v33  ;;  %1727 = vmatpush.msrb.mxu2 %v4379_v33  ;;  %1842 = vmatpush.msrb.mxu1 %v4379_v33 }
 0x601   :  { %2864 = vrcp.f32 %v4339_v59  ;;  %1954 = vmatpush.msrb.mxu0 %v4379_v33  ;;  %vm1383_vm4 = vweird.f32 %v4339_v59 }
 0x602   :  { %1728 = vmatpush.msrb.mxu2 %v4383_v29  ;;  %1843 = vmatpush.msrb.mxu1 %v4383_v29 }
 0x603   :  { %1955 = vmatpush.msrb.mxu0 %v4383_v29 }
 0x604   :  { %v2863_v32 = vpop.eup %2862  ;;  %1900 = vmatpush.msra.mxu2 %v4120_v20  ;;  %2012 = vmatpush.msra.mxu1 %v4120_v20 }
 0x605   :  { %v1357_v23 = vadd.f32 1.0, %v2863_v32 }
 0x606   :  { %1901 = vmatpush.msra.mxu2 %v4123_v62  ;;  %2013 = vmatpush.msra.mxu1 %v4123_v62 }
 0x607   :  { %2866 = vrcp.f32 %v1357_v23  ;;  %v4360_v41 = vpop.eup %2864  ;;  %v1369_v28 = vand.u32 2147483648, %v1357_v23  ;;  %v1367_v21 = vand.u32 2147483647, %v1357_v23  ;;  %vm1363_vm14 = vweird.f32 %v1357_v23 }
 0x608   :  { %v1379_v25 = vmul.f32 %v4360_v41, %v4339_v59  ;;  %1902 = vmatpush.msra.mxu2 %v4126_v1  ;;  %vm1384_vm3 = vweird.f32 %v4360_v41  ;;  %2014 = vmatpush.msra.mxu1 %v4126_v1 }
 0x609   :  { %v1370_v33 = vor.u32 1.1754944e-38, %v1369_v28  ;;  %vm1368_vm2 = vcmp.eq.f32.partialorder %v1367_v21, 8.507059e+37  ;;  %v1387_v28 = vand.u32 2147483647, %v4339_v59  ;;  %vm1385_vm6 = vmor %vm1383_vm4, %vm1384_vm3  ;;  %v5042_v21 = vld [vmem:[#allocation21_spill] sm:$0xff] }
 0x60a   :  { %v1380_v32 = vsub.f32 1.0, %v1379_v25  ;;  %v1350_v25 = vpop.f32.mrf.mxu1  ;;  %1903 = vmatpush.msra.mxu2 %v4129_v0  ;;  %2015 = vmatpush.msra.mxu1 %v4129_v0 }
 0x60b   :  { %vm1388_vm7 = vcmp.eq.f32.partialorder %v1387_v28, 8.507059e+37 }
 0x60c   :  { %v1381_v56 = vmul.f32 %v4360_v41, %v1380_v32  ;;  %1904 = vmatpush.msra.mxu2 %v4132_v24  ;;  %2016 = vmatpush.msra.mxu1 %v4132_v24 }
 0x60d   :  { %v2867_v31 = vpop.eup %2866 }
 0x60e   :  { %v1359_v43 = vmul.f32 %v2867_v31, %v1357_v23  ;;  %vm1364_vm12 = vweird.f32 %v2867_v31  ;;  %v1382_v11 = vadd.f32 %v4360_v41, %v1381_v56  ;;  %1905 = vmatpush.msra.mxu2 %v4135_v35  ;;  %2017 = vmatpush.msra.mxu1 %v4135_v35 }
 0x60f   :  { %vm1365_vm15 = vmor %vm1363_vm14, %vm1364_vm12 }
 0x610   :  { %v1360_v30 = vsub.f32 1.0, %v1359_v43  ;;  %v1386_v56 = vsel %vm1385_vm6, %v4360_v41, %v1382_v11  ;;  %1906 = vmatpush.msra.mxu2 %v4138_v48  ;;  %2018 = vmatpush.msra.mxu1 %v4138_v48  ;;  %v4416_v11 = vpop.permute.xlu0 %1404 }
 0x611   :  { %5043 = vst [vmem:[#allocation21_spill] sm:$0xff] %v4416_v11  ;;  %vm1406_vm9 = vcmp.eq.s32.totalorder %v4416_v11, 1 }
 0x612   :  { %v1361_v4 = vmul.f32 %v2867_v31, %v1360_v30  ;;  %v1393_v30 = vadd.f32 %v4096_v63, %v1350_v25  ;;  %1907 = vmatpush.msra.mxu2 %v4141_v50  ;;  %2019 = vmatpush.msra.mxu1 %v4141_v50 }
 0x614   :  { %v1362_v43 = vadd.f32 %v2867_v31, %v1361_v4  ;;  %v1389_v4 = vand.u32 2147483648, %v4339_v59  ;;  %1908 = vmatpush.msra.mxu2 %v4144_v57  ;;  %2020 = vmatpush.msra.mxu1 %v4144_v57 }
 0x616   :  { %v1366_v8 = vsel %vm1365_vm15, %v2867_v31, %v1362_v43  ;;  %1909 = vmatpush.msra.mxu2 %v4149_v15  ;;  %2021 = vmatpush.msra.mxu1 %v4149_v15  ;;  %v1458_v43 = vld [vmem:[%s4945_s6] sm:$0x7] }
 0x617   :  { %v1371_v29 = vsel %vm1368_vm2, %v1370_v33, %v1366_v8  ;;  %v1390_v8 = vor.u32 1.1754944e-38, %v1389_v4  ;;  %v4462_v4 = vperm.slane %v1458_v43, 0 }
 0x618   :  { %v1394_v23 = vmul.f32 %v1393_v30, %v1371_v29  ;;  %1910 = vmatpush.msra.mxu2 %v4152_v40  ;;  %2022 = vmatpush.msra.mxu1 %v4152_v40 }
 0x619   :  { %v1391_v29 = vsel %vm1388_vm7, %v1390_v8, %v1386_v56  ;;  %5046 = vst [vmem:[#allocation35_spill] sm:$0xff] %v4462_v4  ;;  %v1532_v56 = vpop.f32.mrf.mxu3 }
 0x61a   :  { %v1395_v63 = vadd.f32 %v1394_v23, %v5042_v21  ;;  %v1397_v59 = vsub.f32 1.0, %v1391_v29  ;;  %v1399_v33 = vmul.f32 %v1391_v29, %v4179_v16  ;;  %1911 = vmatpush.msra.mxu2 %v4155_v46  ;;  %2023 = vmatpush.msra.mxu1 %v4155_v46  ;;  %v1690_v23 = vpop.f32.mrf.mxu1 }
 0x61c   :  { %2868 = vtanh.f32 %v1395_v63  ;;  %1912 = vmatpush.msra.mxu2 %v4158_v26  ;;  %2024 = vmatpush.msra.mxu1 %v4158_v26  ;;  %v4465_v63 = vperm.slane %v1458_v43, 1 }
 0x61e   :  { %1913 = vmatpush.msra.mxu2 %v4161_v19  ;;  %2025 = vmatpush.msra.mxu1 %v4161_v19  ;;  %5047 = vst [vmem:[#allocation36_spill] sm:$0xff] %v4465_v63 }
 0x620   :  { %1914 = vmatpush.msra.mxu2 %v4164_v9  ;;  %2026 = vmatpush.msra.mxu1 %v4164_v9 }
 0x622   :  { %v2869_v41 = vpop.eup %2868  ;;  %1915 = vmatpush.msra.mxu2 %v4167_v13  ;;  %2027 = vmatpush.msra.mxu1 %v4167_v13 }
 0x623   :  { %v1398_v31 = vmul.f32 %v2869_v41, %v1397_v59  ;;  %v1710_v59 = vpop.f32.mrf.mxu1  ;;  %v1533_v41 = vadd.f32 %v1532_v56, %v4465_v63 }
 0x625   :  { %v1400_v32 = vadd.f32 %v1399_v33, %v1398_v31  ;;  %v1753_v31 = vadd.f32 %v1710_v59, %v1533_v41 }
 0x627   :  { %v1407_v25 = vsel %vm1406_vm9, %v1400_v32, %v4179_v16  ;;  %v1491_v16 = vpop.f32.mrf.mxu2  ;;  %v2749_v33 = vmul.f32 -1.442695, %v1753_v31 }
 0x628   :  { %1511 = vmatmul.f32.gmra.mxu2 %v1407_v25  ;;  %1552 = vmatmul.f32.gmra.mxu3 %v1407_v25  ;;  %v1492_v28 = vadd.f32 %v1491_v16, %v4462_v4  ;;  %v1573_v4 = vpop.f32.mrf.mxu0 }
 0x629   :  { %1593 = vmatmul.f32.gmra.mxu0 %v1407_v25 }
 0x62a   :  { %v1733_v21 = vadd.f32 %v1690_v23, %v1492_v28 }
 0x62c   :  { %v2748_v29 = vmul.f32 -1.442695, %v1733_v21 }
 0x62e   :  { %2870 = vpow2.f32 %v2748_v29 }
 0x62f   :  { %2872 = vpow2.f32 %v2749_v33 }
 0x630   :  { %1729 = vmatmul.f32.vlgmr.msrb.gmra.mxu2 %v5033_v37  ;;  %v4455_v37 = vpop.f32.mrf.mxu2 }
 0x631   :  { %2032 = vmatpush.msrb.mxu2 %v4181_v49  ;;  %5044 = vst [vmem:[#allocation33_spill] sm:$0xff] %v4455_v37 }
 0x633   :  { %2033 = vmatpush.msrb.mxu2 %v4187_v36 }
 0x634   :  { %v2871_v25 = vpop.eup %2870 }
 0x635   :  { %2034 = vmatpush.msrb.mxu2 %v4191_v52  ;;  %v1737_v11 = vadd.f32 1.0, %v2871_v25 }
 0x637   :  { %2035 = vmatpush.msrb.mxu2 %v4196_v53  ;;  %2874 = vrcp.f32 %v1737_v11  ;;  %v1749_v33 = vand.u32 2147483648, %v1737_v11  ;;  %vm1743_vm14 = vweird.f32 %v1737_v11  ;;  %v1747_v25 = vand.u32 2147483647, %v1737_v11 }
 0x638   :  { %v4460_v30 = vpop.f32.mrf.mxu2 }
 0x639   :  { %2036 = vmatpush.msrb.mxu2 %v4201_v54  ;;  %5045 = vst [vmem:[#allocation34_spill] sm:$0xff] %v4460_v30  ;;  %v2873_v30 = vpop.eup %2872  ;;  %v1750_v63 = vor.u32 1.1754944e-38, %v1749_v33  ;;  %vm1748_vm2 = vcmp.eq.f32.partialorder %v1747_v25, 8.507059e+37 }
 0x63a   :  { %v1757_v23 = vadd.f32 1.0, %v2873_v30  ;;  %v4481_v30 = vld [vmem:[%s4947_s8] ss:$0 sm:$0xff] }
 0x63b   :  { %2037 = vmatpush.msrb.mxu2 %v4212_v58 }
 0x63c   :  { %2876 = vrcp.f32 %v1757_v23  ;;  %vm1763_vm4 = vweird.f32 %v1757_v23 }
 0x63d   :  { %2038 = vmatpush.msrb.mxu2 %v4216_v2  ;;  %v2875_v28 = vpop.eup %2874 }
 0x63e   :  { %vm1744_vm12 = vweird.f32 %v2875_v28 }
 0x63f   :  { %2039 = vmatpush.msrb.mxu2 %v4221_v3  ;;  %vm1745_vm15 = vmor %vm1743_vm14, %vm1744_vm12 }
 0x640   :  { %v4467_v8 = vpop.f32.mrf.mxu2 }
 0x641   :  { %2040 = vmatpush.msrb.mxu2 %v4226_v5  ;;  %5048 = vst [vmem:[#allocation37_spill] sm:$0xff] %v4467_v8  ;;  %v1739_v8 = vmul.f32 %v2875_v28, %v1737_v11 }
 0x642   :  { %v2877_v37 = vpop.eup %2876 }
 0x643   :  { %2041 = vmatpush.msrb.mxu2 %v4232_v6  ;;  %v1740_v56 = vsub.f32 1.0, %v1739_v8  ;;  %v1759_v59 = vmul.f32 %v2877_v37, %v1757_v23  ;;  %vm1764_vm3 = vweird.f32 %v2877_v37 }
 0x644   :  { %vm1765_vm6 = vmor %vm1763_vm4, %vm1764_vm3 }
 0x645   :  { %2042 = vmatpush.msrb.mxu2 %v4237_v10  ;;  %v1741_v29 = vmul.f32 %v2875_v28, %v1740_v56  ;;  %v1760_v31 = vsub.f32 1.0, %v1759_v59 }
 0x647   :  { %2043 = vmatpush.msrb.mxu2 %v4242_v47 }
 0x648   :  { %v4470_v32 = vpop.f32.mrf.mxu2 }
 0x649   :  { %2044 = vmatpush.msrb.mxu2 %v4247_v27  ;;  %5049 = vst [vmem:[#allocation38_spill] sm:$0xff] %v4470_v32  ;;  %v1742_v32 = vadd.f32 %v2875_v28, %v1741_v29 }
 0x64b   :  { %2045 = vmatpush.msrb.mxu2 %v4253_v38  ;;  %v1746_v8 = vsel %vm1745_vm15, %v2875_v28, %v1742_v32 }
 0x64d   :  { %2046 = vmatpush.msrb.mxu2 %v4260_v7  ;;  %v1767_v7 = vand.u32 2147483647, %v1757_v23 }
 0x64f   :  { %2047 = vmatpush.msrb.mxu2 %v4265_v45  ;;  %v1769_v45 = vand.u32 2147483648, %v1757_v23  ;;  %vm1768_vm7 = vcmp.eq.f32.partialorder %v1767_v7, 8.507059e+37 }
 0x650   :  { %v4472_v16 = vpop.f32.mrf.mxu2 }
 0x651   :  { %5050 = vst [vmem:[#allocation39_spill] sm:$0xff] %v4472_v16  ;;  %v1761_v16 = vmul.f32 %v2877_v37, %v1760_v31  ;;  %v1770_v9 = vor.u32 1.1754944e-38, %v1769_v45 }
 0x653   :  { %v1762_v29 = vadd.f32 %v2877_v37, %v1761_v16 }
 0x658   :  { %v4474_v21 = vpop.f32.mrf.mxu2 }
 0x659   :  { %5051 = vst [vmem:[#allocation40_spill] sm:$0xff] %v4474_v21  ;;  %v4483_v21 = vperm.slane %v1458_v43, 2  ;;  %v1766_v43 = vsel %vm1765_vm6, %v2877_v37, %v1762_v29 }
 0x65a   :  { %v1771_v32 = vsel %vm1768_vm7, %v1770_v9, %v1766_v43  ;;  %v5071_v43 = vld [vmem:[#allocation33_spill] sm:$0xff] }
 0x65b   :  { %v1574_v11 = vadd.f32 %v1573_v4, %v4483_v21  ;;  %v1780_v28 = vsub.f32 1.0, %v1771_v32 }
 0x6ab   :  { %v4476_v41 = vpop.f32.mrf.mxu2 }
 0x6ac   :  { %5052 = vst [vmem:[#allocation41_spill] sm:$0xff] %v4476_v41  ;;  %v1751_v41 = vsel %vm1748_vm2, %v1750_v63, %v1746_v8 }
 0x6b3   :  { %v1730_v56 = vpop.f32.mrf.mxu2 }
 0x6b4   :  { %v1776_v59 = vadd.f32 %v4481_v30, %v1730_v56  ;;  %v1782_v56 = vmul.f32 0.0, %v1771_v32 }
 0x6b6   :  { %v1777_v13 = vmul.f32 %v1776_v59, %v1751_v41  ;;  %v5069_v41 = vld [vmem:[#allocation36_spill] sm:$0xff] }
 0x6b8   :  { %v1778_v31 = vadd.f32 %v1777_v13, %v1574_v11 }
 0x6ba   :  { %2878 = vtanh.f32 %v1778_v31  ;;  %v5070_v31 = vld [vmem:[#allocation35_spill] sm:$0xff] }
 0x6bb   :  { %v1495_v32 = vadd.f32 %v5071_v43, %v5070_v31 }
 0x6c0   :  { %v2879_v33 = vpop.eup %2878 }
 0x6c1   :  { %v1781_v25 = vmul.f32 %v2879_v33, %v1780_v28 }
 0x6c3   :  { %v4487_v16 = vadd.f32 %v1782_v56, %v1781_v25 }
 0x6c5   :  { %2750 = vmatmul.msk.f32.vlgmr.msra.gmra.mxu3 %vm560_vm8, %v4487_v16  ;;  %2751 = vmatmul.msk.f32.vlgmr.msra.gmra.mxu0 %vm560_vm8, %v4487_v16 }
 0x6c6   :  { %2752 = vmatmul.msk.f32.vlgmr.msrb.gmra.mxu1 %vm560_vm8, %v4487_v16  ;;  %2052 = vmatpush.msra.mxu3 %v4255_v17 }
 0x6c7   :  { %2124 = vmatpush.msra.mxu0 %v4120_v20  ;;  %2144 = vmatpush.msrb.mxu1 %v4181_v49  ;;  %v5053_v20 = vld [vmem:[#allocation19_spill] sm:$0xff] }
 0x6c8   :  { %2053 = vmatpush.msra.mxu3 %v4306_v22 }
 0x6c9   :  { %2125 = vmatpush.msra.mxu0 %v4123_v62  ;;  %2145 = vmatpush.msrb.mxu1 %v4187_v36  ;;  %v5054_v62 = vld [vmem:[#allocation30_spill] sm:$0xff] }
 0x6ca   :  { %2054 = vmatpush.msra.mxu3 %v4308_v60 }
 0x6cb   :  { %2126 = vmatpush.msra.mxu0 %v4126_v1  ;;  %2146 = vmatpush.msrb.mxu1 %v4191_v52  ;;  %v5055_v1 = vld [vmem:[#allocation31_spill] sm:$0xff] }
 0x6cc   :  { %2055 = vmatpush.msra.mxu3 %v4317_v14 }
 0x6cd   :  { %2127 = vmatpush.msra.mxu0 %v4129_v0  ;;  %2147 = vmatpush.msrb.mxu1 %v4196_v53  ;;  %v5056_v0 = vld [vmem:[#allocation22_spill] sm:$0xff] }
 0x6ce   :  { %2056 = vmatpush.msra.mxu3 %v4319_v12 }
 0x6cf   :  { %2128 = vmatpush.msra.mxu0 %v4132_v24  ;;  %2148 = vmatpush.msrb.mxu1 %v4201_v54  ;;  %v5057_v24 = vld [vmem:[#allocation20_spill] sm:$0xff] }
 0x6d0   :  { %2057 = vmatpush.msra.mxu3 %v4323_v39 }
 0x6d1   :  { %2129 = vmatpush.msra.mxu0 %v4135_v35  ;;  %2149 = vmatpush.msrb.mxu1 %v4212_v58  ;;  %v5058_v35 = vld [vmem:[#allocation32_spill] sm:$0xff] }
 0x6d2   :  { %2058 = vmatpush.msra.mxu3 %v4329_v34 }
 0x6d3   :  { %2130 = vmatpush.msra.mxu0 %v4138_v48  ;;  %2150 = vmatpush.msrb.mxu1 %v4216_v2  ;;  %v5059_v48 = vld [vmem:[#allocation18_spill] sm:$0xff] }
 0x6d4   :  { %2059 = vmatpush.msra.mxu3 %v4334_v55 }
 0x6d5   :  { %2131 = vmatpush.msra.mxu0 %v4141_v50  ;;  %2151 = vmatpush.msrb.mxu1 %v4221_v3  ;;  %v5060_v50 = vld [vmem:[#allocation23_spill] sm:$0xff] }
 0x6d6   :  { %2060 = vmatpush.msra.mxu3 %v4341_v18 }
 0x6d7   :  { %2132 = vmatpush.msra.mxu0 %v4144_v57  ;;  %2152 = vmatpush.msrb.mxu1 %v4226_v5  ;;  %v1576_v57 = vpop.f32.mrf.mxu0 }
 0x6d8   :  { %2061 = vmatpush.msra.mxu3 %v4351_v44 }
 0x6d9   :  { %2133 = vmatpush.msra.mxu0 %v4149_v15  ;;  %2153 = vmatpush.msrb.mxu1 %v4232_v6  ;;  %v1535_v15 = vpop.f32.mrf.mxu3 }
 0x6da   :  { %2062 = vmatpush.msra.mxu3 %v4355_v51  ;;  %v1536_v8 = vadd.f32 %v1535_v15, %v5069_v41 }
 0x6db   :  { %2134 = vmatpush.msra.mxu0 %v4152_v40  ;;  %2154 = vmatpush.msrb.mxu1 %v4237_v10 }
 0x6dc   :  { %2063 = vmatpush.msra.mxu3 %v4362_v61 }
 0x6dd   :  { %2135 = vmatpush.msra.mxu0 %v4155_v46  ;;  %2155 = vmatpush.msrb.mxu1 %v4242_v47 }
 0x6de   :  { %2064 = vmatpush.msra.mxu3 %v5053_v20 }
 0x6df   :  { %2136 = vmatpush.msra.mxu0 %v4158_v26  ;;  %2156 = vmatpush.msrb.mxu1 %v4247_v27  ;;  %v4546_v40 = vpop.f32.mrf.mxu0 }
 0x6e0   :  { %2065 = vmatpush.msra.mxu3 %v5054_v62 }
 0x6e1   :  { %2137 = vmatpush.msra.mxu0 %v4161_v19  ;;  %2157 = vmatpush.msrb.mxu1 %v4253_v38  ;;  %v4548_v46 = vpop.f32.mrf.mxu3 }
 0x6e2   :  { %2066 = vmatpush.msra.mxu3 %v5055_v1 }
 0x6e3   :  { %2138 = vmatpush.msra.mxu0 %v5056_v0  ;;  %2158 = vmatpush.msrb.mxu1 %v5057_v24 }
 0x6e4   :  { %2067 = vmatpush.msra.mxu3 %v5058_v35 }
 0x6e5   :  { %2139 = vmatpush.msra.mxu0 %v5059_v48  ;;  %2159 = vmatpush.msrb.mxu1 %v5060_v50 }
 0x6e7   :  { %v4550_v26 = vpop.f32.mrf.mxu0 }
 0x6e9   :  { %v4552_v19 = vpop.f32.mrf.mxu3 }
 0x6ef   :  { %v4554_v9 = vpop.f32.mrf.mxu0 }
 0x6f0   :  { %5061 = vst [vmem:[#allocation19_spill] sm:$0xff] %v4554_v9 }
 0x6f1   :  { %v4556_v13 = vpop.f32.mrf.mxu3 }
 0x6f2   :  { %5062 = vst [vmem:[#allocation30_spill] sm:$0xff] %v4556_v13 }
 0x6f7   :  { %v4558_v7 = vpop.f32.mrf.mxu0 }
 0x6f8   :  { %5063 = vst [vmem:[#allocation31_spill] sm:$0xff] %v4558_v7 }
 0x6f9   :  { %v4560_v45 = vpop.f32.mrf.mxu3 }
 0x6fa   :  { %5064 = vst [vmem:[#allocation22_spill] sm:$0xff] %v4560_v45 }
 0x6ff   :  { %v4562_v37 = vpop.f32.mrf.mxu0 }
 0x700   :  { %5065 = vst [vmem:[#allocation20_spill] sm:$0xff] %v4562_v37 }
 0x701   :  { %v4564_v4 = vpop.f32.mrf.mxu3 }
 0x702   :  { %5066 = vst [vmem:[#allocation32_spill] sm:$0xff] %v4564_v4 }
 0x707   :  { %v4566_v63 = vpop.f32.mrf.mxu0 }
 0x708   :  { %5067 = vst [vmem:[#allocation18_spill] sm:$0xff] %v4566_v63 }
 0x709   :  { %v4568_v23 = vpop.f32.mrf.mxu3 }
 0x70a   :  { %5068 = vst [vmem:[#allocation23_spill] sm:$0xff] %v4568_v23 }
 0x742   :  { %v1825_v59 = vpop.f32.mrf.mxu0 }
 0x743   :  { %v1868_v29 = vadd.f32 %v1825_v59, %v1536_v8 }
 0x745   :  { %v2754_v11 = vmul.f32 -1.442695, %v1868_v29 }
 0x747   :  { %2880 = vpow2.f32 %v2754_v11 }
 0x748   :  { %v1805_v28 = vpop.f32.mrf.mxu3 }
 0x749   :  { %v1848_v33 = vadd.f32 %v1805_v28, %v1495_v32  ;;  %v1845_v32 = vpop.f32.mrf.mxu1 }
 0x74b   :  { %v2753_v25 = vmul.f32 -1.442695, %v1848_v33 }
 0x74d   :  { %v2881_v56 = vpop.eup %2880  ;;  %2882 = vpow2.f32 %v2753_v25  ;;  %v1888_v25 = vadd.f32 %v4481_v30, %v1845_v32 }
 0x74e   :  { %v1872_v0 = vadd.f32 1.0, %v2881_v56 }
 0x750   :  { %2884 = vrcp.f32 %v1872_v0  ;;  %v1884_v9 = vand.u32 2147483648, %v1872_v0  ;;  %vm1878_vm4 = vweird.f32 %v1872_v0 }
 0x753   :  { %v2883_v48 = vpop.eup %2882 }
 0x754   :  { %v1852_v63 = vadd.f32 1.0, %v2883_v48 }
 0x756   :  { %2886 = vrcp.f32 %v1852_v63  ;;  %v2885_v23 = vpop.eup %2884  ;;  %v1864_v29 = vand.u32 2147483648, %v1852_v63  ;;  %v1862_v11 = vand.u32 2147483647, %v1852_v63  ;;  %vm1858_vm14 = vweird.f32 %v1852_v63 }
 0x757   :  { %v1874_v37 = vmul.f32 %v2885_v23, %v1872_v0  ;;  %vm1879_vm3 = vweird.f32 %v2885_v23 }
 0x758   :  { %v1865_v33 = vor.u32 1.1754944e-38, %v1864_v29  ;;  %vm1863_vm2 = vcmp.eq.f32.partialorder %v1862_v11, 8.507059e+37  ;;  %vm1880_vm6 = vmor %vm1878_vm4, %vm1879_vm3 }
 0x759   :  { %v1875_v8 = vsub.f32 1.0, %v1874_v37  ;;  %v1577_v37 = vadd.f32 %v1576_v57, %v4483_v21 }
 0x75b   :  { %v1876_v43 = vmul.f32 %v2885_v23, %v1875_v8 }
 0x75c   :  { %v2887_v15 = vpop.eup %2886 }
 0x75d   :  { %v1854_v4 = vmul.f32 %v2887_v15, %v1852_v63  ;;  %vm1859_vm12 = vweird.f32 %v2887_v15  ;;  %v1877_v45 = vadd.f32 %v2885_v23, %v1876_v43 }
 0x75e   :  { %vm1860_vm15 = vmor %vm1858_vm14, %vm1859_vm12 }
 0x75f   :  { %v1855_v59 = vsub.f32 1.0, %v1854_v4  ;;  %v1881_v13 = vsel %vm1880_vm6, %v2885_v23, %v1877_v45 }
 0x761   :  { %v1856_v7 = vmul.f32 %v2887_v15, %v1855_v59  ;;  %v1882_v59 = vand.u32 2147483647, %v1872_v0 }
 0x763   :  { %v1857_v28 = vadd.f32 %v2887_v15, %v1856_v7  ;;  %v1885_v7 = vor.u32 1.1754944e-38, %v1884_v9  ;;  %vm1883_vm7 = vcmp.eq.f32.partialorder %v1882_v59, 8.507059e+37  ;;  %v4586_v9 = vld [vmem:[#allocation9 + $0x168] sm:$0xff] }
 0x765   :  { %v1861_v56 = vsel %vm1860_vm15, %v2887_v15, %v1857_v28  ;;  %v1886_v63 = vsel %vm1883_vm7, %v1885_v7, %v1881_v13  ;;  %v1784_v15 = vsel %vm560_vm8, %v4487_v16, 0.0  ;;  %v4596_v16 = vld [vmem:[#allocation9 + $0x138] sm:$0xff] }
 0x766   :  { %v1866_v48 = vsel %vm1863_vm2, %v1865_v33, %v1861_v56  ;;  %v1892_v29 = vsub.f32 1.0, %v1886_v63  ;;  %v1894_v43 = vmul.f32 %v1886_v63, %v1784_v15 }
 0x767   :  { %v1889_v4 = vmul.f32 %v1888_v25, %v1866_v48 }
 0x769   :  { %v1890_v8 = vadd.f32 %v1889_v4, %v1577_v37 }
 0x76b   :  { %2888 = vtanh.f32 %v1890_v8 }
 0x771   :  { %v2889_v32 = vpop.eup %2888 }
 0x772   :  { %v1893_v11 = vmul.f32 %v2889_v32, %v1892_v29 }
 0x774   :  { %v1895_v57 = vadd.f32 %v1894_v43, %v1893_v11 }
 0x776   :  { %v4580_v33 = vsel %vm680_vm1, %v1895_v57, %v1784_v15 }
 0x777   :  { %1916 = vmatmul.f32.vlgmr.msra.gmra.mxu2 %v4580_v33  ;;  %1936 = vmatmul.f32.vlgmr.msrb.gmra.mxu3 %v4580_v33 }
 0x778   :  { %1956 = vmatmul.f32.vlgmr.msrb.gmra.mxu0 %v4580_v33  ;;  %2164 = vmatpush.msra.mxu2 %v4255_v17  ;;  %v4601_v17 = vld [vmem:[#allocation9 + $0x120] sm:$0xff] }
 0x779   :  { %2236 = vmatpush.msrb.mxu3 %v4586_v9  ;;  %2256 = vmatpush.msrb.mxu0 %v4181_v49  ;;  %v4606_v49 = vld [vmem:[#allocation9 + $0x108] sm:$0xff] }
 0x77a   :  { %2165 = vmatpush.msra.mxu2 %v4306_v22 }
 0x77b   :  { %2237 = vmatpush.msrb.mxu3 %v4591_v42  ;;  %2257 = vmatpush.msrb.mxu0 %v4187_v36  ;;  %v4611_v36 = vld [vmem:[#allocation9 + $0xf0] sm:$0xff] }
 0x77c   :  { %2166 = vmatpush.msra.mxu2 %v4308_v60 }
 0x77d   :  { %2238 = vmatpush.msrb.mxu3 %v4596_v16  ;;  %2258 = vmatpush.msrb.mxu0 %v4191_v52  ;;  %v4616_v52 = vld [vmem:[#allocation9 + $0xd8] sm:$0xff] }
 0x77e   :  { %2167 = vmatpush.msra.mxu2 %v4317_v14 }
 0x77f   :  { %2239 = vmatpush.msrb.mxu3 %v4601_v17  ;;  %2259 = vmatpush.msrb.mxu0 %v4196_v53  ;;  %v4621_v53 = vld [vmem:[#allocation9 + $0xc0] sm:$0xff] }
 0x780   :  { %2168 = vmatpush.msra.mxu2 %v4319_v12 }
 0x781   :  { %2240 = vmatpush.msrb.mxu3 %v4606_v49  ;;  %2260 = vmatpush.msrb.mxu0 %v4201_v54  ;;  %v4626_v54 = vld [vmem:[#allocation9 + $0xa8] sm:$0xff] }
 0x782   :  { %2169 = vmatpush.msra.mxu2 %v4323_v39 }
 0x783   :  { %2241 = vmatpush.msrb.mxu3 %v4611_v36  ;;  %2261 = vmatpush.msrb.mxu0 %v4212_v58  ;;  %v4631_v58 = vld [vmem:[#allocation9 + $0x90] sm:$0xff] }
 0x784   :  { %2170 = vmatpush.msra.mxu2 %v4329_v34 }
 0x785   :  { %2242 = vmatpush.msrb.mxu3 %v4616_v52  ;;  %2262 = vmatpush.msrb.mxu0 %v4216_v2  ;;  %v4636_v2 = vld [vmem:[#allocation9 + $0x78] sm:$0xff] }
 0x786   :  { %2171 = vmatpush.msra.mxu2 %v4334_v55 }
 0x787   :  { %2243 = vmatpush.msrb.mxu3 %v4621_v53  ;;  %2263 = vmatpush.msrb.mxu0 %v4221_v3  ;;  %v4641_v3 = vld [vmem:[#allocation9 + $0x60] sm:$0xff] }
 0x788   :  { %2172 = vmatpush.msra.mxu2 %v4341_v18 }
 0x789   :  { %2244 = vmatpush.msrb.mxu3 %v4626_v54  ;;  %2264 = vmatpush.msrb.mxu0 %v4226_v5  ;;  %v4646_v5 = vld [vmem:[#allocation9 + $0x48] sm:$0xff] }
 0x78a   :  { %2173 = vmatpush.msra.mxu2 %v4351_v44 }
 0x78b   :  { %2245 = vmatpush.msrb.mxu3 %v4631_v58  ;;  %2265 = vmatpush.msrb.mxu0 %v4232_v6  ;;  %v4651_v6 = vld [vmem:[#allocation9 + $0x30] sm:$0xff] }
 0x78c   :  { %2174 = vmatpush.msra.mxu2 %v4355_v51 }
 0x78d   :  { %2246 = vmatpush.msrb.mxu3 %v4636_v2  ;;  %2266 = vmatpush.msrb.mxu0 %v4237_v10  ;;  %v4656_v10 = vld [vmem:[#allocation9 + $0x18] sm:$0xff] }
 0x78e   :  { %2175 = vmatpush.msra.mxu2 %v4362_v61 }
 0x78f   :  { %2247 = vmatpush.msrb.mxu3 %v4641_v3  ;;  %2267 = vmatpush.msrb.mxu0 %v4242_v47  ;;  %v4661_v47 = vld [vmem:[#allocation9] sm:$0xff] }
 0x790   :  { %2176 = vmatpush.msra.mxu2 %v5053_v20 }
 0x791   :  { %2248 = vmatpush.msrb.mxu3 %v4646_v5  ;;  %2268 = vmatpush.msrb.mxu0 %v4247_v27  ;;  %v5073_v27 = vld [vmem:[#allocation34_spill] sm:$0xff] }
 0x792   :  { %2177 = vmatpush.msra.mxu2 %v5054_v62  ;;  %v1498_v13 = vadd.f32 %v5073_v27, %v5070_v31 }
 0x793   :  { %2249 = vmatpush.msrb.mxu3 %v4651_v6  ;;  %2269 = vmatpush.msrb.mxu0 %v4253_v38  ;;  %v1539_v38 = vadd.f32 %v4548_v46, %v5069_v41 }
 0x794   :  { %2178 = vmatpush.msra.mxu2 %v5055_v1 }
 0x795   :  { %2250 = vmatpush.msrb.mxu3 %v4656_v10  ;;  %2270 = vmatpush.msrb.mxu0 %v5057_v24 }
 0x796   :  { %2179 = vmatpush.msra.mxu2 %v5058_v35 }
 0x797   :  { %2251 = vmatpush.msrb.mxu3 %v4661_v47  ;;  %2271 = vmatpush.msrb.mxu0 %v5060_v50 }
 0x7f5   :  { %v1957_v43 = vpop.f32.mrf.mxu0 }
 0x7fa   :  { %v1917_v45 = vpop.f32.mrf.mxu2  ;;  %v1937_v23 = vpop.f32.mrf.mxu3 }
 0x7fb   :  { %v1960_v0 = vadd.f32 %v1917_v45, %v1498_v13  ;;  %v1980_v25 = vadd.f32 %v1937_v23, %v1539_v38  ;;  %v2000_v13 = vadd.f32 %v4481_v30, %v1957_v43  ;;  %v4700_v43 = vld [vmem:[#allocation9 + $0x128] sm:$0xff] }
 0x7fd   :  { %v2755_v56 = vmul.f32 -1.442695, %v1960_v0  ;;  %v2756_v24 = vmul.f32 -1.442695, %v1980_v25  ;;  %v1580_v0 = vadd.f32 %v4546_v40, %v4483_v21 }
 0x7ff   :  { %2890 = vpow2.f32 %v2755_v56 }
 0x800   :  { %2892 = vpow2.f32 %v2756_v24 }
 0x805   :  { %v2891_v48 = vpop.eup %2890 }
 0x806   :  { %v2893_v37 = vpop.eup %2892  ;;  %v1964_v4 = vadd.f32 1.0, %v2891_v48 }
 0x807   :  { %v1984_v59 = vadd.f32 1.0, %v2893_v37 }
 0x808   :  { %2894 = vrcp.f32 %v1964_v4  ;;  %v1976_v46 = vand.u32 2147483648, %v1964_v4  ;;  %v1974_v11 = vand.u32 2147483647, %v1964_v4  ;;  %vm1970_vm1 = vweird.f32 %v1964_v4 }
 0x809   :  { %2896 = vrcp.f32 %v1984_v59  ;;  %v1996_v56 = vand.u32 2147483648, %v1984_v59  ;;  %vm1990_vm2 = vweird.f32 %v1984_v59  ;;  %v1994_v24 = vand.u32 2147483647, %v1984_v59 }
 0x80a   :  { %v1977_v27 = vor.u32 1.1754944e-38, %v1976_v46  ;;  %vm1975_vm14 = vcmp.eq.f32.partialorder %v1974_v11, 8.507059e+37  ;;  %v4695_v11 = vld [vmem:[#allocation9 + $0x140] sm:$0xff] }
 0x80b   :  { %vm1995_vm4 = vcmp.eq.f32.partialorder %v1994_v24, 8.507059e+37 }
 0x80e   :  { %v2895_v50 = vpop.eup %2894 }
 0x80f   :  { %v2897_v8 = vpop.eup %2896  ;;  %v1966_v7 = vmul.f32 %v2895_v50, %v1964_v4  ;;  %vm1971_vm8 = vweird.f32 %v2895_v50  ;;  %v1997_v4 = vor.u32 1.1754944e-38, %v1996_v56 }
 0x810   :  { %v1986_v63 = vmul.f32 %v2897_v8, %v1984_v59  ;;  %vm1972_vm12 = vmor %vm1970_vm1, %vm1971_vm8  ;;  %vm1991_vm15 = vweird.f32 %v2897_v8  ;;  %v4681_v59 = vld [vmem:[#allocation9 + $0x178] sm:$0xff] }
 0x811   :  { %v1967_v29 = vsub.f32 1.0, %v1966_v7  ;;  %vm1992_vm3 = vmor %vm1990_vm2, %vm1991_vm15 }
 0x812   :  { %v1987_v32 = vsub.f32 1.0, %v1986_v63 }
 0x813   :  { %v1968_v15 = vmul.f32 %v2895_v50, %v1967_v29 }
 0x814   :  { %v1988_v57 = vmul.f32 %v2897_v8, %v1987_v32 }
 0x815   :  { %v1969_v28 = vadd.f32 %v2895_v50, %v1968_v15 }
 0x816   :  { %v1989_v23 = vadd.f32 %v2897_v8, %v1988_v57 }
 0x817   :  { %v1973_v38 = vsel %vm1972_vm12, %v2895_v50, %v1969_v28 }
 0x818   :  { %v1978_v45 = vsel %vm1975_vm14, %v1977_v27, %v1973_v38  ;;  %v1993_v37 = vsel %vm1992_vm3, %v2897_v8, %v1989_v23  ;;  %v4685_v8 = vld [vmem:[#allocation9 + $0x170] sm:$0xff] }
 0x819   :  { %v2001_v25 = vmul.f32 %v2000_v13, %v1978_v45  ;;  %v1998_v7 = vsel %vm1995_vm4, %v1997_v4, %v1993_v37  ;;  %v1542_v13 = vadd.f32 %v4552_v19, %v5069_v41 }
 0x81a   :  { %v2004_v63 = vsub.f32 1.0, %v1998_v7  ;;  %v2006_v46 = vmul.f32 %v1998_v7, %v4580_v33 }
 0x81b   :  { %v2002_v48 = vadd.f32 %v2001_v25, %v1580_v0 }
 0x81d   :  { %2898 = vtanh.f32 %v2002_v48 }
 0x823   :  { %v2899_v50 = vpop.eup %2898 }
 0x824   :  { %v2005_v29 = vmul.f32 %v2899_v50, %v2004_v63 }
 0x826   :  { %v2007_v32 = vadd.f32 %v2006_v46, %v2005_v29 }
 0x828   :  { %v4676_v40 = vsel %vm801_vm11, %v2007_v32, %v4580_v33  ;;  %v4690_v33 = vld [vmem:[#allocation9 + $0x158] sm:$0xff] }
 0x829   :  { %2028 = vmatmul.f32.vlgmr.msra.gmra.mxu1 %v4676_v40  ;;  %2048 = vmatmul.f32.vlgmr.msrb.gmra.mxu2 %v4676_v40 }
 0x82a   :  { %2068 = vmatmul.f32.vlgmr.msra.gmra.mxu3 %v4676_v40  ;;  %2276 = vmatpush.msra.mxu1 %v4681_v59 }
 0x82b   :  { %2348 = vmatpush.msrb.mxu2 %v4586_v9  ;;  %2368 = vmatpush.msra.mxu3 %v4685_v8 }
 0x82c   :  { %2277 = vmatpush.msra.mxu1 %v4306_v22  ;;  %v4705_v22 = vld [vmem:[#allocation9 + $0x110] sm:$0xff] }
 0x82d   :  { %2349 = vmatpush.msrb.mxu2 %v4591_v42  ;;  %2369 = vmatpush.msra.mxu3 %v4690_v33 }
 0x82e   :  { %2278 = vmatpush.msra.mxu1 %v4308_v60  ;;  %v4710_v60 = vld [vmem:[#allocation9 + $0xf8] sm:$0xff] }
 0x82f   :  { %2350 = vmatpush.msrb.mxu2 %v4596_v16  ;;  %2370 = vmatpush.msra.mxu3 %v4695_v11 }
 0x830   :  { %2279 = vmatpush.msra.mxu1 %v4317_v14  ;;  %v4715_v14 = vld [vmem:[#allocation9 + $0xe0] sm:$0xff] }
 0x831   :  { %2351 = vmatpush.msrb.mxu2 %v4601_v17  ;;  %2371 = vmatpush.msra.mxu3 %v4700_v43 }
 0x832   :  { %2280 = vmatpush.msra.mxu1 %v4319_v12  ;;  %v4720_v12 = vld [vmem:[#allocation9 + $0xc8] sm:$0xff] }
 0x833   :  { %2352 = vmatpush.msrb.mxu2 %v4606_v49  ;;  %2372 = vmatpush.msra.mxu3 %v4705_v22 }
 0x834   :  { %2281 = vmatpush.msra.mxu1 %v4323_v39  ;;  %v4725_v39 = vld [vmem:[#allocation9 + $0xb0] sm:$0xff] }
 0x835   :  { %2353 = vmatpush.msrb.mxu2 %v4611_v36  ;;  %2373 = vmatpush.msra.mxu3 %v4710_v60 }
 0x836   :  { %2282 = vmatpush.msra.mxu1 %v4329_v34  ;;  %v4730_v34 = vld [vmem:[#allocation9 + $0x98] sm:$0xff] }
 0x837   :  { %2354 = vmatpush.msrb.mxu2 %v4616_v52  ;;  %2374 = vmatpush.msra.mxu3 %v4715_v14 }
 0x838   :  { %2283 = vmatpush.msra.mxu1 %v4334_v55  ;;  %v4735_v55 = vld [vmem:[#allocation9 + $0x80] sm:$0xff] }
 0x839   :  { %2355 = vmatpush.msrb.mxu2 %v4621_v53  ;;  %2375 = vmatpush.msra.mxu3 %v4720_v12 }
 0x83a   :  { %2284 = vmatpush.msra.mxu1 %v4341_v18  ;;  %v4740_v18 = vld [vmem:[#allocation9 + $0x68] sm:$0xff] }
 0x83b   :  { %2356 = vmatpush.msrb.mxu2 %v4626_v54  ;;  %2376 = vmatpush.msra.mxu3 %v4725_v39 }
 0x83c   :  { %2285 = vmatpush.msra.mxu1 %v4351_v44  ;;  %v4745_v44 = vld [vmem:[#allocation9 + $0x50] sm:$0xff] }
 0x83d   :  { %2357 = vmatpush.msrb.mxu2 %v4631_v58  ;;  %2377 = vmatpush.msra.mxu3 %v4730_v34 }
 0x83e   :  { %2286 = vmatpush.msra.mxu1 %v4355_v51  ;;  %v4750_v51 = vld [vmem:[#allocation9 + $0x38] sm:$0xff] }
 0x83f   :  { %2358 = vmatpush.msrb.mxu2 %v4636_v2  ;;  %2378 = vmatpush.msra.mxu3 %v4735_v55 }
 0x840   :  { %2287 = vmatpush.msra.mxu1 %v4362_v61  ;;  %v4755_v61 = vld [vmem:[#allocation9 + $0x20] sm:$0xff] }
 0x841   :  { %2359 = vmatpush.msrb.mxu2 %v4641_v3  ;;  %2379 = vmatpush.msra.mxu3 %v4740_v18 }
 0x842   :  { %2288 = vmatpush.msra.mxu1 %v5053_v20  ;;  %v4760_v20 = vld [vmem:[#allocation9 + $0x8] sm:$0xff] }
 0x843   :  { %2360 = vmatpush.msrb.mxu2 %v4646_v5  ;;  %2380 = vmatpush.msra.mxu3 %v4745_v44 }
 0x844   :  { %2289 = vmatpush.msra.mxu1 %v5054_v62  ;;  %v5075_v62 = vld [vmem:[#allocation37_spill] sm:$0xff] }
 0x845   :  { %2361 = vmatpush.msrb.mxu2 %v4651_v6  ;;  %2381 = vmatpush.msra.mxu3 %v4750_v51  ;;  %v1501_v57 = vadd.f32 %v5075_v62, %v5070_v31 }
 0x846   :  { %2290 = vmatpush.msra.mxu1 %v5055_v1 }
 0x847   :  { %2362 = vmatpush.msrb.mxu2 %v4656_v10  ;;  %2382 = vmatpush.msra.mxu3 %v4755_v61 }
 0x848   :  { %2291 = vmatpush.msra.mxu1 %v5058_v35 }
 0x849   :  { %2363 = vmatpush.msrb.mxu2 %v4661_v47  ;;  %2383 = vmatpush.msra.mxu3 %v4760_v20 }
 0x8a6   :  { %v2029_v28 = vpop.f32.mrf.mxu1 }
 0x8a7   :  { %v2072_v27 = vadd.f32 %v2029_v28, %v1501_v57  ;;  %v1583_v28 = vadd.f32 %v4550_v26, %v4483_v21 }
 0x8a9   :  { %v2757_v1 = vmul.f32 -1.442695, %v2072_v27 }
 0x8ab   :  { %2900 = vpow2.f32 %v2757_v1 }
 0x8ac   :  { %v2049_v38 = vpop.f32.mrf.mxu2 }
 0x8ad   :  { %v2092_v45 = vadd.f32 %v2049_v38, %v1542_v13  ;;  %v2069_v19 = vpop.f32.mrf.mxu3 }
 0x8ae   :  { %v2112_v57 = vadd.f32 %v4481_v30, %v2069_v19 }
 0x8af   :  { %v2758_v23 = vmul.f32 -1.442695, %v2092_v45 }
 0x8b1   :  { %v2901_v35 = vpop.eup %2900  ;;  %2902 = vpow2.f32 %v2758_v23 }
 0x8b2   :  { %v2076_v0 = vadd.f32 1.0, %v2901_v35 }
 0x8b4   :  { %2904 = vrcp.f32 %v2076_v0  ;;  %v2088_v4 = vand.u32 2147483648, %v2076_v0  ;;  %v2086_v63 = vand.u32 2147483647, %v2076_v0  ;;  %vm2082_vm6 = vweird.f32 %v2076_v0 }
 0x8b6   :  { %v2089_v32 = vor.u32 1.1754944e-38, %v2088_v4  ;;  %vm2087_vm8 = vcmp.eq.f32.partialorder %v2086_v63, 8.507059e+37 }
 0x8b7   :  { %v2903_v25 = vpop.eup %2902 }
 0x8b8   :  { %v2096_v56 = vadd.f32 1.0, %v2903_v25 }
 0x8ba   :  { %v2905_v24 = vpop.eup %2904  ;;  %2906 = vrcp.f32 %v2096_v56  ;;  %v2108_v13 = vand.u32 2147483648, %v2096_v56  ;;  %v2106_v45 = vand.u32 2147483647, %v2096_v56  ;;  %vm2102_vm12 = vweird.f32 %v2096_v56 }
 0x8bb   :  { %v2078_v48 = vmul.f32 %v2905_v24, %v2076_v0  ;;  %vm2083_vm11 = vweird.f32 %v2905_v24 }
 0x8bc   :  { %vm2084_vm7 = vmor %vm2082_vm6, %vm2083_vm11  ;;  %v2109_v0 = vor.u32 1.1754944e-38, %v2108_v13  ;;  %vm2107_vm15 = vcmp.eq.f32.partialorder %v2106_v45, 8.507059e+37  ;;  %v5079_v45 = vld [vmem:[#allocation19_spill] sm:$0xff] }
 0x8bd   :  { %v2079_v37 = vsub.f32 1.0, %v2078_v48 }
 0x8bf   :  { %v2080_v7 = vmul.f32 %v2905_v24, %v2079_v37 }
 0x8c0   :  { %v2907_v50 = vpop.eup %2906 }
 0x8c1   :  { %v2098_v29 = vmul.f32 %v2907_v50, %v2096_v56  ;;  %v2081_v46 = vadd.f32 %v2905_v24, %v2080_v7  ;;  %vm2103_vm1 = vweird.f32 %v2907_v50  ;;  %v4782_v56 = vld [vmem:[#allocation9 + $0x160] sm:$0xff] }
 0x8c2   :  { %vm2104_vm14 = vmor %vm2102_vm12, %vm2103_vm1 }
 0x8c3   :  { %v2099_v15 = vsub.f32 1.0, %v2098_v29  ;;  %v2085_v62 = vsel %vm2084_vm7, %v2905_v24, %v2081_v46 }
 0x8c4   :  { %v2090_v27 = vsel %vm2087_vm8, %v2089_v32, %v2085_v62 }
 0x8c5   :  { %v2100_v1 = vmul.f32 %v2907_v50, %v2099_v15  ;;  %v2113_v38 = vmul.f32 %v2112_v57, %v2090_v27 }
 0x8c7   :  { %v2101_v23 = vadd.f32 %v2907_v50, %v2100_v1  ;;  %v2114_v35 = vadd.f32 %v2113_v38, %v1583_v28 }
 0x8c9   :  { %v2105_v25 = vsel %vm2104_vm14, %v2907_v50, %v2101_v23  ;;  %2908 = vtanh.f32 %v2114_v35  ;;  %v4792_v50 = vld [vmem:[#allocation9 + $0x130] sm:$0xff]  ;;  %v1586_v23 = vadd.f32 %v5079_v45, %v4483_v21 }
 0x8ca   :  { %v2110_v24 = vsel %vm2107_vm15, %v2109_v0, %v2105_v25 }
 0x8cb   :  { %v2116_v48 = vsub.f32 1.0, %v2110_v24  ;;  %v2118_v26 = vmul.f32 %v2110_v24, %v4676_v40 }
 0x8cf   :  { %v2909_v37 = vpop.eup %2908 }
 0x8d0   :  { %v2117_v4 = vmul.f32 %v2909_v37, %v2116_v48 }
 0x8d2   :  { %v2119_v7 = vadd.f32 %v2118_v26, %v2117_v4 }
 0x8d4   :  { %v4774_v19 = vsel %vm922_vm5, %v2119_v7, %v4676_v40  ;;  %v4787_v40 = vld [vmem:[#allocation9 + $0x148] sm:$0xff] }
 0x8d5   :  { %2140 = vmatmul.f32.vlgmr.msra.gmra.mxu0 %v4774_v19  ;;  %2160 = vmatmul.f32.vlgmr.msrb.gmra.mxu1 %v4774_v19 }
 0x8d6   :  { %2180 = vmatmul.f32.vlgmr.msra.gmra.mxu2 %v4774_v19  ;;  %2388 = vmatpush.msra.mxu0 %v4681_v59 }
 0x8d7   :  { %2460 = vmatpush.msrb.mxu1 %v4586_v9  ;;  %2480 = vmatpush.msra.mxu2 %v4685_v8  ;;  %v4797_v9 = vld [vmem:[#allocation9 + $0x118] sm:$0xff]  ;;  %v5078_v8 = vld [vmem:[#allocation30_spill] sm:$0xff] }
 0x8d8   :  { %2389 = vmatpush.msra.mxu0 %v4782_v56 }
 0x8d9   :  { %2461 = vmatpush.msrb.mxu1 %v4591_v42  ;;  %2481 = vmatpush.msra.mxu2 %v4690_v33  ;;  %v4802_v42 = vld [vmem:[#allocation9 + $0x100] sm:$0xff]  ;;  %v1545_v33 = vadd.f32 %v5078_v8, %v5069_v41 }
 0x8da   :  { %2390 = vmatpush.msra.mxu0 %v4787_v40 }
 0x8db   :  { %2462 = vmatpush.msrb.mxu1 %v4596_v16  ;;  %2482 = vmatpush.msra.mxu2 %v4695_v11  ;;  %v4807_v16 = vld [vmem:[#allocation9 + $0xe8] sm:$0xff] }
 0x8dc   :  { %2391 = vmatpush.msra.mxu0 %v4792_v50 }
 0x8dd   :  { %2463 = vmatpush.msrb.mxu1 %v4601_v17  ;;  %2483 = vmatpush.msra.mxu2 %v4700_v43  ;;  %v4812_v17 = vld [vmem:[#allocation9 + $0xd0] sm:$0xff] }
 0x8de   :  { %2392 = vmatpush.msra.mxu0 %v4797_v9 }
 0x8df   :  { %2464 = vmatpush.msrb.mxu1 %v4606_v49  ;;  %2484 = vmatpush.msra.mxu2 %v4705_v22  ;;  %v4817_v49 = vld [vmem:[#allocation9 + $0xb8] sm:$0xff] }
 0x8e0   :  { %2393 = vmatpush.msra.mxu0 %v4802_v42 }
 0x8e1   :  { %2465 = vmatpush.msrb.mxu1 %v4611_v36  ;;  %2485 = vmatpush.msra.mxu2 %v4710_v60  ;;  %v4822_v36 = vld [vmem:[#allocation9 + $0xa0] sm:$0xff] }
 0x8e2   :  { %2394 = vmatpush.msra.mxu0 %v4807_v16 }
 0x8e3   :  { %2466 = vmatpush.msrb.mxu1 %v4616_v52  ;;  %2486 = vmatpush.msra.mxu2 %v4715_v14  ;;  %v4827_v52 = vld [vmem:[#allocation9 + $0x88] sm:$0xff] }
 0x8e4   :  { %2395 = vmatpush.msra.mxu0 %v4812_v17 }
 0x8e5   :  { %2467 = vmatpush.msrb.mxu1 %v4621_v53  ;;  %2487 = vmatpush.msra.mxu2 %v4720_v12  ;;  %v4832_v53 = vld [vmem:[#allocation9 + $0x70] sm:$0xff] }
 0x8e6   :  { %2396 = vmatpush.msra.mxu0 %v4817_v49 }
 0x8e7   :  { %2468 = vmatpush.msrb.mxu1 %v4626_v54  ;;  %2488 = vmatpush.msra.mxu2 %v4725_v39  ;;  %v4837_v54 = vld [vmem:[#allocation9 + $0x58] sm:$0xff] }
 0x8e8   :  { %2397 = vmatpush.msra.mxu0 %v4822_v36 }
 0x8e9   :  { %2469 = vmatpush.msrb.mxu1 %v4631_v58  ;;  %2489 = vmatpush.msra.mxu2 %v4730_v34  ;;  %v4842_v58 = vld [vmem:[#allocation9 + $0x40] sm:$0xff] }
 0x8ea   :  { %2398 = vmatpush.msra.mxu0 %v4827_v52 }
 0x8eb   :  { %2470 = vmatpush.msrb.mxu1 %v4636_v2  ;;  %2490 = vmatpush.msra.mxu2 %v4735_v55  ;;  %v4847_v2 = vld [vmem:[#allocation9 + $0x28] sm:$0xff] }
 0x8ec   :  { %2399 = vmatpush.msra.mxu0 %v4832_v53 }
 0x8ed   :  { %2471 = vmatpush.msrb.mxu1 %v4641_v3  ;;  %2491 = vmatpush.msra.mxu2 %v4740_v18  ;;  %v4852_v3 = vld [vmem:[#allocation9 + $0x10] sm:$0xff] }
 0x8ee   :  { %2400 = vmatpush.msra.mxu0 %v4837_v54 }
 0x8ef   :  { %2472 = vmatpush.msrb.mxu1 %v4646_v5  ;;  %2492 = vmatpush.msra.mxu2 %v4745_v44  ;;  %v5077_v5 = vld [vmem:[#allocation38_spill] sm:$0xff] }
 0x8f0   :  { %2401 = vmatpush.msra.mxu0 %v4842_v58 }
 0x8f1   :  { %2473 = vmatpush.msrb.mxu1 %v4651_v6  ;;  %2493 = vmatpush.msra.mxu2 %v4750_v51  ;;  %v1504_v6 = vadd.f32 %v5077_v5, %v5070_v31 }
 0x8f2   :  { %2402 = vmatpush.msra.mxu0 %v4847_v2 }
 0x8f3   :  { %2474 = vmatpush.msrb.mxu1 %v4656_v10  ;;  %2494 = vmatpush.msra.mxu2 %v4755_v61 }
 0x8f4   :  { %2403 = vmatpush.msra.mxu0 %v4852_v3 }
 0x8f5   :  { %2475 = vmatpush.msrb.mxu1 %v4661_v47  ;;  %2495 = vmatpush.msra.mxu2 %v4760_v20 }
 0x952   :  { %v2141_v11 = vpop.f32.mrf.mxu0  ;;  %v2161_v43 = vpop.f32.mrf.mxu1 }
 0x953   :  { %v2184_v22 = vadd.f32 %v2141_v11, %v1504_v6  ;;  %v2204_v10 = vadd.f32 %v2161_v43, %v1545_v33 }
 0x955   :  { %v2759_v60 = vmul.f32 -1.442695, %v2184_v22  ;;  %v2760_v14 = vmul.f32 -1.442695, %v2204_v10 }
 0x957   :  { %2910 = vpow2.f32 %v2759_v60 }
 0x958   :  { %2912 = vpow2.f32 %v2760_v14 }
 0x959   :  { %v2181_v62 = vpop.f32.mrf.mxu2 }
 0x95a   :  { %v2224_v1 = vadd.f32 %v4481_v30, %v2181_v62 }
 0x95d   :  { %v2911_v12 = vpop.eup %2910 }
 0x95e   :  { %v2913_v39 = vpop.eup %2912  ;;  %v2188_v34 = vadd.f32 1.0, %v2911_v12 }
 0x95f   :  { %v2208_v47 = vadd.f32 1.0, %v2913_v39 }
 0x960   :  { %2914 = vrcp.f32 %v2188_v34  ;;  %v2200_v29 = vand.u32 2147483648, %v2188_v34  ;;  %v2198_v32 = vand.u32 2147483647, %v2188_v34  ;;  %vm2194_vm2 = vweird.f32 %v2188_v34 }
 0x961   :  { %2916 = vrcp.f32 %v2208_v47  ;;  %v2220_v35 = vand.u32 2147483648, %v2208_v47  ;;  %vm2214_vm6 = vweird.f32 %v2208_v47  ;;  %v2218_v25 = vand.u32 2147483647, %v2208_v47 }
 0x962   :  { %v2201_v28 = vor.u32 1.1754944e-38, %v2200_v29  ;;  %vm2199_vm4 = vcmp.eq.f32.partialorder %v2198_v32, 8.507059e+37 }
 0x963   :  { %v2221_v37 = vor.u32 1.1754944e-38, %v2220_v35  ;;  %vm2219_vm8 = vcmp.eq.f32.partialorder %v2218_v25, 8.507059e+37 }
 0x966   :  { %v2915_v55 = vpop.eup %2914 }
 0x967   :  { %v2917_v18 = vpop.eup %2916  ;;  %v2190_v44 = vmul.f32 %v2915_v55, %v2188_v34  ;;  %vm2195_vm5 = vweird.f32 %v2915_v55 }
 0x968   :  { %v2210_v51 = vmul.f32 %v2917_v18, %v2208_v47  ;;  %vm2196_vm3 = vmor %vm2194_vm2, %vm2195_vm5  ;;  %vm2215_vm11 = vweird.f32 %v2917_v18  ;;  %v4896_v47 = vld [vmem:[%s4947_s8] ss:$0 sm:$0xff] }
 0x969   :  { %v2191_v61 = vsub.f32 1.0, %v2190_v44  ;;  %vm2216_vm7 = vmor %vm2214_vm6, %vm2215_vm11 }
 0x96a   :  { %v2211_v20 = vsub.f32 1.0, %v2210_v51 }
 0x96b   :  { %v2192_v46 = vmul.f32 %v2915_v55, %v2191_v61  ;;  %v5083_v61 = vld [vmem:[#allocation31_spill] sm:$0xff] }
 0x96c   :  { %v2212_v15 = vmul.f32 %v2917_v18, %v2211_v20  ;;  %v1589_v20 = vadd.f32 %v5083_v61, %v4483_v21 }
 0x96d   :  { %v2193_v57 = vadd.f32 %v2915_v55, %v2192_v46 }
 0x96e   :  { %v2213_v13 = vadd.f32 %v2917_v18, %v2212_v15 }
 0x96f   :  { %v2197_v27 = vsel %vm2196_vm3, %v2915_v55, %v2193_v57 }
 0x970   :  { %v2202_v38 = vsel %vm2199_vm4, %v2201_v28, %v2197_v27  ;;  %v2217_v48 = vsel %vm2216_vm7, %v2917_v18, %v2213_v13 }
 0x971   :  { %v2225_v0 = vmul.f32 %v2224_v1, %v2202_v38  ;;  %v2222_v4 = vsel %vm2219_vm8, %v2221_v37, %v2217_v48 }
 0x972   :  { %v2228_v26 = vsub.f32 1.0, %v2222_v4  ;;  %v2230_v63 = vmul.f32 %v2222_v4, %v4774_v19 }
 0x973   :  { %v2226_v24 = vadd.f32 %v2225_v0, %v1586_v23  ;;  %v5085_v0 = vld [vmem:[#allocation40_spill] sm:$0xff]  ;;  %v2588_v23 = vld [vmem:[#allocation11 + $0x60] sm:$0xff] }
 0x974   :  { %v1510_v25 = vadd.f32 %v5085_v0, %v5070_v31  ;;  %v2587_v0 = vld [vmem:[#allocation11 + $0x58] sm:$0xff] }
 0x975   :  { %2918 = vtanh.f32 %v2226_v24  ;;  %v5086_v24 = vld [vmem:[#allocation32_spill] sm:$0xff] }
 0x976   :  { %v1551_v48 = vadd.f32 %v5086_v24, %v5069_v41 }
 0x97b   :  { %v2919_v7 = vpop.eup %2918 }
 0x97c   :  { %v2229_v30 = vmul.f32 %v2919_v7, %v2228_v26 }
 0x97e   :  { %v2231_v5 = vadd.f32 %v2230_v63, %v2229_v30 }
 0x980   :  { %v4868_v8 = vsel %vm1043_vm0, %v2231_v5, %v4774_v19 }
 0x981   :  { %2252 = vmatmul.f32.vlgmr.msrb.gmra.mxu3 %v4868_v8  ;;  %2272 = vmatmul.f32.vlgmr.msrb.gmra.mxu0 %v4868_v8 }
 0x982   :  { %2292 = vmatmul.f32.vlgmr.msra.gmra.mxu1 %v4868_v8  ;;  %2500 = vmatpush.msrb.mxu3 %v4681_v59  ;;  %v5081_v59 = vld [vmem:[#allocation22_spill] sm:$0xff] }
 0x983   :  { %v1548_v19 = vadd.f32 %v5081_v59, %v5069_v41 }
 0x984   :  { %2501 = vmatpush.msrb.mxu3 %v4782_v56 }
 0x986   :  { %2502 = vmatpush.msrb.mxu3 %v4787_v40 }
 0x988   :  { %2503 = vmatpush.msrb.mxu3 %v4792_v50 }
 0x98a   :  { %2504 = vmatpush.msrb.mxu3 %v4797_v9  ;;  %v5082_v9 = vld [vmem:[#allocation39_spill] sm:$0xff] }
 0x98c   :  { %2505 = vmatpush.msrb.mxu3 %v4802_v42  ;;  %v1507_v42 = vadd.f32 %v5082_v9, %v5070_v31 }
 0x98e   :  { %2506 = vmatpush.msrb.mxu3 %v4807_v16 }
 0x990   :  { %2507 = vmatpush.msrb.mxu3 %v4812_v17 }
 0x992   :  { %2508 = vmatpush.msrb.mxu3 %v4817_v49 }
 0x994   :  { %2509 = vmatpush.msrb.mxu3 %v4822_v36 }
 0x996   :  { %2510 = vmatpush.msrb.mxu3 %v4827_v52 }
 0x998   :  { %2511 = vmatpush.msrb.mxu3 %v4832_v53 }
 0x99a   :  { %2512 = vmatpush.msrb.mxu3 %v4837_v54 }
 0x99c   :  { %2513 = vmatpush.msrb.mxu3 %v4842_v58 }
 0x99e   :  { %2514 = vmatpush.msrb.mxu3 %v4847_v2 }
 0x9a0   :  { %2515 = vmatpush.msrb.mxu3 %v4852_v3 }
 0x9fe   :  { %v2273_v56 = vpop.f32.mrf.mxu0 }
 0x9ff   :  { %v2316_v40 = vadd.f32 %v2273_v56, %v1548_v19  ;;  %v2293_v12 = vpop.f32.mrf.mxu1 }
 0xa00   :  { %v2336_v55 = vadd.f32 %v4896_v47, %v2293_v12 }
 0xa01   :  { %v2762_v50 = vmul.f32 -1.442695, %v2316_v40 }
 0xa03   :  { %2920 = vpow2.f32 %v2762_v50 }
 0xa04   :  { %v2253_v16 = vpop.f32.mrf.mxu3 }
 0xa05   :  { %v2296_v17 = vadd.f32 %v2253_v16, %v1507_v42 }
 0xa07   :  { %v2761_v49 = vmul.f32 -1.442695, %v2296_v17 }
 0xa09   :  { %v2921_v36 = vpop.eup %2920  ;;  %2922 = vpow2.f32 %v2761_v49 }
 0xa0a   :  { %v2320_v52 = vadd.f32 1.0, %v2921_v36 }
 0xa0c   :  { %2924 = vrcp.f32 %v2320_v52  ;;  %v2332_v29 = vand.u32 2147483648, %v2320_v52  ;;  %vm2326_vm5 = vweird.f32 %v2320_v52  ;;  %v2330_v32 = vand.u32 2147483647, %v2320_v52 }
 0xa0e   :  { %v2333_v57 = vor.u32 1.1754944e-38, %v2332_v29  ;;  %vm2331_vm3 = vcmp.eq.f32.partialorder %v2330_v32, 8.507059e+37 }
 0xa0f   :  { %v2923_v53 = vpop.eup %2922 }
 0xa10   :  { %v2300_v54 = vadd.f32 1.0, %v2923_v53 }
 0xa12   :  { %2926 = vrcp.f32 %v2300_v54  ;;  %v2925_v58 = vpop.eup %2924  ;;  %v2312_v22 = vand.u32 2147483648, %v2300_v54  ;;  %v2310_v60 = vand.u32 2147483647, %v2300_v54  ;;  %vm2306_vm1 = vweird.f32 %v2300_v54 }
 0xa13   :  { %v2322_v2 = vmul.f32 %v2925_v58, %v2320_v52  ;;  %vm2327_vm15 = vweird.f32 %v2925_v58 }
 0xa14   :  { %v2313_v34 = vor.u32 1.1754944e-38, %v2312_v22  ;;  %vm2311_vm14 = vcmp.eq.f32.partialorder %v2310_v60, 8.507059e+37  ;;  %vm2328_vm2 = vmor %vm2326_vm5, %vm2327_vm15 }
 0xa15   :  { %v2323_v11 = vsub.f32 1.0, %v2322_v2 }
 0xa17   :  { %v2324_v14 = vmul.f32 %v2925_v58, %v2323_v11  ;;  %v5087_v11 = vld [vmem:[#allocation20_spill] sm:$0xff] }
 0xa18   :  { %v2927_v3 = vpop.eup %2926 }
 0xa19   :  { %v2302_v33 = vmul.f32 %v2927_v3, %v2300_v54  ;;  %vm2307_vm0 = vweird.f32 %v2927_v3  ;;  %v2325_v51 = vadd.f32 %v2925_v58, %v2324_v14 }
 0xa1a   :  { %vm2308_vm12 = vmor %vm2306_vm1, %vm2307_vm0 }
 0xa1b   :  { %v2303_v43 = vsub.f32 1.0, %v2302_v33  ;;  %v2329_v62 = vsel %vm2328_vm2, %v2925_v58, %v2325_v51 }
 0xa1c   :  { %v2334_v28 = vsel %vm2331_vm3, %v2333_v57, %v2329_v62  ;;  %v2591_v62 = vld [vmem:[#allocation11 + $0x78] sm:$0xff] }
 0xa1d   :  { %v2304_v10 = vmul.f32 %v2927_v3, %v2303_v43  ;;  %v2340_v27 = vsub.f32 1.0, %v2334_v28  ;;  %v2342_v38 = vmul.f32 %v2334_v28, %v4868_v8  ;;  %v1592_v43 = vadd.f32 %v5087_v11, %v4483_v21  ;;  %2593 = vmatpush.msrb.mxu0 %v2591_v62  ;;  %v2590_v28 = vld [vmem:[#allocation11 + $0x70] sm:$0xff] }
 0xa1f   :  { %v2305_v39 = vadd.f32 %v2927_v3, %v2304_v10  ;;  %2594 = vmatpush.msrb.mxu0 %v2590_v28 }
 0xa21   :  { %v2309_v18 = vsel %vm2308_vm12, %v2927_v3, %v2305_v39 }
 0xa22   :  { %v2314_v44 = vsel %vm2311_vm14, %v2313_v34, %v2309_v18 }
 0xa23   :  { %v2337_v46 = vmul.f32 %v2336_v55, %v2314_v44 }
 0xa25   :  { %v2338_v15 = vadd.f32 %v2337_v46, %v1589_v20  ;;  %v5089_v46 = vld [vmem:[#allocation41_spill] sm:$0xff] }
 0xa26   :  { %v1513_v32 = vadd.f32 %v5089_v46, %v5070_v31  ;;  %v2586_v31 = vld [vmem:[#allocation11 + $0x50] sm:$0xff] }
 0xa27   :  { %2928 = vtanh.f32 %v2338_v15 }
 0xa2d   :  { %v2929_v1 = vpop.eup %2928 }
 0xa2e   :  { %v2341_v13 = vmul.f32 %v2929_v1, %v2340_v27  ;;  %v2589_v1 = vld [vmem:[#allocation11 + $0x68] sm:$0xff] }
 0xa2f   :  { %2595 = vmatpush.msrb.mxu0 %v2589_v1  ;;  %v2647_v1 = vld [vmem:[#allocation12 + $0x78] sm:$0xff] }
 0xa30   :  { %v2343_v45 = vadd.f32 %v2342_v38, %v2341_v13  ;;  %v5090_v13 = vld [vmem:[#allocation23_spill] sm:$0xff]  ;;  %2649 = vmatpush.msra.mxu1 %v2647_v1 }
 0xa31   :  { %v1554_v38 = vadd.f32 %v5090_v13, %v5069_v41  ;;  %2596 = vmatpush.msrb.mxu0 %v2588_v23  ;;  %v2582_v41 = vld [vmem:[#allocation11 + $0x30] sm:$0xff]  ;;  %v2643_v23 = vld [vmem:[#allocation12 + $0x58] sm:$0xff] }
 0xa32   :  { %v2344_v35 = vsel %vm1164_vm13, %v2343_v45, %v4868_v8  ;;  %v2646_v13 = vld [vmem:[#allocation12 + $0x70] sm:$0xff] }
 0xa33   :  { %2364 = vmatmul.f32.vlgmr.msrb.gmra.mxu2 %v2344_v35  ;;  %2384 = vmatmul.f32.vlgmr.msra.gmra.mxu3 %v2344_v35 }
 0xa34   :  { %2404 = vmatmul.f32.vlgmr.msra.gmra.mxu0 %v2344_v35  ;;  %2650 = vmatpush.msra.mxu1 %v2646_v13 }
 0xa35   :  { %2597 = vmatpush.msrb.mxu0 %v2587_v0  ;;  %v2640_v0 = vld [vmem:[#allocation12 + $0x40] sm:$0xff] }
 0xa37   :  { %2598 = vmatpush.msrb.mxu0 %v2586_v31  ;;  %v2638_v31 = vld [vmem:[#allocation12 + $0x30] sm:$0xff] }
 0xab1   :  { %v2405_v36 = vpop.f32.mrf.mxu0 }
 0xab2   :  { %v2448_v58 = vadd.f32 %v4896_v47, %v2405_v36 }
 0xab6   :  { %v2365_v37 = vpop.f32.mrf.mxu2  ;;  %v2385_v4 = vpop.f32.mrf.mxu3 }
 0xab7   :  { %v2408_v26 = vadd.f32 %v2365_v37, %v1510_v25  ;;  %v2428_v7 = vadd.f32 %v2385_v4, %v1551_v48  ;;  %v2585_v37 = vld [vmem:[#allocation11 + $0x48] sm:$0xff]  ;;  %v2584_v4 = vld [vmem:[#allocation11 + $0x40] sm:$0xff] }
 0xab8   :  { %2599 = vmatpush.msrb.mxu0 %v2585_v37  ;;  %v2635_v37 = vld [vmem:[#allocation12 + $0x18] sm:$0xff] }
 0xab9   :  { %v2763_v30 = vmul.f32 -1.442695, %v2408_v26  ;;  %v2764_v63 = vmul.f32 -1.442695, %v2428_v7  ;;  %v2583_v26 = vld [vmem:[#allocation11 + $0x38] sm:$0xff] }
 0xaba   :  { %2600 = vmatpush.msrb.mxu0 %v2584_v4  ;;  %v2634_v4 = vld [vmem:[#allocation12 + $0x10] sm:$0xff] }
 0xabb   :  { %2930 = vpow2.f32 %v2763_v30 }
 0xabc   :  { %2932 = vpow2.f32 %v2764_v63  ;;  %2601 = vmatpush.msrb.mxu0 %v2583_v26  ;;  %v2581_v63 = vld [vmem:[#allocation11 + $0x28] sm:$0xff] }
 0xabd   :  { %v2633_v26 = vld [vmem:[#allocation12 + $0x8] sm:$0xff] }
 0xabe   :  { %2602 = vmatpush.msrb.mxu0 %v2582_v41  ;;  %v2592_v41 = vld [vmem:[%s4949_s10] sm:$0x1] }
 0xac0   :  { %2603 = vmatpush.msrb.mxu0 %v2581_v63 }
 0xac1   :  { %v2931_v5 = vpop.eup %2930 }
 0xac2   :  { %v2933_v6 = vpop.eup %2932  ;;  %v2412_v8 = vadd.f32 1.0, %v2931_v5 }
 0xac3   :  { %v2432_v59 = vadd.f32 1.0, %v2933_v6  ;;  %v2580_v6 = vld [vmem:[#allocation11 + $0x20] sm:$0xff] }
 0xac4   :  { %2934 = vrcp.f32 %v2412_v8  ;;  %v2424_v42 = vand.u32 2147483648, %v2412_v8  ;;  %v2422_v49 = vand.u32 2147483647, %v2412_v8  ;;  %vm2418_vm4 = vweird.f32 %v2412_v8  ;;  %2604 = vmatpush.msrb.mxu0 %v2580_v6 }
 0xac5   :  { %2936 = vrcp.f32 %v2432_v59  ;;  %v2444_v10 = vand.u32 2147483648, %v2432_v59  ;;  %vm2438_vm8 = vweird.f32 %v2432_v59  ;;  %v2442_v60 = vand.u32 2147483647, %v2432_v59 }
 0xac6   :  { %v2425_v54 = vor.u32 1.1754944e-38, %v2424_v42  ;;  %vm2423_vm6 = vcmp.eq.f32.partialorder %v2422_v49, 8.507059e+37 }
 0xac7   :  { %v2445_v39 = vor.u32 1.1754944e-38, %v2444_v10  ;;  %vm2443_vm1 = vcmp.eq.f32.partialorder %v2442_v60, 8.507059e+37 }
 0xaca   :  { %v2935_v19 = vpop.eup %2934 }
 0xacb   :  { %v2937_v56 = vpop.eup %2936  ;;  %v2414_v40 = vmul.f32 %v2935_v19, %v2412_v8  ;;  %vm2419_vm13 = vweird.f32 %v2935_v19 }
 0xacc   :  { %v2434_v50 = vmul.f32 %v2937_v56, %v2432_v59  ;;  %vm2420_vm11 = vmor %vm2418_vm4, %vm2419_vm13  ;;  %vm2439_vm7 = vweird.f32 %v2937_v56  ;;  %v2579_v59 = vld [vmem:[#allocation11 + $0x18] sm:$0xff] }
 0xacd   :  { %v2415_v9 = vsub.f32 1.0, %v2414_v40  ;;  %vm2440_vm0 = vmor %vm2438_vm8, %vm2439_vm7  ;;  %v2578_v40 = vld [vmem:[#allocation11 + $0x10] sm:$0xff]  ;;  %2605 = vmatpush.msrb.mxu0 %v2579_v59 }
 0xace   :  { %v2435_v16 = vsub.f32 1.0, %v2434_v50 }
 0xacf   :  { %v2416_v17 = vmul.f32 %v2935_v19, %v2415_v9  ;;  %2606 = vmatpush.msrb.mxu0 %v2578_v40 }
 0xad0   :  { %v2436_v52 = vmul.f32 %v2937_v56, %v2435_v16 }
 0xad1   :  { %v2417_v53 = vadd.f32 %v2935_v19, %v2416_v17  ;;  %v2577_v17 = vld [vmem:[#allocation11 + $0x8] sm:$0xff] }
 0xad2   :  { %v2437_v33 = vadd.f32 %v2937_v56, %v2436_v52  ;;  %2607 = vmatpush.msrb.mxu0 %v2577_v17 }
 0xad3   :  { %v2421_v2 = vsel %vm2420_vm11, %v2935_v19, %v2417_v53  ;;  %v2576_v53 = vld [vmem:[#allocation11] sm:$0xff] }
 0xad4   :  { %v2426_v3 = vsel %vm2423_vm6, %v2425_v54, %v2421_v2  ;;  %v2441_v12 = vsel %vm2440_vm0, %v2937_v56, %v2437_v33  ;;  %2608 = vmatpush.msrb.mxu0 %v2576_v53 }
 0xad5   :  { %v2449_v22 = vmul.f32 %v2448_v58, %v2426_v3  ;;  %v2446_v34 = vsel %vm2443_vm1, %v2445_v39, %v2441_v12  ;;  %v5091_v3 = vld [vmem:[#allocation18_spill] sm:$0xff] }
 0xad6   :  { %v2452_v55 = vsub.f32 1.0, %v2446_v34  ;;  %v2454_v51 = vmul.f32 %v2446_v34, %v2344_v35  ;;  %v1595_v33 = vadd.f32 %v5091_v3, %v4483_v21 }
 0xad7   :  { %v2450_v14 = vadd.f32 %v2449_v22, %v1592_v43 }
 0xad9   :  { %2938 = vtanh.f32 %v2450_v14 }
 0xadf   :  { %v2939_v18 = vpop.eup %2938 }
 0xae0   :  { %v2453_v44 = vmul.f32 %v2939_v18, %v2452_v55 }
 0xae2   :  { %v2455_v61 = vadd.f32 %v2454_v51, %v2453_v44 }
 0xae4   :  { %v4914_v29 = vsel %vm1285_vm10, %v2455_v61, %v2344_v35 }
 0xae5   :  { %2476 = vmatmul.f32.vlgmr.msrb.gmra.mxu1 %v4914_v29  ;;  %2496 = vmatmul.f32.vlgmr.msra.gmra.mxu2 %v4914_v29 }
 0xae6   :  { %2516 = vmatmul.f32.vlgmr.msrb.gmra.mxu3 %v4914_v29 }
 0xb62   :  { %v2477_v15 = vpop.f32.mrf.mxu1 }
 0xb63   :  { %v2520_v57 = vadd.f32 %v2477_v15, %v1513_v32 }
 0xb65   :  { %v2765_v27 = vmul.f32 -1.442695, %v2520_v57 }
 0xb67   :  { %2940 = vpow2.f32 %v2765_v27 }
 0xb68   :  { %v2497_v45 = vpop.f32.mrf.mxu2 }
 0xb69   :  { %v2540_v35 = vadd.f32 %v2497_v45, %v1554_v38  ;;  %v2517_v16 = vpop.f32.mrf.mxu3  ;;  %v2645_v38 = vld [vmem:[#allocation12 + $0x68] sm:$0xff]  ;;  %v2644_v45 = vld [vmem:[#allocation12 + $0x60] sm:$0xff] }
 0xb6a   :  { %v2560_v2 = vadd.f32 %v4896_v47, %v2517_v16  ;;  %2651 = vmatpush.msra.mxu1 %v2645_v38 }
 0xb6b   :  { %v2766_v25 = vmul.f32 -1.442695, %v2540_v35  ;;  %v2642_v35 = vld [vmem:[#allocation12 + $0x50] sm:$0xff] }
 0xb6c   :  { %2652 = vmatpush.msra.mxu1 %v2644_v45 }
 0xb6d   :  { %v2941_v24 = vpop.eup %2940  ;;  %2942 = vpow2.f32 %v2766_v25  ;;  %v2639_v25 = vld [vmem:[#allocation12 + $0x38] sm:$0xff] }
 0xb6e   :  { %v2524_v48 = vadd.f32 1.0, %v2941_v24  ;;  %2653 = vmatpush.msra.mxu1 %v2643_v23  ;;  %v2637_v24 = vld [vmem:[#allocation12 + $0x28] sm:$0xff] }
 0xb70   :  { %2944 = vrcp.f32 %v2524_v48  ;;  %v2536_v56 = vand.u32 2147483648, %v2524_v48  ;;  %v2534_v9 = vand.u32 2147483647, %v2524_v48  ;;  %vm2530_vm12 = vweird.f32 %v2524_v48  ;;  %2654 = vmatpush.msra.mxu1 %v2642_v35 }
 0xb72   :  { %v2537_v52 = vor.u32 1.1754944e-38, %v2536_v56  ;;  %vm2535_vm15 = vcmp.eq.f32.partialorder %v2534_v9, 8.507059e+37 }
 0xb73   :  { %v2943_v7 = vpop.eup %2942 }
 0xb74   :  { %v2544_v30 = vadd.f32 1.0, %v2943_v7  ;;  %v2632_v7 = vld [vmem:[#allocation12] sm:$0xff] }
 0xb76   :  { %v2945_v5 = vpop.eup %2944  ;;  %2946 = vrcp.f32 %v2544_v30  ;;  %v2556_v22 = vand.u32 2147483648, %v2544_v30  ;;  %v2554_v60 = vand.u32 2147483647, %v2544_v30  ;;  %vm2550_vm2 = vweird.f32 %v2544_v30 }
 0xb77   :  { %v2526_v8 = vmul.f32 %v2945_v5, %v2524_v48  ;;  %vm2531_vm10 = vweird.f32 %v2945_v5  ;;  %v2636_v48 = vld [vmem:[#allocation12 + $0x20] sm:$0xff] }
 0xb78   :  { %vm2532_vm14 = vmor %vm2530_vm12, %vm2531_vm10  ;;  %v2557_v39 = vor.u32 1.1754944e-38, %v2556_v22  ;;  %vm2555_vm13 = vcmp.eq.f32.partialorder %v2554_v60, 8.507059e+37 }
 0xb79   :  { %v2527_v19 = vsub.f32 1.0, %v2526_v8 }
 0xb7b   :  { %v2528_v50 = vmul.f32 %v2945_v5, %v2527_v19 }
 0xb7c   :  { %v2947_v42 = vpop.eup %2946 }
 0xb7d   :  { %v2546_v49 = vmul.f32 %v2947_v42, %v2544_v30  ;;  %v2529_v36 = vadd.f32 %v2945_v5, %v2528_v50  ;;  %vm2551_vm5 = vweird.f32 %v2947_v42 }
 0xb7e   :  { %vm2552_vm3 = vmor %vm2550_vm2, %vm2551_vm5 }
 0xb7f   :  { %v2547_v54 = vsub.f32 1.0, %v2546_v49  ;;  %v2533_v58 = vsel %vm2532_vm14, %v2945_v5, %v2529_v36  ;;  %v2648_v36 = vld [vmem:[%s4951_s12] sm:$0x1] }
 0xb80   :  { %v2538_v11 = vsel %vm2535_vm15, %v2537_v52, %v2533_v58 }
 0xb81   :  { %v2548_v43 = vmul.f32 %v2947_v42, %v2547_v54  ;;  %v2561_v10 = vmul.f32 %v2560_v2, %v2538_v11 }
 0xb83   :  { %v2549_v14 = vadd.f32 %v2947_v42, %v2548_v43  ;;  %v2562_v12 = vadd.f32 %v2561_v10, %v1595_v33 }
 0xb85   :  { %v2553_v34 = vsel %vm2552_vm3, %v2947_v42, %v2549_v14  ;;  %2948 = vtanh.f32 %v2562_v12 }
 0xb86   :  { %v2558_v47 = vsel %vm2555_vm13, %v2557_v39, %v2553_v34 }
 0xb87   :  { %v2564_v55 = vsub.f32 1.0, %v2558_v47  ;;  %v2566_v21 = vmul.f32 %v2558_v47, %v4914_v29 }
 0xb8b   :  { %v2949_v18 = vpop.eup %2948 }
 0xb8c   :  { %v2565_v44 = vmul.f32 %v2949_v18, %v2564_v55 }
 0xb8e   :  { %v2567_v51 = vadd.f32 %v2566_v21, %v2565_v44 }
 0xb90   :  { %v2568_v20 = vsel %vm1406_vm9, %v2567_v51, %v4914_v29  ;;  %v2641_v29 = vld [vmem:[#allocation12 + $0x48] sm:$0xff] }
 0xb91   :  { %v2569_v46 = vrot.slane %v2568_v20, 4  ;;  %2655 = vmatpush.msra.mxu1 %v2641_v29 }
 0xb93   :  { %v2570_v32 = vadd.f32 %v2569_v46, %v2568_v20  ;;  %2656 = vmatpush.msra.mxu1 %v2640_v0 }
 0xb95   :  { %v2571_v15 = vrot.slane %v2570_v32, 2  ;;  %2657 = vmatpush.msra.mxu1 %v2639_v25 }
 0xb97   :  { %v2572_v62 = vadd.f32 %v2571_v15, %v2570_v32  ;;  %2658 = vmatpush.msra.mxu1 %v2638_v31 }
 0xb99   :  { %v2573_v57 = vrot.slane %v2572_v62, 1  ;;  %2659 = vmatpush.msra.mxu1 %v2637_v24 }
 0xb9b   :  { %v2574_v28 = vadd.f32 %v2573_v57, %v2572_v62  ;;  %2660 = vmatpush.msra.mxu1 %v2636_v48 }
 0xb9d   :  { %v2575_v27 = vmul.f32 0.5, %v2574_v28  ;;  %2661 = vmatpush.msra.mxu1 %v2635_v37 }
 0xb9f   :  { %2609 = vmatmul.f32.vlgmr.msrb.gmra.mxu0 %v2575_v27  ;;  %2662 = vmatpush.msra.mxu1 %v2634_v4 }
 0xba1   :  { %2663 = vmatpush.msra.mxu1 %v2633_v26 }
 0xba3   :  { %2664 = vmatpush.msra.mxu1 %v2632_v7 }
 0xc1c   :  { %v2610_v30 = vpop.f32.mrf.mxu0 }
 0xc1d   :  { %v2611_v63 = vadd.f32 %v2610_v30, %v2592_v41 }
 0xc1f   :  { %v2767_v5 = vmul.f32 -1.442695, %v2611_v63 }
 0xc21   :  { %2950 = vpow2.f32 %v2767_v5 }
 0xc27   :  { %v2951_v6 = vpop.eup %2950 }
 0xc28   :  { %v2616_v8 = vadd.f32 1.0, %v2951_v6 }
 0xc2a   :  { %2952 = vrcp.f32 %v2616_v8  ;;  %v2628_v40 = vand.u32 2147483648, %v2616_v8  ;;  %v2626_v9 = vand.u32 2147483647, %v2616_v8  ;;  %vm2622_vm4 = vweird.f32 %v2616_v8 }
 0xc2c   :  { %v2629_v16 = vor.u32 1.1754944e-38, %v2628_v40  ;;  %vm2627_vm6 = vcmp.eq.f32.partialorder %v2626_v9, 8.507059e+37 }
 0xc30   :  { %v2953_v59 = vpop.eup %2952 }
 0xc31   :  { %v2618_v19 = vmul.f32 %v2953_v59, %v2616_v8  ;;  %vm2623_vm9 = vweird.f32 %v2953_v59 }
 0xc32   :  { %vm2624_vm11 = vmor %vm2622_vm4, %vm2623_vm9 }
 0xc33   :  { %v2619_v56 = vsub.f32 1.0, %v2618_v19 }
 0xc35   :  { %v2620_v50 = vmul.f32 %v2953_v59, %v2619_v56 }
 0xc37   :  { %v2621_v42 = vadd.f32 %v2953_v59, %v2620_v50 }
 0xc39   :  { %v2625_v17 = vsel %vm2624_vm11, %v2953_v59, %v2621_v42 }
 0xc3a   :  { %v2630_v49 = vsel %vm2627_vm6, %v2629_v16, %v2625_v17 }
 0xc3b   :  { %2665 = vmatmul.f32.vlgmr.msra.gmra.mxu1 %v2630_v49 }
 0xcb8   :  { %v2666_v52 = vpop.f32.mrf.mxu1 }
 0xcb9   :  { %v2667_v53 = vadd.f32 %v2666_v52, %v2648_v36 }
 0xcbb   :  { %v2768_v54 = vmul.f32 -1.442695, %v2667_v53 }
 0xcbd   :  { %2954 = vpow2.f32 %v2768_v54 }
 0xcc3   :  { %v2955_v58 = vpop.eup %2954 }
 0xcc4   :  { %v2672_v2 = vadd.f32 1.0, %v2955_v58 }
 0xcc6   :  { %2956 = vrcp.f32 %v2672_v2  ;;  %v2684_v43 = vand.u32 2147483648, %v2672_v2  ;;  %v2682_v10 = vand.u32 2147483647, %v2672_v2  ;;  %vm2678_vm8 = vweird.f32 %v2672_v2 }
 0xcc8   :  { %v2685_v14 = vor.u32 1.1754944e-38, %v2684_v43  ;;  %vm2683_vm1 = vcmp.eq.f32.partialorder %v2682_v10, 8.507059e+37 }
 0xccc   :  { %v2957_v3 = vpop.eup %2956 }
 0xccd   :  { %v2674_v33 = vmul.f32 %v2957_v3, %v2672_v2  ;;  %vm2679_vm7 = vweird.f32 %v2957_v3 }
 0xcce   :  { %vm2680_vm0 = vmor %vm2678_vm8, %vm2679_vm7 }
 0xccf   :  { %v2675_v11 = vsub.f32 1.0, %v2674_v33 }
 0xcd1   :  { %v2676_v22 = vmul.f32 %v2957_v3, %v2675_v11 }
 0xcd3   :  { %v2677_v60 = vadd.f32 %v2957_v3, %v2676_v22 }
 0xcd5   :  { %v2681_v12 = vsel %vm2680_vm0, %v2957_v3, %v2677_v60 }
 0xcd6   :  { %v2686_v39 = vsel %vm2683_vm1, %v2685_v14, %v2681_v12 }
 0xcd7   :  { %2688 = vst [vmem:[%s4952_s13] sm:$0x1] %v2686_v39 }
 0xcd8   :  { %2693 = vsyncpa [#allocation5], 1 }
 0xcd9   :  { %2694 = vsyncpa [#allocation7], 1 }
 0xcda   :  { %2695 = vsyncpa [#allocation10], 1 }
 0xcdb   :  { %2696 = vsyncpa [#allocation13], 1 }

</bundles_post_ra>
